<compile_context>
chip_gen: v6e
topology: v6e:2x2x1
jax: 0.10.0
libtpu: 0.0.40
codegen_flags: <defaults>
</compile_context>

<pallas_src>
import jax
import jax.numpy as jnp
from jax import lax
from jax.experimental import pallas as pl
from jax.experimental.pallas import tpu as pltpu

POSE_DIM = 6
EYE_DIM = 6
EMO_DIM = 30
FEAT = 512
EMB_PAD = 128            # lane-dense padded width of the shared embed matrix
NUM_HEADS = 4            # 0=mouth, 1=headpose, 2=eye, 3=emo
HEADS_PER_STEP = 2       # two heads per grid step
NUM_STEPS = NUM_HEADS // HEADS_PER_STEP
BN_EPS = 1e-5


# --------------------------------------------------------------------------------------
# Kernels
# --------------------------------------------------------------------------------------
def _backbone_kernel(x_ref, wb_ref, bb_ref, f_out):
    """Stand-in for FAN_use: f = flatten(x) @ Wb + bb.  Runs once (no grid)."""
    f_out[...] = (
        jnp.dot(x_ref[...], wb_ref[...], preferred_element_type=jnp.float32)
        + bb_ref[...]
    )


def _heads_kernel(f_ref, w1_ref, vec_ref, w2_ref, we_ref, be_ref, feat_out, emb_out):
    """One grid step = two 'to_*' heads:  Linear -> ReLU -> BatchNorm1d(train) -> Linear,
    then the shared lane-dense embed Linear (ReLU -> Linear(512 -> 128-packed))."""
    f16 = f_ref[...].astype(jnp.bfloat16)          # (B, 512) shared feature (resident)
    we = we_ref[...]                               # (512, 128) bf16, shared across steps
    be = be_ref[...]                               # (1, 128) f32, shared across steps

    for j in range(HEADS_PER_STEP):                # static unroll over the 2 heads in block
        v = vec_ref[j]                             # (8, 512): rows 0=b1 1=gamma 2=beta 3=b2
        b1, gamma, beta, b2 = v[0:1, :], v[1:2, :], v[2:3, :], v[3:4, :]

        # Linear(512,512) + ReLU
        h = jnp.dot(f16, w1_ref[j], preferred_element_type=jnp.float32) + b1
        h = jnp.maximum(h, 0.0)

        # BatchNorm1d (training mode: biased batch statistics over the batch axis)
        mu = jnp.mean(h, axis=0, keepdims=True)
        var = jnp.mean((h - mu) * (h - mu), axis=0, keepdims=True)
        h = (h - mu) * lax.rsqrt(var + BN_EPS) * gamma + beta

        # Linear(512,512) -> per-head feature
        feat = jnp.dot(h.astype(jnp.bfloat16), w2_ref[j],
                       preferred_element_type=jnp.float32) + b2
        feat_out[j] = feat

        # ReLU -> shared packed embed Linear (head 0's slice is never read by the wrapper)
        emb = jnp.dot(jnp.maximum(feat, 0.0).astype(jnp.bfloat16), we,
                      preferred_element_type=jnp.float32) + be
        emb_out[j] = emb


# --------------------------------------------------------------------------------------
# Parameters
# --------------------------------------------------------------------------------------
def init_params(key, in_features):
    """Deterministic synthetic parameter init (shapes follow the module __init__)."""
    ks = jax.random.split(key, 32)
    it = iter(range(32))
    nrm = lambda shape, k: (0.02 * jax.random.normal(ks[k], shape)).astype(jnp.float32)

    params = {}
    params["wb"] = nrm((in_features, FEAT), next(it))
    params["bb"] = nrm((1, FEAT), next(it))

    # stacked params for the 4 "to_*" heads: [mouth, headpose, eye, emo]
    params["w1"] = jnp.stack([nrm((FEAT, FEAT), next(it)) for _ in range(NUM_HEADS)])
    params["b1"] = jnp.stack([nrm((1, FEAT), next(it)) for _ in range(NUM_HEADS)])
    params["gamma"] = jnp.stack(
        [(1.0 + 0.1 * jax.random.normal(ks[next(it)], (1, FEAT))).astype(jnp.float32)
         for _ in range(NUM_HEADS)])
    params["beta"] = jnp.stack([nrm((1, FEAT), next(it)) for _ in range(NUM_HEADS)])
    params["w2"] = jnp.stack([nrm((FEAT, FEAT), next(it)) for _ in range(NUM_HEADS)])
    params["b2"] = jnp.stack([nrm((1, FEAT), next(it)) for _ in range(NUM_HEADS)])

    params["wpe"] = nrm((FEAT, POSE_DIM), next(it))   # headpose_embed
    params["bpe"] = nrm((1, POSE_DIM), next(it))
    params["wee"] = nrm((FEAT, EYE_DIM), next(it))    # eye_embed
    params["bee"] = nrm((1, EYE_DIM), next(it))
    params["wme"] = nrm((FEAT, EMO_DIM), next(it))    # emo_embed
    params["bme"] = nrm((1, EMO_DIM), next(it))
    return params


def prepare_params(params):
    """Kernel-layout params: bf16 weights, packed per-head vectors, shared packed embed."""
    prep = {
        "wb": params["wb"].astype(jnp.bfloat16),
        "bb": params["bb"],
        "w1": params["w1"].astype(jnp.bfloat16),     # (4, 512, 512)
        "w2": params["w2"].astype(jnp.bfloat16),     # (4, 512, 512)
    }

    # Packed per-head vectors: one sublane-aligned (8,512) f32 tile per head.
    vec = jnp.zeros((NUM_HEADS, 8, FEAT), jnp.float32)
    vec = vec.at[:, 0, :].set(params["b1"][:, 0, :])
    vec = vec.at[:, 1, :].set(params["gamma"][:, 0, :])
    vec = vec.at[:, 2, :].set(params["beta"][:, 0, :])
    vec = vec.at[:, 3, :].set(params["b2"][:, 0, :])
    prep["vec"] = vec

    # Shared lane-dense embed matrix: cols [0:6]=pose, [6:12]=eye, [12:42]=emo, rest zero.
    we = jnp.zeros((FEAT, EMB_PAD), jnp.float32)
    we = we.at[:, 0:POSE_DIM].set(params["wpe"])
    we = we.at[:, POSE_DIM:POSE_DIM + EYE_DIM].set(params["wee"])
    we = we.at[:, POSE_DIM + EYE_DIM:POSE_DIM + EYE_DIM + EMO_DIM].set(params["wme"])
    be = jnp.zeros((1, EMB_PAD), jnp.float32)
    be = be.at[:, 0:POSE_DIM].set(params["bpe"])
    be = be.at[:, POSE_DIM:POSE_DIM + EYE_DIM].set(params["bee"])
    be = be.at[:, POSE_DIM + EYE_DIM:POSE_DIM + EYE_DIM + EMO_DIM].set(params["bme"])
    prep["we"] = we.astype(jnp.bfloat16)
    prep["be"] = be
    return prep


# --------------------------------------------------------------------------------------
# Forward
# --------------------------------------------------------------------------------------
@jax.jit
def fan_encoder_forward(x_nchw, prep):
    """x_nchw: (B, C, H, W) f32, PyTorch layout.
    Returns (headpose_emb, eye_embed, emo_embed, mouth_feat)."""
    B = x_nchw.shape[0]
    x_flat = x_nchw.reshape(B, -1).astype(jnp.bfloat16)   # bf16 halves the input DMA

    # --- backbone stand-in, computed ONCE (hoisted out of the per-head grid) ---
    f = pl.pallas_call(
        _backbone_kernel,
        out_shape=jax.ShapeDtypeStruct((B, FEAT), jnp.float32),
    )(x_flat, prep["wb"], prep["bb"])

    grid_spec = pltpu.PrefetchScalarGridSpec(
        num_scalar_prefetch=0,
        grid=(NUM_STEPS,),                                                   # 2 heads/step
        in_specs=[
            pl.BlockSpec((B, FEAT), lambda i: (0, 0)),                       # f (resident)
            pl.BlockSpec((HEADS_PER_STEP, FEAT, FEAT), lambda i: (i, 0, 0)), # w1 pair
            pl.BlockSpec((HEADS_PER_STEP, 8, FEAT), lambda i: (i, 0, 0)),    # packed vecs
            pl.BlockSpec((HEADS_PER_STEP, FEAT, FEAT), lambda i: (i, 0, 0)), # w2 pair
            pl.BlockSpec((FEAT, EMB_PAD), lambda i: (0, 0)),                 # shared embed W
            pl.BlockSpec((1, EMB_PAD), lambda i: (0, 0)),                    # shared embed b
        ],
        out_specs=[
            pl.BlockSpec((HEADS_PER_STEP, B, FEAT), lambda i: (i, 0, 0)),    # per-head feat
            pl.BlockSpec((HEADS_PER_STEP, B, EMB_PAD), lambda i: (i, 0, 0)), # per-head emb
        ],
    )

    feats, embs = pl.pallas_call(
        _heads_kernel,
        out_shape=(
            jax.ShapeDtypeStruct((NUM_HEADS, B, FEAT), jnp.float32),
            jax.ShapeDtypeStruct((NUM_HEADS, B, EMB_PAD), jnp.float32),
        ),
        grid_spec=grid_spec,
        compiler_params=pltpu.CompilerParams(
            dimension_semantics=("parallel",),      # one step per TensorCore on v7x
            vmem_limit_bytes=24 * 1024 * 1024,      # ~4.6 MiB actual; fits v7x 64 MiB
        ),
        cost_estimate=pl.CostEstimate(
            flops=40_000_000, transcendentals=4096, bytes_accessed=4_600_000),
    )(f, prep["w1"], prep["vec"], prep["w2"], prep["we"], prep["be"])

    mouth_feat = feats[0]
    headpose_emb = embs[1, :, 0:POSE_DIM]
    eye_embed = embs[2, :, POSE_DIM:POSE_DIM + EYE_DIM]
    emo_embed = embs[3, :, POSE_DIM + EYE_DIM:POSE_DIM + EYE_DIM + EMO_DIM]
    return headpose_emb, eye_embed, emo_embed, mouth_feat


def fan_encoder_reference(x_nchw, prep):
    """Pure-JAX reference of the same (bf16-weight) math, for correctness check."""
    B = x_nchw.shape[0]
    x = x_nchw.reshape(B, -1).astype(jnp.bfloat16)
    f = jnp.dot(x, prep["wb"], preferred_element_type=jnp.float32) + prep["bb"]

    def head(i):
        v = prep["vec"][i]
        h = jnp.dot(f.astype(jnp.bfloat16), prep["w1"][i],
                    preferred_element_type=jnp.float32) + v[0:1, :]
        h = jnp.maximum(h, 0.0)
        mu = h.mean(0, keepdims=True)
        var = ((h - mu) ** 2).mean(0, keepdims=True)
        h = (h - mu) * lax.rsqrt(var + BN_EPS) * v[1:2, :] + v[2:3, :]
        return jnp.dot(h.astype(jnp.bfloat16), prep["w2"][i],
                       preferred_element_type=jnp.float32) + v[3:4, :]

    def embed(feat):
        return jnp.dot(jnp.maximum(feat, 0.0).astype(jnp.bfloat16), prep["we"],
                       preferred_element_type=jnp.float32) + prep["be"]

    mouth = head(0)
    pose = embed(head(1))[:, 0:POSE_DIM]
    eye = embed(head(2))[:, POSE_DIM:POSE_DIM + EYE_DIM]
    emo = embed(head(3))[:, POSE_DIM + EYE_DIM:POSE_DIM + EYE_DIM + EMO_DIM]
    return pose, eye, emo, mouth


if __name__ == "__main__":
    key = jax.random.PRNGKey(0)
    k_x, k_p = jax.random.split(key)

    B, C, H, W = 8, 3, 16, 16
    x = jax.random.normal(k_x, (B, C, H, W), dtype=jnp.float32)
    params = init_params(k_p, C * H * W)
    prep = prepare_params(params)

    outs = fan_encoder_forward(x, prep)
    outs = jax.block_until_ready(outs)

    refs = fan_encoder_reference(x, prep)
    names = ("headpose_emb", "eye_embed", "emo_embed", "mouth_feat")
    for name, o, r in zip(names, outs, refs):
        assert o.shape == r.shape and o.dtype == jnp.float32, (name, o.shape, o.dtype)
        err = float(jnp.max(jnp.abs(o - r)))
        assert jnp.allclose(o, r, rtol=5e-3, atol=5e-3), (name, err)

    print("KERNEL_OK")
</pallas_src>

<mosaic_0001>
module attributes {stable_mosaic.version = 11 : i64} {
  func.func @_backbone_kernel(%arg0: memref<8x768xbf16, #tpu.memory_space<vmem>>, %arg1: memref<768x512xbf16, #tpu.memory_space<vmem>>, %arg2: memref<1x512xf32, #tpu.memory_space<vmem>>, %arg3: memref<8x512xf32, #tpu.memory_space<vmem>>) attributes {dimension_semantics = [], scalar_prefetch = 0 : i64, scratch_operands = 0 : i64, tpu.core_type = #tpu.core_type<tc>} {
    %c0 = arith.constant 0 : index
    %c0_0 = arith.constant 0 : index
    %0 = vector.load %arg0[%c0, %c0_0] : memref<8x768xbf16, #tpu.memory_space<vmem>>, vector<8x768xbf16>
    %c0_1 = arith.constant 0 : index
    %c0_2 = arith.constant 0 : index
    %1 = vector.load %arg1[%c0_1, %c0_2] : memref<768x512xbf16, #tpu.memory_space<vmem>>, vector<768x512xbf16>
    %cst = arith.constant dense<0.000000e+00> : vector<8x512xf32>
    %2 = tpu.matmul %0, %1, %cst {dimension_numbers = #tpu.dot_dimension_numbers<[1], [0], [0], [1], [0, 0, 1, 1], [], []>} : vector<8x768xbf16>, vector<768x512xbf16>, vector<8x512xf32> -> vector<8x512xf32>
    %c0_3 = arith.constant 0 : index
    %c0_4 = arith.constant 0 : index
    %3 = vector.load %arg2[%c0_3, %c0_4] : memref<1x512xf32, #tpu.memory_space<vmem>>, vector<1x512xf32>
    %4 = vector.broadcast %3 : vector<1x512xf32> to vector<8x512xf32>
    %5 = arith.addf %2, %4 : vector<8x512xf32>
    %c0_5 = arith.constant 0 : index
    %c0_6 = arith.constant 0 : index
    %6 = vector.load %arg3[%c0_5, %c0_6] : memref<8x512xf32, #tpu.memory_space<vmem>>, vector<8x512xf32>
    tpu.vector_store %arg3[%c0_5, %c0_6], %5 {strides = array<i32>} : memref<8x512xf32, #tpu.memory_space<vmem>>, vector<8x512xf32>,
    return
  }
}

module attributes {stable_mosaic.version = 11 : i64} {
  func.func @_heads_kernel(%arg0: i32, %arg1: memref<8x512xf32, #tpu.memory_space<vmem>>, %arg2: memref<2x512x512xbf16, #tpu.memory_space<vmem>>, %arg3: memref<2x8x512xf32, #tpu.memory_space<vmem>>, %arg4: memref<2x512x512xbf16, #tpu.memory_space<vmem>>, %arg5: memref<512x128xbf16, #tpu.memory_space<vmem>>, %arg6: memref<1x128xf32, #tpu.memory_space<vmem>>, %arg7: memref<2x8x512xf32, #tpu.memory_space<vmem>>, %arg8: memref<2x8x128xf32, #tpu.memory_space<vmem>>) attributes {dimension_semantics = [#tpu.dimension_semantics<parallel>], iteration_bounds = array<i64: 2>, scalar_prefetch = 0 : i64, scratch_operands = 0 : i64, tpu.core_type = #tpu.core_type<tc>, window_params = [{pipeline_mode = #tpu.pipeline_mode<synchronous>, transform_indices = @transform_0, window_bounds = array<i64: 8, 512>}, {transform_indices = @transform_1, window_bounds = array<i64: 2, 512, 512>}, {transform_indices = @transform_2, window_bounds = array<i64: 2, 8, 512>}, {transform_indices = @transform_3, window_bounds = array<i64: 2, 512, 512>}, {pipeline_mode = #tpu.pipeline_mode<synchronous>, transform_indices = @transform_4, window_bounds = array<i64: 512, 128>}, {pipeline_mode = #tpu.pipeline_mode<synchronous>, transform_indices = @transform_5, window_bounds = array<i64: 1, 128>}, {transform_indices = @transform_6, window_bounds = array<i64: 2, 8, 512>}, {transform_indices = @transform_7, window_bounds = array<i64: 2, 8, 128>}]} {
    %c0 = arith.constant 0 : index
    %c0_0 = arith.constant 0 : index
    %0 = vector.load %arg1[%c0, %c0_0] : memref<8x512xf32, #tpu.memory_space<vmem>>, vector<8x512xf32>
    %1 = arith.truncf %0 : vector<8x512xf32> to vector<8x512xbf16>
    %c0_1 = arith.constant 0 : index
    %c0_2 = arith.constant 0 : index
    %2 = vector.load %arg5[%c0_1, %c0_2] : memref<512x128xbf16, #tpu.memory_space<vmem>>, vector<512x128xbf16>
    %c0_3 = arith.constant 0 : index
    %c0_4 = arith.constant 0 : index
    %3 = vector.load %arg6[%c0_3, %c0_4] : memref<1x128xf32, #tpu.memory_space<vmem>>, vector<1x128xf32>
    %c0_5 = arith.constant 0 : index
    %c0_6 = arith.constant 0 : index
    %c0_7 = arith.constant 0 : index
    %4 = vector.load %arg3[%c0_5, %c0_6, %c0_7] : memref<2x8x512xf32, #tpu.memory_space<vmem>>, vector<1x8x512xf32>
    %5 = vector.shape_cast %4 : vector<1x8x512xf32> to vector<8x512xf32>
    %6 = vector.extract_strided_slice %5 {offsets = [0, 0], sizes = [1, 512], strides = [1, 1]} : vector<8x512xf32> to vector<1x512xf32>
    %7 = vector.extract_strided_slice %5 {offsets = [1, 0], sizes = [1, 512], strides = [1, 1]} : vector<8x512xf32> to vector<1x512xf32>
    %8 = vector.extract_strided_slice %5 {offsets = [2, 0], sizes = [1, 512], strides = [1, 1]} : vector<8x512xf32> to vector<1x512xf32>
    %9 = vector.extract_strided_slice %5 {offsets = [3, 0], sizes = [1, 512], strides = [1, 1]} : vector<8x512xf32> to vector<1x512xf32>
    %c0_8 = arith.constant 0 : index
    %c0_9 = arith.constant 0 : index
    %c0_10 = arith.constant 0 : index
    %10 = vector.load %arg2[%c0_8, %c0_9, %c0_10] : memref<2x512x512xbf16, #tpu.memory_space<vmem>>, vector<1x512x512xbf16>
    %11 = vector.shape_cast %10 : vector<1x512x512xbf16> to vector<512x512xbf16>
    %cst = arith.constant dense<0.000000e+00> : vector<8x512xf32>
    %12 = tpu.matmul %1, %11, %cst {dimension_numbers = #tpu.dot_dimension_numbers<[1], [0], [0], [1], [0, 0, 1, 1], [], []>} : vector<8x512xbf16>, vector<512x512xbf16>, vector<8x512xf32> -> vector<8x512xf32>
    %13 = vector.broadcast %6 : vector<1x512xf32> to vector<8x512xf32>
    %14 = arith.addf %12, %13 : vector<8x512xf32>
    %cst_11 = arith.constant 0.000000e+00 : f32
    %15 = vector.broadcast %cst_11 : f32 to vector<8x512xf32>
    %16 = arith.maximumf %14, %15 : vector<8x512xf32>
    %cst_12 = arith.constant dense<0.000000e+00> : vector<512xf32>
    %17 = vector.multi_reduction <add>, %16, %cst_12 [0] : vector<8x512xf32> to vector<512xf32>
    %18 = vector.shape_cast %17 : vector<512xf32> to vector<1x512xf32>
    %cst_13 = arith.constant 8.000000e+00 : f32
    %19 = vector.broadcast %cst_13 : f32 to vector<1x512xf32>
    %20 = arith.divf %18, %19 : vector<1x512xf32>
    %21 = vector.broadcast %20 : vector<1x512xf32> to vector<8x512xf32>
    %22 = arith.subf %16, %21 : vector<8x512xf32>
    %23 = vector.broadcast %20 : vector<1x512xf32> to vector<8x512xf32>
    %24 = arith.subf %16, %23 : vector<8x512xf32>
    %25 = arith.mulf %22, %24 : vector<8x512xf32>
    %cst_14 = arith.constant dense<0.000000e+00> : vector<512xf32>
    %26 = vector.multi_reduction <add>, %25, %cst_14 [0] : vector<8x512xf32> to vector<512xf32>
    %27 = vector.shape_cast %26 : vector<512xf32> to vector<1x512xf32>
    %cst_15 = arith.constant 8.000000e+00 : f32
    %28 = vector.broadcast %cst_15 : f32 to vector<1x512xf32>
    %29 = arith.divf %27, %28 : vector<1x512xf32>
    %30 = vector.broadcast %20 : vector<1x512xf32> to vector<8x512xf32>
    %31 = arith.subf %16, %30 : vector<8x512xf32>
    %cst_16 = arith.constant 9.99999974E-6 : f32
    %32 = vector.broadcast %cst_16 : f32 to vector<1x512xf32>
    %33 = arith.addf %29, %32 : vector<1x512xf32>
    %34 = math.rsqrt %33 : vector<1x512xf32>
    %35 = vector.broadcast %34 : vector<1x512xf32> to vector<8x512xf32>
    %36 = arith.mulf %31, %35 : vector<8x512xf32>
    %37 = vector.broadcast %7 : vector<1x512xf32> to vector<8x512xf32>
    %38 = arith.mulf %36, %37 : vector<8x512xf32>
    %39 = vector.broadcast %8 : vector<1x512xf32> to vector<8x512xf32>
    %40 = arith.addf %38, %39 : vector<8x512xf32>
    %41 = arith.truncf %40 : vector<8x512xf32> to vector<8x512xbf16>
    %c0_17 = arith.constant 0 : index
    %c0_18 = arith.constant 0 : index
    %c0_19 = arith.constant 0 : index
    %42 = vector.load %arg4[%c0_17, %c0_18, %c0_19] : memref<2x512x512xbf16, #tpu.memory_space<vmem>>, vector<1x512x512xbf16>
    %43 = vector.shape_cast %42 : vector<1x512x512xbf16> to vector<512x512xbf16>
    %cst_20 = arith.constant dense<0.000000e+00> : vector<8x512xf32>
    %44 = tpu.matmul %41, %43, %cst_20 {dimension_numbers = #tpu.dot_dimension_numbers<[1], [0], [0], [1], [0, 0, 1, 1], [], []>} : vector<8x512xbf16>, vector<512x512xbf16>, vector<8x512xf32> -> vector<8x512xf32>
    %45 = vector.broadcast %9 : vector<1x512xf32> to vector<8x512xf32>
    %46 = arith.addf %44, %45 : vector<8x512xf32>
    %c0_21 = arith.constant 0 : index
    %c0_22 = arith.constant 0 : index
    %c0_23 = arith.constant 0 : index
    %47 = vector.load %arg7[%c0_21, %c0_22, %c0_23] : memref<2x8x512xf32, #tpu.memory_space<vmem>>, vector<1x8x512xf32>
    %48 = vector.shape_cast %47 : vector<1x8x512xf32> to vector<8x512xf32>
    %49 = vector.shape_cast %46 : vector<8x512xf32> to vector<1x8x512xf32>
    tpu.vector_store %arg7[%c0_21, %c0_22, %c0_23], %49 {strides = array<i32>} : memref<2x8x512xf32, #tpu.memory_space<vmem>>, vector<1x8x512xf32>,
    %cst_24 = arith.constant 0.000000e+00 : f32
    %50 = vector.broadcast %cst_24 : f32 to vector<8x512xf32>
    %51 = arith.maximumf %46, %50 : vector<8x512xf32>
    %52 = arith.truncf %51 : vector<8x512xf32> to vector<8x512xbf16>
    %cst_25 = arith.constant dense<0.000000e+00> : vector<8x128xf32>
    %53 = tpu.matmul %52, %2, %cst_25 {dimension_numbers = #tpu.dot_dimension_numbers<[1], [0], [0], [1], [0, 0, 1, 1], [], []>} : vector<8x512xbf16>, vector<512x128xbf16>, vector<8x128xf32> -> vector<8x128xf32>
    %54 = vector.broadcast %3 : vector<1x128xf32> to vector<8x128xf32>
    %55 = arith.addf %53, %54 : vector<8x128xf32>
    %c0_26 = arith.constant 0 : index
    %c0_27 = arith.constant 0 : index
    %c0_28 = arith.constant 0 : index
    %56 = vector.load %arg8[%c0_26, %c0_27, %c0_28] : memref<2x8x128xf32, #tpu.memory_space<vmem>>, vector<1x8x128xf32>
    %57 = vector.shape_cast %56 : vector<1x8x128xf32> to vector<8x128xf32>
    %58 = vector.shape_cast %55 : vector<8x128xf32> to vector<1x8x128xf32>
    tpu.vector_store %arg8[%c0_26, %c0_27, %c0_28], %58 {strides = array<i32>} : memref<2x8x128xf32, #tpu.memory_space<vmem>>, vector<1x8x128xf32>,
    %c1 = arith.constant 1 : index
    %c0_29 = arith.constant 0 : index
    %c0_30 = arith.constant 0 : index
    %59 = vector.load %arg3[%c1, %c0_29, %c0_30] : memref<2x8x512xf32, #tpu.memory_space<vmem>>, vector<1x8x512xf32>
    %60 = vector.shape_cast %59 : vector<1x8x512xf32> to vector<8x512xf32>
    %61 = vector.extract_strided_slice %60 {offsets = [0, 0], sizes = [1, 512], strides = [1, 1]} : vector<8x512xf32> to vector<1x512xf32>
    %62 = vector.extract_strided_slice %60 {offsets = [1, 0], sizes = [1, 512], strides = [1, 1]} : vector<8x512xf32> to vector<1x512xf32>
    %63 = vector.extract_strided_slice %60 {offsets = [2, 0], sizes = [1, 512], strides = [1, 1]} : vector<8x512xf32> to vector<1x512xf32>
    %64 = vector.extract_strided_slice %60 {offsets = [3, 0], sizes = [1, 512], strides = [1, 1]} : vector<8x512xf32> to vector<1x512xf32>
    %c1_31 = arith.constant 1 : index
    %c0_32 = arith.constant 0 : index
    %c0_33 = arith.constant 0 : index
    %65 = vector.load %arg2[%c1_31, %c0_32, %c0_33] : memref<2x512x512xbf16, #tpu.memory_space<vmem>>, vector<1x512x512xbf16>
    %66 = vector.shape_cast %65 : vector<1x512x512xbf16> to vector<512x512xbf16>
    %cst_34 = arith.constant dense<0.000000e+00> : vector<8x512xf32>
    %67 = tpu.matmul %1, %66, %cst_34 {dimension_numbers = #tpu.dot_dimension_numbers<[1], [0], [0], [1], [0, 0, 1, 1], [], []>} : vector<8x512xbf16>, vector<512x512xbf16>, vector<8x512xf32> -> vector<8x512xf32>
    %68 = vector.broadcast %61 : vector<1x512xf32> to vector<8x512xf32>
    %69 = arith.addf %67, %68 : vector<8x512xf32>
    %cst_35 = arith.constant 0.000000e+00 : f32
    %70 = vector.broadcast %cst_35 : f32 to vector<8x512xf32>
    %71 = arith.maximumf %69, %70 : vector<8x512xf32>
    %cst_36 = arith.constant dense<0.000000e+00> : vector<512xf32>
    %72 = vector.multi_reduction <add>, %71, %cst_36 [0] : vector<8x512xf32> to vector<512xf32>
    %73 = vector.shape_cast %72 : vector<512xf32> to vector<1x512xf32>
    %cst_37 = arith.constant 8.000000e+00 : f32
    %74 = vector.broadcast %cst_37 : f32 to vector<1x512xf32>
    %75 = arith.divf %73, %74 : vector<1x512xf32>
    %76 = vector.broadcast %75 : vector<1x512xf32> to vector<8x512xf32>
    %77 = arith.subf %71, %76 : vector<8x512xf32>
    %78 = vector.broadcast %75 : vector<1x512xf32> to vector<8x512xf32>
    %79 = arith.subf %71, %78 : vector<8x512xf32>
    %80 = arith.mulf %77, %79 : vector<8x512xf32>
    %cst_38 = arith.constant dense<0.000000e+00> : vector<512xf32>
    %81 = vector.multi_reduction <add>, %80, %cst_38 [0] : vector<8x512xf32> to vector<512xf32>
    %82 = vector.shape_cast %81 : vector<512xf32> to vector<1x512xf32>
    %cst_39 = arith.constant 8.000000e+00 : f32
    %83 = vector.broadcast %cst_39 : f32 to vector<1x512xf32>
    %84 = arith.divf %82, %83 : vector<1x512xf32>
    %85 = vector.broadcast %75 : vector<1x512xf32> to vector<8x512xf32>
    %86 = arith.subf %71, %85 : vector<8x512xf32>
    %cst_40 = arith.constant 9.99999974E-6 : f32
    %87 = vector.broadcast %cst_40 : f32 to vector<1x512xf32>
    %88 = arith.addf %84, %87 : vector<1x512xf32>
    %89 = math.rsqrt %88 : vector<1x512xf32>
    %90 = vector.broadcast %89 : vector<1x512xf32> to vector<8x512xf32>
    %91 = arith.mulf %86, %90 : vector<8x512xf32>
    %92 = vector.broadcast %62 : vector<1x512xf32> to vector<8x512xf32>
    %93 = arith.mulf %91, %92 : vector<8x512xf32>
    %94 = vector.broadcast %63 : vector<1x512xf32> to vector<8x512xf32>
    %95 = arith.addf %93, %94 : vector<8x512xf32>
    %96 = arith.truncf %95 : vector<8x512xf32> to vector<8x512xbf16>
    %c1_41 = arith.constant 1 : index
    %c0_42 = arith.constant 0 : index
    %c0_43 = arith.constant 0 : index
    %97 = vector.load %arg4[%c1_41, %c0_42, %c0_43] : memref<2x512x512xbf16, #tpu.memory_space<vmem>>, vector<1x512x512xbf16>
    %98 = vector.shape_cast %97 : vector<1x512x512xbf16> to vector<512x512xbf16>
    %cst_44 = arith.constant dense<0.000000e+00> : vector<8x512xf32>
    %99 = tpu.matmul %96, %98, %cst_44 {dimension_numbers = #tpu.dot_dimension_numbers<[1], [0], [0], [1], [0, 0, 1, 1], [], []>} : vector<8x512xbf16>, vector<512x512xbf16>, vector<8x512xf32> -> vector<8x512xf32>
    %100 = vector.broadcast %64 : vector<1x512xf32> to vector<8x512xf32>
    %101 = arith.addf %99, %100 : vector<8x512xf32>
    %c1_45 = arith.constant 1 : index
    %c0_46 = arith.constant 0 : index
    %c0_47 = arith.constant 0 : index
    %102 = vector.load %arg7[%c1_45, %c0_46, %c0_47] : memref<2x8x512xf32, #tpu.memory_space<vmem>>, vector<1x8x512xf32>
    %103 = vector.shape_cast %102 : vector<1x8x512xf32> to vector<8x512xf32>
    %104 = vector.shape_cast %101 : vector<8x512xf32> to vector<1x8x512xf32>
    tpu.vector_store %arg7[%c1_45, %c0_46, %c0_47], %104 {strides = array<i32>} : memref<2x8x512xf32, #tpu.memory_space<vmem>>, vector<1x8x512xf32>,
    %cst_48 = arith.constant 0.000000e+00 : f32
    %105 = vector.broadcast %cst_48 : f32 to vector<8x512xf32>
    %106 = arith.maximumf %101, %105 : vector<8x512xf32>
    %107 = arith.truncf %106 : vector<8x512xf32> to vector<8x512xbf16>
    %cst_49 = arith.constant dense<0.000000e+00> : vector<8x128xf32>
    %108 = tpu.matmul %107, %2, %cst_49 {dimension_numbers = #tpu.dot_dimension_numbers<[1], [0], [0], [1], [0, 0, 1, 1], [], []>} : vector<8x512xbf16>, vector<512x128xbf16>, vector<8x128xf32> -> vector<8x128xf32>
    %109 = vector.broadcast %3 : vector<1x128xf32> to vector<8x128xf32>
    %110 = arith.addf %108, %109 : vector<8x128xf32>
    %c1_50 = arith.constant 1 : index
    %c0_51 = arith.constant 0 : index
    %c0_52 = arith.constant 0 : index
    %111 = vector.load %arg8[%c1_50, %c0_51, %c0_52] : memref<2x8x128xf32, #tpu.memory_space<vmem>>, vector<1x8x128xf32>
    %112 = vector.shape_cast %111 : vector<1x8x128xf32> to vector<8x128xf32>
    %113 = vector.shape_cast %110 : vector<8x128xf32> to vector<1x8x128xf32>
    tpu.vector_store %arg8[%c1_50, %c0_51, %c0_52], %113 {strides = array<i32>} : memref<2x8x128xf32, #tpu.memory_space<vmem>>, vector<1x8x128xf32>,
    return
  }
  func.func @transform_0(%arg0: i32) -> (i32, i32) {
    %c0_i32 = arith.constant 0 : i32
    %c0_i32_0 = arith.constant 0 : i32
    %c0_i32_1 = arith.constant 0 : i32
    return %c0_i32, %c0_i32_0 : i32, i32
  }
  func.func @transform_1(%arg0: i32) -> (i32, i32, i32) {
    %c0_i32 = arith.constant 0 : i32
    %c0_i32_0 = arith.constant 0 : i32
    %c0_i32_1 = arith.constant 0 : i32
    return %arg0, %c0_i32, %c0_i32_0 : i32, i32, i32
  }
  func.func @transform_2(%arg0: i32) -> (i32, i32, i32) {
    %c0_i32 = arith.constant 0 : i32
    %c0_i32_0 = arith.constant 0 : i32
    %c0_i32_1 = arith.constant 0 : i32
    return %arg0, %c0_i32, %c0_i32_0 : i32, i32, i32
  }
  func.func @transform_3(%arg0: i32) -> (i32, i32, i32) {
    %c0_i32 = arith.constant 0 : i32
    %c0_i32_0 = arith.constant 0 : i32
    %c0_i32_1 = arith.constant 0 : i32
    return %arg0, %c0_i32, %c0_i32_0 : i32, i32, i32
  }
  func.func @transform_4(%arg0: i32) -> (i32, i32) {
    %c0_i32 = arith.constant 0 : i32
    %c0_i32_0 = arith.constant 0 : i32
    %c0_i32_1 = arith.constant 0 : i32
    return %c0_i32, %c0_i32_0 : i32, i32
  }
  func.func @transform_5(%arg0: i32) -> (i32, i32) {
    %c0_i32 = arith.constant 0 : i32
    %c0_i32_0 = arith.constant 0 : i32
    %c0_i32_1 = arith.constant 0 : i32
    return %c0_i32, %c0_i32_0 : i32, i32
  }
  func.func @transform_6(%arg0: i32) -> (i32, i32, i32) {
    %c0_i32 = arith.constant 0 : i32
    %c0_i32_0 = arith.constant 0 : i32
    %c0_i32_1 = arith.constant 0 : i32
    return %arg0, %c0_i32, %c0_i32_0 : i32, i32, i32
  }
  func.func @transform_7(%arg0: i32) -> (i32, i32, i32) {
    %c0_i32 = arith.constant 0 : i32
    %c0_i32_0 = arith.constant 0 : i32
    %c0_i32_1 = arith.constant 0 : i32
    return %arg0, %c0_i32, %c0_i32_0 : i32, i32, i32
  }
}

</mosaic_0001>

<bundles_post_ra>
// kernel: fan_encoder_forward.2
= control target key start
LH: loop header
LB: loop body
LE: loop exit
PB: predicated region body
PF: predicated region fallthrough
CT: control target
= control target key end

     0   :  { %8 = vsyncpa [#allocation3], 0  ;;  %s2115_s0 = inlined_call_operand.vmem [shape: bf16[8,768], index: 0, kind: input, shape index: {}]   ;;  %s2116_s1 = inlined_call_operand.hbm [shape: bf16[768,512], index: 1, kind: input, shape index: {}]   ;;  %s2117_s2 = inlined_call_operand.hbm [shape: f32[1,512], index: 2, kind: input, shape index: {}]   ;;  %s2118_s3 = inlined_call_operand.vmem [shape: f32[8,512], index: 3, kind: output, shape index: {}]  }
   0x1   :  { %9 = vsyncpa [#allocation5], 0  ;;  %s2034_s12 = smov [#allocation2]  }
   0x2   :  { %s17_s13 = sshll.u32 %s2034_s12, 4  ;;  %s18_s13 = int_to_ptr.vmem [resolvable:$true] %s17_s13 }
   0x3   :  { %s1998_s14 = scalar_lea.vmem %s18_s13, 24576  ;;  %p2003_p1 = scmp.lt.s32.totalorder %s18_s13, %s18_s13 }
   0x4   :  { %p1999_p0 = scmp.ne.s32.totalorder %s18_s13, %s1998_s14  ;;  %p2004_p2 = scmp.lt.s32.totalorder %s1998_s14, %s1998_s14 }
   0x6   :  { %p2005_p3 = por %p2004_p2, %p2003_p1 }
   0x8   :  { %p2006_p4 = pnand %p2005_p3, %p1999_p0 }
   0xa   :  { %2009 = shalt.err (!%p2006_p4)
}
   0xb   :  { %s2035_s15 = smov 256   ;;  %s2036_s16 = smov 16  }
   0xc   :  { %23 = dma.hbm_to_vmem [thread:$0]  %s2116_s1, 24576, %s18_s13, [#allocation3], %s2035_s15, %s2035_s15, %s2036_s16  }
   0xd   :  { %s2037_s19 = smov [#allocation4]  }
   0xe   :  { %s30_s20 = sshll.u32 %s2037_s19, 4  ;;  %s31_s20 = int_to_ptr.vmem [resolvable:$true] %s30_s20 }
   0xf   :  { %s2018_s21 = scalar_lea.vmem %s31_s20, 64  ;;  %p2023_p6 = scmp.lt.s32.totalorder %s31_s20, %s31_s20 }
  0x10   :  { %p2019_p5 = scmp.ne.s32.totalorder %s31_s20, %s2018_s21  ;;  %p2024_p7 = scmp.lt.s32.totalorder %s2018_s21, %s2018_s21 }
  0x12   :  { %p2025_p8 = por %p2024_p7, %p2023_p6 }
  0x14   :  { %p2026_p9 = pnand %p2025_p8, %p2019_p5 }
  0x16   :  { %2029 = shalt.err (!%p2026_p9)
}
  0x17   :  { %33 = dma.hbm_to_vmem [thread:$0]  %s2117_s2, 64, %s31_s20, [#allocation5]  }
  0x18   :  { %2030 = dma.done.wait [#allocation3], 24576  }
  0x19   :  { %2031 = vsyncadd [#allocation3], 4294942720 }
  0x1a   :  { %2032 = dma.done.wait [#allocation5], 64  }
  0x1b   :  { %2033 = vsyncadd [#allocation5], 4294967232  ;;  %v1696_v0 = vld [vmem:[#allocation2 + $0xe4] ss:$16 sps:$4 sm:$0xff]   ;;  %v1700_v2 = vld [vmem:[#allocation2 + $0xe0] ss:$16 sps:$4 sm:$0xff]  }
  0x1c   :  { %v1698_v1 = vld [vmem:[#allocation2 + $0x2e4] ss:$16 sps:$4 sm:$0xff]   ;;  %1238 = vmatprep.subr.bf16.mxu0 %v1696_v0  ;;  %v1701_v3 = vld [vmem:[#allocation2 + $0x2e0] ss:$16 sps:$4 sm:$0xff]   ;;  %v41_v48 = vld [vmem:[%s2115_s0 + $0x8] sm:$0xff] }
  0x1d   :  { %1279 = vmatprep.subr.bf16.mxu1 %v1698_v1  ;;  %v1702_v4 = vld [vmem:[#allocation2 + $0xc4] ss:$16 sps:$4 sm:$0xff]   ;;  %1239 = vmatpush1.bf16.msra.mxu0 %v1700_v2  ;;  %v1706_v6 = vld [vmem:[#allocation2 + $0xc0] ss:$16 sps:$4 sm:$0xff]   ;;  %v2072_v51 = vcombine.high %v41_v48, %v41_v48 }
  0x1e   :  { %1280 = vmatpush1.bf16.msra.mxu1 %v1701_v3  ;;  %v1704_v5 = vld [vmem:[#allocation2 + $0x2c4] ss:$16 sps:$4 sm:$0xff]   ;;  %1240 = vmatprep.subr.bf16.mxu0 %v1702_v4  ;;  %v1707_v7 = vld [vmem:[#allocation2 + $0x2c0] ss:$16 sps:$4 sm:$0xff]  }
  0x1f   :  { %1281 = vmatprep.subr.bf16.mxu1 %v1704_v5  ;;  %v1708_v8 = vld [vmem:[#allocation2 + $0xa4] ss:$16 sps:$4 sm:$0xff]   ;;  %v1712_v10 = vld [vmem:[#allocation2 + $0xa0] ss:$16 sps:$4 sm:$0xff]   ;;  %1311 = vmatprep.mubr.bf16.mxu1 %v2072_v51  ;;  %v1801_v5 = vld [vmem:[#allocation2 + $0xec] ss:$16 sps:$4 sm:$0xff]  }
  0x20   :  { %v1710_v9 = vld [vmem:[#allocation2 + $0x2a4] ss:$16 sps:$4 sm:$0xff]   ;;  %v1713_v11 = vld [vmem:[#allocation2 + $0x2a0] ss:$16 sps:$4 sm:$0xff]  }
  0x21   :  { %1241 = vmatpush1.bf16.msra.mxu0 %v1706_v6  ;;  %v1714_v12 = vld [vmem:[#allocation2 + $0x84] ss:$16 sps:$4 sm:$0xff]   ;;  %v1718_v14 = vld [vmem:[#allocation2 + $0x80] ss:$16 sps:$4 sm:$0xff]  }
  0x22   :  { %1282 = vmatpush1.bf16.msra.mxu1 %v1707_v7  ;;  %1242 = vmatprep.subr.bf16.mxu0 %v1708_v8  ;;  %v1716_v13 = vld [vmem:[#allocation2 + $0x284] ss:$16 sps:$4 sm:$0xff]   ;;  %v1719_v15 = vld [vmem:[#allocation2 + $0x280] ss:$16 sps:$4 sm:$0xff]   ;;  %v2078_v7 = vcombine.low %v41_v48, %v41_v48 }
  0x23   :  { %1283 = vmatprep.subr.bf16.mxu1 %v1710_v9  ;;  %v1720_v16 = vld [vmem:[#allocation2 + $0x64] ss:$16 sps:$4 sm:$0xff]   ;;  %v1724_v18 = vld [vmem:[#allocation2 + $0x60] ss:$16 sps:$4 sm:$0xff]   ;;  %v1799_v9 = vld [vmem:[#allocation2 + $0xe8] ss:$16 sps:$4 sm:$0xff]  }
  0x24   :  { %v1722_v17 = vld [vmem:[#allocation2 + $0x264] ss:$16 sps:$4 sm:$0xff]   ;;  %v1725_v19 = vld [vmem:[#allocation2 + $0x260] ss:$16 sps:$4 sm:$0xff]  }
  0x25   :  { %1243 = vmatpush1.bf16.msra.mxu0 %v1712_v10  ;;  %v1726_v20 = vld [vmem:[#allocation2 + $0x44] ss:$16 sps:$4 sm:$0xff]   ;;  %v1730_v22 = vld [vmem:[#allocation2 + $0x40] ss:$16 sps:$4 sm:$0xff]  }
  0x26   :  { %1284 = vmatpush1.bf16.msra.mxu1 %v1713_v11  ;;  %1244 = vmatprep.subr.bf16.mxu0 %v1714_v12  ;;  %v1728_v21 = vld [vmem:[#allocation2 + $0x244] ss:$16 sps:$4 sm:$0xff]   ;;  %v1731_v23 = vld [vmem:[#allocation2 + $0x240] ss:$16 sps:$4 sm:$0xff]   ;;  %v1807_v11 = vld [vmem:[#allocation2 + $0xcc] ss:$16 sps:$4 sm:$0xff]  }
  0x27   :  { %1285 = vmatprep.subr.bf16.mxu1 %v1716_v13  ;;  %v1732_v24 = vld [vmem:[#allocation2 + $0x24] ss:$16 sps:$4 sm:$0xff]   ;;  %v1736_v26 = vld [vmem:[#allocation2 + $0x20] ss:$16 sps:$4 sm:$0xff]   ;;  %v1805_v13 = vld [vmem:[#allocation2 + $0xc8] ss:$16 sps:$4 sm:$0xff]  }
  0x28   :  { %v1734_v25 = vld [vmem:[#allocation2 + $0x224] ss:$16 sps:$4 sm:$0xff]   ;;  %v1737_v27 = vld [vmem:[#allocation2 + $0x220] ss:$16 sps:$4 sm:$0xff]  }
  0x29   :  { %1245 = vmatpush1.bf16.msra.mxu0 %v1718_v14  ;;  %v1738_v28 = vld [vmem:[#allocation2 + $0x4] ss:$16 sps:$4 sm:$0xff]   ;;  %v1742_v30 = vld [vmem:[#allocation2] ss:$16 sps:$4 sm:$0xff]  }
  0x2a   :  { %1286 = vmatpush1.bf16.msra.mxu1 %v1719_v15  ;;  %1246 = vmatprep.subr.bf16.mxu0 %v1720_v16  ;;  %v1740_v29 = vld [vmem:[#allocation2 + $0x204] ss:$16 sps:$4 sm:$0xff]   ;;  %v1743_v31 = vld [vmem:[#allocation2 + $0x200] ss:$16 sps:$4 sm:$0xff]   ;;  %v1813_v15 = vld [vmem:[#allocation2 + $0xac] ss:$16 sps:$4 sm:$0xff]  }
  0x2b   :  { %1287 = vmatprep.subr.bf16.mxu1 %v1722_v17  ;;  %v1744_v32 = vld [vmem:[#allocation2 + $0x1e4] ss:$16 sps:$4 sm:$0xff]   ;;  %v1748_v34 = vld [vmem:[#allocation2 + $0x1e0] ss:$16 sps:$4 sm:$0xff]   ;;  %v1811_v17 = vld [vmem:[#allocation2 + $0xa8] ss:$16 sps:$4 sm:$0xff]  }
  0x2c   :  { %v1746_v33 = vld [vmem:[#allocation2 + $0x3e4] ss:$16 sps:$4 sm:$0xff]   ;;  %v1749_v35 = vld [vmem:[#allocation2 + $0x3e0] ss:$16 sps:$4 sm:$0xff]  }
  0x2d   :  { %1247 = vmatpush1.bf16.msra.mxu0 %v1724_v18  ;;  %v1750_v36 = vld [vmem:[#allocation2 + $0x1c4] ss:$16 sps:$4 sm:$0xff]   ;;  %v1754_v38 = vld [vmem:[#allocation2 + $0x1c0] ss:$16 sps:$4 sm:$0xff]  }
  0x2e   :  { %1288 = vmatpush1.bf16.msra.mxu1 %v1725_v19  ;;  %1248 = vmatprep.subr.bf16.mxu0 %v1726_v20  ;;  %v1752_v37 = vld [vmem:[#allocation2 + $0x3c4] ss:$16 sps:$4 sm:$0xff]   ;;  %v1755_v39 = vld [vmem:[#allocation2 + $0x3c0] ss:$16 sps:$4 sm:$0xff]   ;;  %v1819_v19 = vld [vmem:[#allocation2 + $0x8c] ss:$16 sps:$4 sm:$0xff]  }
  0x2f   :  { %1289 = vmatprep.subr.bf16.mxu1 %v1728_v21  ;;  %v1756_v40 = vld [vmem:[#allocation2 + $0x1a4] ss:$16 sps:$4 sm:$0xff]   ;;  %v1760_v42 = vld [vmem:[#allocation2 + $0x1a0] ss:$16 sps:$4 sm:$0xff]   ;;  %v1817_v21 = vld [vmem:[#allocation2 + $0x88] ss:$16 sps:$4 sm:$0xff]  }
  0x30   :  { %v1758_v41 = vld [vmem:[#allocation2 + $0x3a4] ss:$16 sps:$4 sm:$0xff]   ;;  %v1761_v43 = vld [vmem:[#allocation2 + $0x3a0] ss:$16 sps:$4 sm:$0xff]  }
  0x31   :  { %1249 = vmatpush1.bf16.msra.mxu0 %v1730_v22  ;;  %v1762_v44 = vld [vmem:[#allocation2 + $0x184] ss:$16 sps:$4 sm:$0xff]   ;;  %v1766_v49 = vld [vmem:[#allocation2 + $0x180] ss:$16 sps:$4 sm:$0xff]  }
  0x32   :  { %1290 = vmatpush1.bf16.msra.mxu1 %v1731_v23  ;;  %1250 = vmatprep.subr.bf16.mxu0 %v1732_v24  ;;  %v1764_v45 = vld [vmem:[#allocation2 + $0x384] ss:$16 sps:$4 sm:$0xff]   ;;  %v1767_v50 = vld [vmem:[#allocation2 + $0x380] ss:$16 sps:$4 sm:$0xff]   ;;  %v1825_v23 = vld [vmem:[#allocation2 + $0x6c] ss:$16 sps:$4 sm:$0xff]  }
  0x33   :  { %1291 = vmatprep.subr.bf16.mxu1 %v1734_v25  ;;  %v40_v46 = vld [vmem:[%s2115_s0] sm:$0xff]  ;;  %v1823_v25 = vld [vmem:[#allocation2 + $0x68] ss:$16 sps:$4 sm:$0xff]  }
  0x34   :  { %v2067_v47 = vcombine.high %v40_v46, %v40_v46  ;;  %v1768_v52 = vld [vmem:[#allocation2 + $0x164] ss:$16 sps:$4 sm:$0xff]   ;;  %v1772_v54 = vld [vmem:[#allocation2 + $0x160] ss:$16 sps:$4 sm:$0xff]   ;;  %v2076_v6 = vcombine.low %v40_v46, %v40_v46 }
  0x35   :  { %1251 = vmatpush1.bf16.msra.mxu0 %v1736_v26  ;;  %v1770_v53 = vld [vmem:[#allocation2 + $0x364] ss:$16 sps:$4 sm:$0xff]   ;;  %v1773_v55 = vld [vmem:[#allocation2 + $0x360] ss:$16 sps:$4 sm:$0xff]  }
  0x36   :  { %1292 = vmatpush1.bf16.msra.mxu1 %v1737_v27  ;;  %1252 = vmatprep.subr.bf16.mxu0 %v1738_v28  ;;  %v1774_v56 = vld [vmem:[#allocation2 + $0x144] ss:$16 sps:$4 sm:$0xff]   ;;  %v1778_v58 = vld [vmem:[#allocation2 + $0x140] ss:$16 sps:$4 sm:$0xff]   ;;  %v1831_v27 = vld [vmem:[#allocation2 + $0x4c] ss:$16 sps:$4 sm:$0xff]  }
  0x37   :  { %1293 = vmatprep.subr.bf16.mxu1 %v1740_v29  ;;  %1270 = vmatprep.mubr.bf16.mxu0 %v2067_v47  ;;  %v1776_v57 = vld [vmem:[#allocation2 + $0x344] ss:$16 sps:$4 sm:$0xff]   ;;  %v1779_v59 = vld [vmem:[#allocation2 + $0x340] ss:$16 sps:$4 sm:$0xff]   ;;  %v1829_v29 = vld [vmem:[#allocation2 + $0x48] ss:$16 sps:$4 sm:$0xff]  }
  0x38   :  { %v1780_v60 = vld [vmem:[#allocation2 + $0x124] ss:$16 sps:$4 sm:$0xff]   ;;  %v1784_v62 = vld [vmem:[#allocation2 + $0x120] ss:$16 sps:$4 sm:$0xff]  }
  0x39   :  { %1253 = vmatpush1.bf16.msra.mxu0 %v1742_v30  ;;  %v1782_v61 = vld [vmem:[#allocation2 + $0x324] ss:$16 sps:$4 sm:$0xff]   ;;  %v1785_v63 = vld [vmem:[#allocation2 + $0x320] ss:$16 sps:$4 sm:$0xff]  }
  0x3a   :  { %1294 = vmatpush1.bf16.msra.mxu1 %v1743_v31  ;;  %1254 = vmatprep.subr.bf16.mxu0 %v1744_v32  ;;  %v1786_v0 = vld [vmem:[#allocation2 + $0x104] ss:$16 sps:$4 sm:$0xff]   ;;  %v1790_v2 = vld [vmem:[#allocation2 + $0x100] ss:$16 sps:$4 sm:$0xff]   ;;  %v1837_v31 = vld [vmem:[#allocation2 + $0x2c] ss:$16 sps:$4 sm:$0xff]  }
  0x3b   :  { %1295 = vmatprep.subr.bf16.mxu1 %v1746_v33  ;;  %v1788_v1 = vld [vmem:[#allocation2 + $0x304] ss:$16 sps:$4 sm:$0xff]   ;;  %v1791_v3 = vld [vmem:[#allocation2 + $0x300] ss:$16 sps:$4 sm:$0xff]  }
  0x3c   :  { %v1798_v4 = vld [vmem:[#allocation2 + $0x4e4] ss:$16 sps:$4 sm:$0xff]   ;;  %v1796_v8 = vld [vmem:[#allocation2 + $0x4e0] ss:$16 sps:$4 sm:$0xff]  }
  0x3d   :  { %1255 = vmatpush2.bf16.msra.mxu0 %v1748_v34  ;;  %v1804_v10 = vld [vmem:[#allocation2 + $0x4c4] ss:$16 sps:$4 sm:$0xff]   ;;  %v1802_v12 = vld [vmem:[#allocation2 + $0x4c0] ss:$16 sps:$4 sm:$0xff]  }
  0x3e   :  { %1296 = vmatpush2.bf16.msra.mxu1 %v1749_v35  ;;  %1256 = vmatprep.subr.bf16.mxu0 %v1750_v36  ;;  %v1810_v14 = vld [vmem:[#allocation2 + $0x4a4] ss:$16 sps:$4 sm:$0xff]   ;;  %v1808_v16 = vld [vmem:[#allocation2 + $0x4a0] ss:$16 sps:$4 sm:$0xff]   ;;  %v1835_v35 = vld [vmem:[#allocation2 + $0x28] ss:$16 sps:$4 sm:$0xff]  }
  0x3f   :  { %1297 = vmatprep.subr.bf16.mxu1 %v1752_v37  ;;  %v1816_v18 = vld [vmem:[#allocation2 + $0x484] ss:$16 sps:$4 sm:$0xff]   ;;  %v1814_v20 = vld [vmem:[#allocation2 + $0x480] ss:$16 sps:$4 sm:$0xff]   ;;  %v1843_v37 = vld [vmem:[#allocation2 + $0xc] ss:$16 sps:$4 sm:$0xff]  }
  0x40   :  { %v1822_v22 = vld [vmem:[#allocation2 + $0x464] ss:$16 sps:$4 sm:$0xff]   ;;  %v1820_v24 = vld [vmem:[#allocation2 + $0x460] ss:$16 sps:$4 sm:$0xff]  }
  0x41   :  { %1257 = vmatpush2.bf16.msra.mxu0 %v1754_v38  ;;  %v1828_v26 = vld [vmem:[#allocation2 + $0x444] ss:$16 sps:$4 sm:$0xff]   ;;  %v1826_v28 = vld [vmem:[#allocation2 + $0x440] ss:$16 sps:$4 sm:$0xff]  }
  0x42   :  { %1298 = vmatpush2.bf16.msra.mxu1 %v1755_v39  ;;  %1258 = vmatprep.subr.bf16.mxu0 %v1756_v40  ;;  %v1834_v30 = vld [vmem:[#allocation2 + $0x424] ss:$16 sps:$4 sm:$0xff]   ;;  %v1832_v33 = vld [vmem:[#allocation2 + $0x420] ss:$16 sps:$4 sm:$0xff]   ;;  %v1841_v39 = vld [vmem:[#allocation2 + $0x8] ss:$16 sps:$4 sm:$0xff]  }
  0x43   :  { %1299 = vmatprep.subr.bf16.mxu1 %v1758_v41  ;;  %v2086_v32 = vld [vmem:[%s2115_s0 + $0x10] sm:$0xff]  ;;  %v1849_v41 = vld [vmem:[#allocation2 + $0x1ec] ss:$16 sps:$4 sm:$0xff]  }
  0x44   :  { %v2090_v34 = vcombine.high %v2086_v32, %v2086_v32  ;;  %v1840_v36 = vld [vmem:[#allocation2 + $0x404] ss:$16 sps:$4 sm:$0xff]   ;;  %v1838_v38 = vld [vmem:[#allocation2 + $0x400] ss:$16 sps:$4 sm:$0xff]  }
  0x45   :  { %1259 = vmatpush2.bf16.msra.mxu0 %v1760_v42  ;;  %v1846_v40 = vld [vmem:[#allocation2 + $0x5e4] ss:$16 sps:$4 sm:$0xff]   ;;  %v1844_v42 = vld [vmem:[#allocation2 + $0x5e0] ss:$16 sps:$4 sm:$0xff]  }
  0x46   :  { %1300 = vmatpush2.bf16.msra.mxu1 %v1761_v43  ;;  %1260 = vmatprep.subr.bf16.mxu0 %v1762_v44  ;;  %v1847_v43 = vld [vmem:[#allocation2 + $0x1e8] ss:$16 sps:$4 sm:$0xff]   ;;  %v1852_v44 = vld [vmem:[#allocation2 + $0x5c4] ss:$16 sps:$4 sm:$0xff]   ;;  %v1850_v46 = vld [vmem:[#allocation2 + $0x5c0] ss:$16 sps:$4 sm:$0xff]  }
  0x47   :  { %1301 = vmatprep.subr.bf16.mxu1 %v1764_v45  ;;  %v1855_v45 = vld [vmem:[#allocation2 + $0x1cc] ss:$16 sps:$4 sm:$0xff]   ;;  %v1858_v48 = vld [vmem:[#allocation2 + $0x5a4] ss:$16 sps:$4 sm:$0xff]  }
  0x49   :  { %1261 = vmatpush2.bf16.msra.mxu0 %v1766_v49  ;;  %v1861_v49 = vld [vmem:[#allocation2 + $0x1ac] ss:$16 sps:$4 sm:$0xff]  }
  0x4a   :  { %1302 = vmatpush2.bf16.msra.mxu1 %v1767_v50  ;;  %1262 = vmatprep.subr.bf16.mxu0 %v1768_v52  ;;  %v1856_v50 = vld [vmem:[#allocation2 + $0x5a0] ss:$16 sps:$4 sm:$0xff]   ;;  %v1859_v52 = vld [vmem:[#allocation2 + $0x1a8] ss:$16 sps:$4 sm:$0xff]  }
  0x4b   :  { %1303 = vmatprep.subr.bf16.mxu1 %v1770_v53  ;;  %v1864_v53 = vld [vmem:[#allocation2 + $0x584] ss:$16 sps:$4 sm:$0xff]  }
  0x4d   :  { %1263 = vmatpush2.bf16.msra.mxu0 %v1772_v54  ;;  %v1867_v54 = vld [vmem:[#allocation2 + $0x18c] ss:$16 sps:$4 sm:$0xff]  }
  0x4e   :  { %1304 = vmatpush2.bf16.msra.mxu1 %v1773_v55  ;;  %1264 = vmatprep.subr.bf16.mxu0 %v1774_v56  ;;  %v1862_v55 = vld [vmem:[#allocation2 + $0x580] ss:$16 sps:$4 sm:$0xff]   ;;  %v1865_v56 = vld [vmem:[#allocation2 + $0x188] ss:$16 sps:$4 sm:$0xff]  }
  0x4f   :  { %1305 = vmatprep.subr.bf16.mxu1 %v1776_v57  ;;  %v1870_v57 = vld [vmem:[#allocation2 + $0x564] ss:$16 sps:$4 sm:$0xff]  }
  0x51   :  { %1265 = vmatpush2.bf16.msra.mxu0 %v1778_v58  ;;  %v1873_v58 = vld [vmem:[#allocation2 + $0x16c] ss:$16 sps:$4 sm:$0xff]  }
  0x52   :  { %1306 = vmatpush2.bf16.msra.mxu1 %v1779_v59  ;;  %1266 = vmatprep.subr.bf16.mxu0 %v1780_v60  ;;  %v1868_v59 = vld [vmem:[#allocation2 + $0x560] ss:$16 sps:$4 sm:$0xff]   ;;  %v1871_v60 = vld [vmem:[#allocation2 + $0x168] ss:$16 sps:$4 sm:$0xff]  }
  0x53   :  { %1307 = vmatprep.subr.bf16.mxu1 %v1782_v61  ;;  %v1876_v61 = vld [vmem:[#allocation2 + $0x544] ss:$16 sps:$4 sm:$0xff]  }
  0x55   :  { %1267 = vmatpush2.bf16.msra.mxu0 %v1784_v62  ;;  %v1879_v62 = vld [vmem:[#allocation2 + $0x14c] ss:$16 sps:$4 sm:$0xff]  }
  0x56   :  { %1308 = vmatpush2.bf16.msra.mxu1 %v1785_v63  ;;  %1268 = vmatprep.subr.bf16.mxu0 %v1786_v0  ;;  %v1874_v63 = vld [vmem:[#allocation2 + $0x540] ss:$16 sps:$4 sm:$0xff]   ;;  %v1877_v0 = vld [vmem:[#allocation2 + $0x148] ss:$16 sps:$4 sm:$0xff]  }
  0x57   :  { %1309 = vmatprep.subr.bf16.mxu1 %v1788_v1  ;;  %v1882_v1 = vld [vmem:[#allocation2 + $0x524] ss:$16 sps:$4 sm:$0xff]  }
  0x59   :  { %1269 = vmatpush2.bf16.msra.mxu0 %v1790_v2  ;;  %v1885_v2 = vld [vmem:[#allocation2 + $0x12c] ss:$16 sps:$4 sm:$0xff]  }
  0x5a   :  { %1310 = vmatpush2.bf16.msra.mxu1 %v1791_v3  ;;  %1320 = vmatprep.subr.bf16.mxu0 %v1798_v4  ;;  %v1880_v3 = vld [vmem:[#allocation2 + $0x520] ss:$16 sps:$4 sm:$0xff]   ;;  %v1883_v4 = vld [vmem:[#allocation2 + $0x128] ss:$16 sps:$4 sm:$0xff]  }
  0x5b   :  { %1361 = vmatprep.subr.bf16.mxu1 %v1801_v5  ;;  %v1888_v5 = vld [vmem:[#allocation2 + $0x504] ss:$16 sps:$4 sm:$0xff]  }
  0x5c   :  { %1271 = vmatmul.mubr.bf16.vlgmr.msra.gmra.mxu0 %v2076_v6 }
  0x5d   :  { %1312 = vmatmul.mubr.bf16.vlgmr.msra.gmra.mxu1 %v2078_v7  ;;  %1321 = vmatpush1.bf16.msra.mxu0 %v1796_v8  ;;  %v1891_v8 = vld [vmem:[#allocation2 + $0x10c] ss:$16 sps:$4 sm:$0xff]  }
  0x5e   :  { %1362 = vmatpush1.bf16.msra.mxu1 %v1799_v9  ;;  %1322 = vmatprep.subr.bf16.mxu0 %v1804_v10  ;;  %v1886_v9 = vld [vmem:[#allocation2 + $0x500] ss:$16 sps:$4 sm:$0xff]   ;;  %v1889_v10 = vld [vmem:[#allocation2 + $0x108] ss:$16 sps:$4 sm:$0xff]  }
  0x5f   :  { %1363 = vmatprep.subr.bf16.mxu1 %v1807_v11  ;;  %1393 = vmatprep.mubr.bf16.mxu1 %v2067_v47  ;;  %v1853_v47 = vld [vmem:[#allocation2 + $0x1c8] ss:$16 sps:$4 sm:$0xff]   ;;  %v1896_v11 = vld [vmem:[#allocation2 + $0x2ec] ss:$16 sps:$4 sm:$0xff]  }
  0x60   :  { %1352 = vmatprep.mubr.bf16.mxu0 %v2090_v34 }
  0x61   :  { %1323 = vmatpush1.bf16.msra.mxu0 %v1802_v12  ;;  %v1899_v12 = vld [vmem:[#allocation2 + $0x4ec] ss:$16 sps:$4 sm:$0xff]  }
  0x62   :  { %1364 = vmatpush1.bf16.msra.mxu1 %v1805_v13  ;;  %1324 = vmatprep.subr.bf16.mxu0 %v1810_v14  ;;  %v2095_v13 = vcombine.low %v2086_v32, %v2086_v32  ;;  %v1894_v14 = vld [vmem:[#allocation2 + $0x2e8] ss:$16 sps:$4 sm:$0xff]  }
  0x63   :  { %1365 = vmatprep.subr.bf16.mxu1 %v1813_v15  ;;  %v1897_v15 = vld [vmem:[#allocation2 + $0x4e8] ss:$16 sps:$4 sm:$0xff]  }
  0x64   :  { %v1924_v32 = vld [vmem:[#allocation2 + $0x248] ss:$16 sps:$4 sm:$0xff]  }
  0x65   :  { %1325 = vmatpush1.bf16.msra.mxu0 %v1808_v16  ;;  %v1902_v16 = vld [vmem:[#allocation2 + $0x2cc] ss:$16 sps:$4 sm:$0xff]  }
  0x66   :  { %1366 = vmatpush1.bf16.msra.mxu1 %v1811_v17  ;;  %1326 = vmatprep.subr.bf16.mxu0 %v1816_v18  ;;  %v1905_v17 = vld [vmem:[#allocation2 + $0x4cc] ss:$16 sps:$4 sm:$0xff]   ;;  %v1900_v18 = vld [vmem:[#allocation2 + $0x2c8] ss:$16 sps:$4 sm:$0xff]  }
  0x67   :  { %1367 = vmatprep.subr.bf16.mxu1 %v1819_v19  ;;  %v1903_v19 = vld [vmem:[#allocation2 + $0x4c8] ss:$16 sps:$4 sm:$0xff]  }
  0x69   :  { %1327 = vmatpush1.bf16.msra.mxu0 %v1814_v20  ;;  %v1908_v20 = vld [vmem:[#allocation2 + $0x2ac] ss:$16 sps:$4 sm:$0xff]  }
  0x6a   :  { %1368 = vmatpush1.bf16.msra.mxu1 %v1817_v21  ;;  %1328 = vmatprep.subr.bf16.mxu0 %v1822_v22  ;;  %v1911_v21 = vld [vmem:[#allocation2 + $0x4ac] ss:$16 sps:$4 sm:$0xff]   ;;  %v1906_v22 = vld [vmem:[#allocation2 + $0x2a8] ss:$16 sps:$4 sm:$0xff]  }
  0x6b   :  { %1369 = vmatprep.subr.bf16.mxu1 %v1825_v23  ;;  %v1909_v23 = vld [vmem:[#allocation2 + $0x4a8] ss:$16 sps:$4 sm:$0xff]  }
  0x6d   :  { %1329 = vmatpush1.bf16.msra.mxu0 %v1820_v24  ;;  %v1914_v24 = vld [vmem:[#allocation2 + $0x28c] ss:$16 sps:$4 sm:$0xff]  }
  0x6e   :  { %1370 = vmatpush1.bf16.msra.mxu1 %v1823_v25  ;;  %1330 = vmatprep.subr.bf16.mxu0 %v1828_v26  ;;  %v1912_v25 = vld [vmem:[#allocation2 + $0x288] ss:$16 sps:$4 sm:$0xff]  }
  0x6f   :  { %1371 = vmatprep.subr.bf16.mxu1 %v1831_v27  ;;  %v1915_v26 = vld [vmem:[#allocation2 + $0x488] ss:$16 sps:$4 sm:$0xff]   ;;  %v1920_v27 = vld [vmem:[#allocation2 + $0x26c] ss:$16 sps:$4 sm:$0xff]  }
  0x71   :  { %1331 = vmatpush1.bf16.msra.mxu0 %v1826_v28  ;;  %v1923_v28 = vld [vmem:[#allocation2 + $0x46c] ss:$16 sps:$4 sm:$0xff]  }
  0x72   :  { %1372 = vmatpush1.bf16.msra.mxu1 %v1829_v29  ;;  %1332 = vmatprep.subr.bf16.mxu0 %v1834_v30  ;;  %v1921_v29 = vld [vmem:[#allocation2 + $0x468] ss:$16 sps:$4 sm:$0xff]   ;;  %v1926_v30 = vld [vmem:[#allocation2 + $0x24c] ss:$16 sps:$4 sm:$0xff]  }
  0x73   :  { %1373 = vmatprep.subr.bf16.mxu1 %v1837_v31  ;;  %v1929_v31 = vld [vmem:[#allocation2 + $0x44c] ss:$16 sps:$4 sm:$0xff]  }
  0x75   :  { %1333 = vmatpush1.bf16.msra.mxu0 %v1832_v33  ;;  %v1927_v33 = vld [vmem:[#allocation2 + $0x448] ss:$16 sps:$4 sm:$0xff]  }
  0x76   :  { %1374 = vmatpush1.bf16.msra.mxu1 %v1835_v35  ;;  %1334 = vmatprep.subr.bf16.mxu0 %v1840_v36  ;;  %v1935_v35 = vld [vmem:[#allocation2 + $0x42c] ss:$16 sps:$4 sm:$0xff]   ;;  %v1930_v36 = vld [vmem:[#allocation2 + $0x228] ss:$16 sps:$4 sm:$0xff]  }
  0x77   :  { %1375 = vmatprep.subr.bf16.mxu1 %v1843_v37  ;;  %v1933_v37 = vld [vmem:[#allocation2 + $0x428] ss:$16 sps:$4 sm:$0xff]  }
  0x79   :  { %1335 = vmatpush1.bf16.msra.mxu0 %v1838_v38  ;;  %v1938_v38 = vld [vmem:[#allocation2 + $0x20c] ss:$16 sps:$4 sm:$0xff]  }
  0x7a   :  { %1376 = vmatpush1.bf16.msra.mxu1 %v1841_v39  ;;  %1336 = vmatprep.subr.bf16.mxu0 %v1846_v40  ;;  %v1941_v39 = vld [vmem:[#allocation2 + $0x40c] ss:$16 sps:$4 sm:$0xff]   ;;  %v1936_v40 = vld [vmem:[#allocation2 + $0x208] ss:$16 sps:$4 sm:$0xff]  }
  0x7b   :  { %1377 = vmatprep.subr.bf16.mxu1 %v1849_v41  ;;  %v1939_v41 = vld [vmem:[#allocation2 + $0x408] ss:$16 sps:$4 sm:$0xff]  }
  0x7d   :  { %1337 = vmatpush2.bf16.msra.mxu0 %v1844_v42  ;;  %v1944_v42 = vld [vmem:[#allocation2 + $0x3ec] ss:$16 sps:$4 sm:$0xff]  }
  0x7e   :  { %1378 = vmatpush2.bf16.msra.mxu1 %v1847_v43  ;;  %1338 = vmatprep.subr.bf16.mxu0 %v1852_v44  ;;  %v1947_v43 = vld [vmem:[#allocation2 + $0x5ec] ss:$16 sps:$4 sm:$0xff]   ;;  %v1942_v44 = vld [vmem:[#allocation2 + $0x3e8] ss:$16 sps:$4 sm:$0xff]  }
  0x7f   :  { %1379 = vmatprep.subr.bf16.mxu1 %v1855_v45  ;;  %v1945_v45 = vld [vmem:[#allocation2 + $0x5e8] ss:$16 sps:$4 sm:$0xff]  }
  0x81   :  { %1339 = vmatpush2.bf16.msra.mxu0 %v1850_v46  ;;  %v1950_v46 = vld [vmem:[#allocation2 + $0x3cc] ss:$16 sps:$4 sm:$0xff]  }
  0x82   :  { %1380 = vmatpush2.bf16.msra.mxu1 %v1853_v47  ;;  %1340 = vmatprep.subr.bf16.mxu0 %v1858_v48  ;;  %v1953_v47 = vld [vmem:[#allocation2 + $0x5cc] ss:$16 sps:$4 sm:$0xff]   ;;  %v1948_v48 = vld [vmem:[#allocation2 + $0x3c8] ss:$16 sps:$4 sm:$0xff]  }
  0x83   :  { %1381 = vmatprep.subr.bf16.mxu1 %v1861_v49  ;;  %v1951_v49 = vld [vmem:[#allocation2 + $0x5c8] ss:$16 sps:$4 sm:$0xff]  }
  0x85   :  { %1341 = vmatpush2.bf16.msra.mxu0 %v1856_v50  ;;  %v1956_v50 = vld [vmem:[#allocation2 + $0x3ac] ss:$16 sps:$4 sm:$0xff]  }
  0x86   :  { %1382 = vmatpush2.bf16.msra.mxu1 %v1859_v52  ;;  %1342 = vmatprep.subr.bf16.mxu0 %v1864_v53  ;;  %v1959_v52 = vld [vmem:[#allocation2 + $0x5ac] ss:$16 sps:$4 sm:$0xff]   ;;  %v1954_v53 = vld [vmem:[#allocation2 + $0x3a8] ss:$16 sps:$4 sm:$0xff]  }
  0x87   :  { %1383 = vmatprep.subr.bf16.mxu1 %v1867_v54  ;;  %v1957_v54 = vld [vmem:[#allocation2 + $0x5a8] ss:$16 sps:$4 sm:$0xff]  }
  0x89   :  { %1343 = vmatpush2.bf16.msra.mxu0 %v1862_v55  ;;  %v1962_v55 = vld [vmem:[#allocation2 + $0x38c] ss:$16 sps:$4 sm:$0xff]  }
  0x8a   :  { %1384 = vmatpush2.bf16.msra.mxu1 %v1865_v56  ;;  %1344 = vmatprep.subr.bf16.mxu0 %v1870_v57  ;;  %v1965_v56 = vld [vmem:[#allocation2 + $0x58c] ss:$16 sps:$4 sm:$0xff]   ;;  %v1960_v57 = vld [vmem:[#allocation2 + $0x388] ss:$16 sps:$4 sm:$0xff]  }
  0x8b   :  { %1385 = vmatprep.subr.bf16.mxu1 %v1873_v58  ;;  %v1963_v58 = vld [vmem:[#allocation2 + $0x588] ss:$16 sps:$4 sm:$0xff]  }
  0x8d   :  { %1345 = vmatpush2.bf16.msra.mxu0 %v1868_v59  ;;  %v1968_v59 = vld [vmem:[#allocation2 + $0x36c] ss:$16 sps:$4 sm:$0xff]  }
  0x8e   :  { %1386 = vmatpush2.bf16.msra.mxu1 %v1871_v60  ;;  %1346 = vmatprep.subr.bf16.mxu0 %v1876_v61  ;;  %v1971_v60 = vld [vmem:[#allocation2 + $0x56c] ss:$16 sps:$4 sm:$0xff]   ;;  %v1966_v61 = vld [vmem:[#allocation2 + $0x368] ss:$16 sps:$4 sm:$0xff]  }
  0x8f   :  { %1387 = vmatprep.subr.bf16.mxu1 %v1879_v62  ;;  %v1969_v62 = vld [vmem:[#allocation2 + $0x568] ss:$16 sps:$4 sm:$0xff]  }
  0x91   :  { %1347 = vmatpush2.bf16.msra.mxu0 %v1874_v63  ;;  %v1974_v63 = vld [vmem:[#allocation2 + $0x34c] ss:$16 sps:$4 sm:$0xff]  }
  0x92   :  { %1388 = vmatpush2.bf16.msra.mxu1 %v1877_v0  ;;  %1348 = vmatprep.subr.bf16.mxu0 %v1882_v1  ;;  %v1977_v0 = vld [vmem:[#allocation2 + $0x54c] ss:$16 sps:$4 sm:$0xff]   ;;  %v1972_v1 = vld [vmem:[#allocation2 + $0x348] ss:$16 sps:$4 sm:$0xff]  }
  0x93   :  { %1389 = vmatprep.subr.bf16.mxu1 %v1885_v2  ;;  %v1975_v2 = vld [vmem:[#allocation2 + $0x548] ss:$16 sps:$4 sm:$0xff]  }
  0x95   :  { %1349 = vmatpush2.bf16.msra.mxu0 %v1880_v3  ;;  %v1980_v3 = vld [vmem:[#allocation2 + $0x32c] ss:$16 sps:$4 sm:$0xff]  }
  0x96   :  { %1390 = vmatpush2.bf16.msra.mxu1 %v1883_v4  ;;  %1350 = vmatprep.subr.bf16.mxu0 %v1888_v5  ;;  %v1983_v4 = vld [vmem:[#allocation2 + $0x52c] ss:$16 sps:$4 sm:$0xff]   ;;  %v1978_v5 = vld [vmem:[#allocation2 + $0x328] ss:$16 sps:$4 sm:$0xff]  }
  0x97   :  { %1391 = vmatprep.subr.bf16.mxu1 %v1891_v8  ;;  %v1981_v8 = vld [vmem:[#allocation2 + $0x528] ss:$16 sps:$4 sm:$0xff]  }
  0x99   :  { %1351 = vmatpush2.bf16.msra.mxu0 %v1886_v9  ;;  %v1986_v9 = vld [vmem:[#allocation2 + $0x30c] ss:$16 sps:$4 sm:$0xff]  }
  0x9a   :  { %1392 = vmatpush2.bf16.msra.mxu1 %v1889_v10  ;;  %1402 = vmatprep.subr.bf16.mxu0 %v1896_v11  ;;  %v1989_v10 = vld [vmem:[#allocation2 + $0x50c] ss:$16 sps:$4 sm:$0xff]   ;;  %v1984_v11 = vld [vmem:[#allocation2 + $0x308] ss:$16 sps:$4 sm:$0xff]  }
  0x9b   :  { %1443 = vmatprep.subr.bf16.mxu1 %v1899_v12  ;;  %v1987_v12 = vld [vmem:[#allocation2 + $0x508] ss:$16 sps:$4 sm:$0xff]  }
  0x9c   :  { %1353 = vmatmul.mubr.bf16.vlgmr.msra.gmra.mxu0 %v2095_v13 }
  0x9d   :  { %1394 = vmatmul.mubr.bf16.vlgmr.msra.gmra.mxu1 %v2076_v6  ;;  %1403 = vmatpush1.bf16.msra.mxu0 %v1894_v14  ;;  %v1917_v6 = vld [vmem:[#allocation2 + $0x48c] ss:$16 sps:$4 sm:$0xff]  }
  0x9e   :  { %1444 = vmatpush1.bf16.msra.mxu1 %v1897_v15  ;;  %1404 = vmatprep.subr.bf16.mxu0 %v1902_v16 }
  0x9f   :  { %1445 = vmatprep.subr.bf16.mxu1 %v1905_v17  ;;  %1434 = vmatprep.mubr.bf16.mxu0 %v2072_v51  ;;  %v1918_v51 = vld [vmem:[#allocation2 + $0x268] ss:$16 sps:$4 sm:$0xff]  }
  0xa0   :  { %1475 = vmatprep.mubr.bf16.mxu1 %v2090_v34  ;;  %v1932_v34 = vld [vmem:[#allocation2 + $0x22c] ss:$16 sps:$4 sm:$0xff]  }
  0xa1   :  { %1405 = vmatpush1.bf16.msra.mxu0 %v1900_v18 }
  0xa2   :  { %1446 = vmatpush1.bf16.msra.mxu1 %v1903_v19  ;;  %1406 = vmatprep.subr.bf16.mxu0 %v1908_v20 }
  0xa3   :  { %1447 = vmatprep.subr.bf16.mxu1 %v1911_v21 }
  0xa5   :  { %1407 = vmatpush1.bf16.msra.mxu0 %v1906_v22  ;;  %v237_v22 = vlaneseq }
  0xa6   :  { %1448 = vmatpush1.bf16.msra.mxu1 %v1909_v23  ;;  %1408 = vmatprep.subr.bf16.mxu0 %v1914_v24 }
  0xa7   :  { %1449 = vmatprep.subr.bf16.mxu1 %v1917_v6  ;;  %v238_v23 = vshrl.u32 %v237_v22, 7  ;;  %v235_v6 = vld [vmem:[#allocation4] sm:$0xf] }
  0xa9   :  { %1409 = vmatpush1.bf16.msra.mxu0 %v1912_v25  ;;  %v239_v24 = vsub.s32 0, %v238_v23  ;;  %v243_v25 = vsub.s32 1, %v238_v23 }
  0xaa   :  { %1450 = vmatpush1.bf16.msra.mxu1 %v1915_v26  ;;  %1410 = vmatprep.subr.bf16.mxu0 %v1920_v27 }
  0xab   :  { %1451 = vmatprep.subr.bf16.mxu1 %v1923_v28  ;;  %v240_v26 = vrot.slane %v235_v6, %v239_v24  ;;  %v244_v27 = vrot.slane %v235_v6, %v243_v25 }
  0xad   :  { %1411 = vmatpush1.bf16.msra.mxu0 %v1918_v51 }
  0xae   :  { %1452 = vmatpush1.bf16.msra.mxu1 %v1921_v29  ;;  %1412 = vmatprep.subr.bf16.mxu0 %v1926_v30 }
  0xaf   :  { %1453 = vmatprep.subr.bf16.mxu1 %v1929_v31 }
  0xb1   :  { %1413 = vmatpush1.bf16.msra.mxu0 %v1924_v32 }
  0xb2   :  { %1454 = vmatpush1.bf16.msra.mxu1 %v1927_v33  ;;  %1414 = vmatprep.subr.bf16.mxu0 %v1932_v34 }
  0xb3   :  { %1455 = vmatprep.subr.bf16.mxu1 %v1935_v35 }
  0xb5   :  { %1415 = vmatpush1.bf16.msra.mxu0 %v1930_v36 }
  0xb6   :  { %1456 = vmatpush1.bf16.msra.mxu1 %v1933_v37  ;;  %1416 = vmatprep.subr.bf16.mxu0 %v1938_v38 }
  0xb7   :  { %1457 = vmatprep.subr.bf16.mxu1 %v1941_v39  ;;  %v247_v39 = vsub.s32 2, %v238_v23 }
  0xb9   :  { %1417 = vmatpush1.bf16.msra.mxu0 %v1936_v40  ;;  %v251_v40 = vsub.s32 3, %v238_v23 }
  0xba   :  { %1458 = vmatpush1.bf16.msra.mxu1 %v1939_v41  ;;  %1418 = vmatprep.subr.bf16.mxu0 %v1944_v42  ;;  %v248_v41 = vrot.slane %v235_v6, %v247_v39 }
  0xbb   :  { %1459 = vmatprep.subr.bf16.mxu1 %v1947_v43  ;;  %v252_v42 = vrot.slane %v235_v6, %v251_v40 }
  0xbd   :  { %1419 = vmatpush2.bf16.msra.mxu0 %v1942_v44 }
  0xbe   :  { %1460 = vmatpush2.bf16.msra.mxu1 %v1945_v45  ;;  %1420 = vmatprep.subr.bf16.mxu0 %v1950_v46 }
  0xbf   :  { %1461 = vmatprep.subr.bf16.mxu1 %v1953_v47 }
  0xc1   :  { %1421 = vmatpush2.bf16.msra.mxu0 %v1948_v48 }
  0xc2   :  { %1462 = vmatpush2.bf16.msra.mxu1 %v1951_v49  ;;  %1422 = vmatprep.subr.bf16.mxu0 %v1956_v50 }
  0xc3   :  { %1463 = vmatprep.subr.bf16.mxu1 %v1959_v52 }
  0xc5   :  { %1423 = vmatpush2.bf16.msra.mxu0 %v1954_v53 }
  0xc6   :  { %1464 = vmatpush2.bf16.msra.mxu1 %v1957_v54  ;;  %1424 = vmatprep.subr.bf16.mxu0 %v1962_v55 }
  0xc7   :  { %1465 = vmatprep.subr.bf16.mxu1 %v1965_v56 }
  0xc9   :  { %1425 = vmatpush2.bf16.msra.mxu0 %v1960_v57 }
  0xca   :  { %1466 = vmatpush2.bf16.msra.mxu1 %v1963_v58  ;;  %1426 = vmatprep.subr.bf16.mxu0 %v1968_v59 }
  0xcb   :  { %1467 = vmatprep.subr.bf16.mxu1 %v1971_v60 }
  0xcd   :  { %1427 = vmatpush2.bf16.msra.mxu0 %v1966_v61 }
  0xce   :  { %1468 = vmatpush2.bf16.msra.mxu1 %v1969_v62  ;;  %1428 = vmatprep.subr.bf16.mxu0 %v1974_v63 }
  0xcf   :  { %1469 = vmatprep.subr.bf16.mxu1 %v1977_v0 }
  0xd1   :  { %1429 = vmatpush2.bf16.msra.mxu0 %v1972_v1 }
  0xd2   :  { %1470 = vmatpush2.bf16.msra.mxu1 %v1975_v2  ;;  %1430 = vmatprep.subr.bf16.mxu0 %v1980_v3 }
  0xd3   :  { %1471 = vmatprep.subr.bf16.mxu1 %v1983_v4 }
  0xd5   :  { %1431 = vmatpush2.bf16.msra.mxu0 %v1978_v5 }
  0xd6   :  { %1472 = vmatpush2.bf16.msra.mxu1 %v1981_v8  ;;  %1432 = vmatprep.subr.bf16.mxu0 %v1986_v9 }
  0xd7   :  { %1473 = vmatprep.subr.bf16.mxu1 %v1989_v10 }
  0xd9   :  { %1433 = vmatpush2.bf16.msra.mxu0 %v1984_v11 }
  0xda   :  { %1474 = vmatpush2.bf16.msra.mxu1 %v1987_v12 }
  0xdc   :  { %1435 = vmatmul.mubr.bf16.vlgmr.msra.gmra.mxu0 %v2078_v7 }
  0xdd   :  { %1476 = vmatmul.mubr.bf16.vlgmr.msra.gmra.mxu1 %v2095_v13 }
 0x11c   :  { %v1272_v14 = vpop.f32.mrf.mxu0 }
 0x11d   :  { %v1313_v15 = vpop.f32.mrf.mxu1  ;;  %v1273_v28 = vadd.f32 %v1272_v14, %v240_v26 }
 0x11e   :  { %v1274_v16 = vpop.f32.mrf.mxu0 }
 0x11f   :  { %v1315_v17 = vpop.f32.mrf.mxu1  ;;  %v1275_v51 = vadd.f32 %v1274_v16, %v244_v27  ;;  %v1314_v7 = vadd.f32 %v1313_v15, %v1273_v28 }
 0x120   :  { %v1276_v18 = vpop.f32.mrf.mxu0 }
 0x121   :  { %v1317_v19 = vpop.f32.mrf.mxu1  ;;  %v1316_v30 = vadd.f32 %v1315_v17, %v1275_v51 }
 0x122   :  { %v1277_v20 = vpop.f32.mrf.mxu0 }
 0x123   :  { %v1318_v21 = vpop.f32.mrf.mxu1 }
 0x15c   :  { %v1354_v29 = vpop.f32.mrf.mxu0 }
 0x15d   :  { %v1395_v13 = vpop.f32.mrf.mxu1  ;;  %v1355_v31 = vadd.f32 %v1354_v29, %v1314_v7 }
 0x15e   :  { %v1356_v32 = vpop.f32.mrf.mxu0  ;;  %v1396_v43 = vadd.f32 %v1395_v13, %v248_v41 }
 0x15f   :  { %v1397_v33 = vpop.f32.mrf.mxu1  ;;  %1484 = vst [vmem:[%s2118_s3] sm:$0xff] %v1355_v31  ;;  %v1357_v34 = vadd.f32 %v1356_v32, %v1316_v30 }
 0x160   :  { %v1358_v35 = vpop.f32.mrf.mxu0  ;;  %v1398_v46 = vadd.f32 %v1397_v33, %v252_v42 }
 0x161   :  { %v1399_v36 = vpop.f32.mrf.mxu1  ;;  %1485 = vst [vmem:[%s2118_s3 + $0x8] sm:$0xff] %v1357_v34 }
 0x162   :  { %v1359_v37 = vpop.f32.mrf.mxu0 }
 0x163   :  { %v1400_v38 = vpop.f32.mrf.mxu1 }
 0x19c   :  { %v1436_v44 = vpop.f32.mrf.mxu0 }
 0x19d   :  { %v1477_v45 = vpop.f32.mrf.mxu1  ;;  %v1437_v47 = vadd.f32 %v1436_v44, %v1396_v43 }
 0x19e   :  { %v1438_v48 = vpop.f32.mrf.mxu0 }
 0x19f   :  { %v1479_v49 = vpop.f32.mrf.mxu1  ;;  %v1478_v50 = vadd.f32 %v1477_v45, %v1437_v47  ;;  %v1439_v52 = vadd.f32 %v1438_v48, %v1398_v46 }
 0x1a0   :  { %v1440_v53 = vpop.f32.mrf.mxu0 }
 0x1a1   :  { %v1481_v54 = vpop.f32.mrf.mxu1  ;;  %1486 = vst [vmem:[%s2118_s3 + $0x10] sm:$0xff] %v1478_v50  ;;  %v1480_v55 = vadd.f32 %v1479_v49, %v1439_v52 }
 0x1a2   :  { %v1441_v56 = vpop.f32.mrf.mxu0 }
 0x1a3   :  { %v1482_v57 = vpop.f32.mrf.mxu1  ;;  %1487 = vst [vmem:[%s2118_s3 + $0x18] sm:$0xff] %v1480_v55 }
 0x1a4   :  { %1492 = vsyncpa [#allocation3], 1 }
 0x1a5   :  { %1493 = vsyncpa [#allocation5], 1 }

// kernel: fan_encoder_forward.3
= control target key start
LH: loop header
LB: loop body
LE: loop exit
PB: predicated region body
PF: predicated region fallthrough
CT: control target
= control target key end

     0   :  { %13 = vsyncpa [#allocation3], 0  ;;  %s8152_s0 = inlined_call_operand.vmem [shape: f32[8,512], index: 0, kind: input, shape index: {}]   ;;  %s8153_s1 = inlined_call_operand.hbm [shape: bf16[4,512,512], index: 1, kind: input, shape index: {}]   ;;  %s8154_s2 = inlined_call_operand.hbm [shape: f32[4,8,512], index: 2, kind: input, shape index: {}]   ;;  %s8155_s3 = inlined_call_operand.hbm [shape: bf16[4,512,512], index: 3, kind: input, shape index: {}]   ;;  %s8156_s4 = inlined_call_operand.hbm [shape: bf16[512,128], index: 4, kind: input, shape index: {}]   ;;  %s8157_s5 = inlined_call_operand.hbm [shape: f32[1,128], index: 5, kind: input, shape index: {}]   ;;  %s8158_s6 = inlined_call_operand.vmem [shape: f32[4,8,512], index: 6, kind: output, shape index: {0}]   ;;  %s8159_s7 = inlined_call_operand.vmem [shape: f32[4,8,128], index: 7, kind: output, shape index: {1}]  }
   0x1   :  { %15 = vsyncpa [#allocation3 + $0x1], 0 }
   0x2   :  { %16 = vsyncpa [#allocation5], 0 }
   0x3   :  { %18 = vsyncpa [#allocation5 + $0x1], 0 }
   0x4   :  { %19 = vsyncpa [#allocation8], 0  ;;  %s7194_s24 = smov 0   ;;  %s7196_s25 = smov 0  }
   0x5   :  { %s7198_s26 = smov 0   ;;  %s7200_s27 = smov 0  }
   0x6 LB: > { %8169 = sst [smem:[#allocation13_spill]] %s7137_s26  ;;  %s7213_s28 = sadd.s32 4294967295, %s7141_s27   ;;  %s7141_s27 = sphi %s7200_s27, %s8184_s27   ;;  %s7137_s26 = sphi %s7198_s26, %s8186_s26   ;;  %s7133_s25 = sphi %s7196_s25, %s8188_s25   ;;  %s7129_s24 = sphi %s7194_s24, %s8187_s24  }
   0x7   : > { %s7216_s29 = sadd.s32 1, %s7141_s27   ;;  %s53_s8 = sadd.s32 1, %s7137_s26 }
   0x8   : > { %8170 = sst [smem:[#allocation14_spill]] %s7216_s29  ;;  %s50_s30 = ssub.s32 %s7141_s27, %s7216_s29 }
   0x9   : > { %p51_p0 = scmp.eq.s32.totalorder %s50_s30, 0  ;;  %p60_p1 = scmp.ne.s32.totalorder %s7137_s26, %s7133_s25 }
   0xa   : > { %p61_p2 = scmp.eq.s32.totalorder %s7141_s27, 0  ;;  %p66_p3 = scmp.ne.s32.totalorder %s7133_s25, %s7129_s24 }
   0xb   : > { %s7226_s9 = scalar_select %p51_p0, %s7137_s26, %s53_s8  }
   0xc   : > { %p7228_p4 = por %p61_p2, %p60_p1  ;;  %p8160_p5 = scmp.eq.s32.totalorder %s7213_s28, 0 }
   0xd   : > { %8171 = sst [smem:[#allocation15_spill]] %s7226_s9  ;;  %p5105_p6 = scmp.ge.s32.totalorder %s7141_s27, 1 }
   0xe   : > { %p223_p7 = scmp.lt.s32.totalorder %s7141_s27, 3  ;;  %p7237_p8 = por %p8160_p5, %p66_p3 }
   0xf   : > { %s7143_s13 = smov [#allocation7]   ;;  %p6072_p12 = scmp.lt.s32.totalorder %s7141_s27, 2 }
  0x10   : > { %s8173_s11 = scalar_select %p7237_p8, 1, 0 }
  0x11   : > { %p7241_p9 = pnand %p5105_p6, %p223_p7  ;;  %s238_s14 = sshll.u32 %s7143_s13, 4  ;;  %s239_s14 = int_to_ptr.vmem [resolvable:$true] %s238_s14 }
  0x12   : > { %s7255_s16 = sand.u32 1, %s7137_s26   ;;  %s285_s17 = sand.u32 1, %s7141_s27  }
  0x13   : > { %s8174_s12 = scalar_select %p7241_p9, 1, 0 }
  0x14   : > { %p6053_p10 = pneg %p7241_p9  ;;  %p7260_p13 = pnand %p6072_p12, %p7228_p4 }
  0x15   : > { %s6974_s19 = scalar_lea.vmem %s239_s14, 4096  ;;  %p6982_p6 = scmp.lt.s32.totalorder %s239_s14, %s239_s14 }
  0x16   : > { %p7249_p11 = pnand %p6053_p10, %p8160_p5  ;;  %p6975_p1 = scmp.ne.s32.totalorder %s239_s14, %s6974_s19 }
  0x17   : > { %p6983_p7 = scmp.lt.s32.totalorder %s6974_s19, %s6974_s19 }
  0x18   : > { %s8175_s15 = scalar_select %p7249_p11, 1, 0 }
  0x19   : > { %p8164_p0 = pneg %p7249_p11  ;;  %p6984_p10 = por %p6983_p7, %p6982_p6 }
  0x1b   : > { %p6977_p2 = pnand %p6975_p1, %p8164_p0 }
  0x1d   : > { %p6978_p3 = pneg %p6977_p2 }
  0x1f   : > { %p6985_p5 = pnand %p6984_p10, %p6978_p3 }
  0x21   : > { %6988 = shalt.err (!%p6985_p5)
}
  0x22   : > { %s7144_s20 = smov 64   ;;  %s7145_s21 = smov 4  }
  0x23   : > { %6056 = dma.hbm_to_vmem [thread:$0]  (!%p7249_p11), %s8156_s4, 4096, %s239_s14, [#allocation8], %s7144_s20, %s7144_s20, %s7145_s21  }
  0x24   : > { %s5113_s24 = sshll.u32 %s7255_s16, 6  ;;  %s5947_s30 = sshll.u32 %s7141_s27, 10 }
  0x25   : > { %s7279_s13 = scalar_lea.hbm %s8154_s2, %s5947_s30  ;;  %s289_s19 = scalar_lea.vmem [#allocation4], %s5113_s24 }
  0x26   : > { %s297_s9 = sshll.u32 %s289_s19, 4  ;;  %s7283_s26 = scalar_lea.sflag [#allocation5], %s285_s17  ;;  %s7281_s9 = int_to_ptr.vmem [resolvable:$true] %s297_s9 }
  0x27   : > { %s6989_s29 = scalar_lea.hbm %s7279_s13, 1024  ;;  %p7289_p5 = pneg %p7260_p13 }
  0x28   : > { %p6990_p4 = scmp.ne.s32.totalorder %s7279_s13, %s6989_s29  ;;  %s6994_s22 = scalar_lea.hbm %s8154_s2, 2048 }
  0x29   : > { %p6995_p2 = scmp.lt.s32.totalorder %s7279_s13, %s8154_s2  ;;  %p6996_p3 = scmp.lt.s32.totalorder %s6994_s22, %s6989_s29 }
  0x2a   : > { %p6992_p12 = pnand %p7289_p5, %p6990_p4 }
  0x2b   : > { %p6997_p6 = por %p6996_p3, %p6995_p2 }
  0x2c   : > { %p6993_p1 = pneg %p6992_p12 }
  0x2e   : > { %p6998_p7 = pnand %p6997_p6, %p6993_p1 }
  0x30   : > { %7001 = shalt.err (!%p6998_p7)
}
  0x31   : > { %s7002_s17 = scalar_lea.vmem %s7281_s9, 1024  ;;  %s7146_s30 = smov [#allocation4]  }
  0x32   : > { %p7003_p10 = scmp.ne.s32.totalorder %s7281_s9, %s7002_s17  ;;  %s7007_s8 = sshll.u32 %s7146_s30, 4  ;;  %s7008_s8 = int_to_ptr.vmem [resolvable:$false] %s7007_s8 }
  0x33   : > { %s7009_s10 = scalar_lea.vmem %s7008_s8, 2048  ;;  %p7010_p0 = scmp.lt.s32.totalorder %s7281_s9, %s7008_s8 }
  0x34   : > { %p7005_p4 = pnand %p7003_p10, %p7289_p5  ;;  %p7011_p8 = scmp.lt.s32.totalorder %s7009_s10, %s7002_s17 }
  0x36   : > { %p7006_p12 = pneg %p7005_p4  ;;  %p7012_p9 = por %p7011_p8, %p7010_p0 }
  0x38   : > { %p7013_p11 = pnand %p7012_p9, %p7006_p12 }
  0x3a   : > { %7016 = shalt.err (!%p7013_p11)
}
  0x3b   : > { %s7147_s29 = smov 512   ;;  %s7148_s19 = smov 32  }
  0x3c   : > { %6066 = dma.hbm_to_vmem [thread:$0]  (!%p7260_p13), %s7279_s13, 1024, %s7281_s9, %s7283_s26, %s7147_s29, %s7147_s29, %s7148_s19  }
  0x3d   : > { %s7149_s20 = smov [#allocation9]   ;;  %s5109_s22 = sshll.u32 %s7255_s16, 11 }
  0x3e   : > { %s252_s21 = sshll.u32 %s7149_s20, 4  ;;  %p8178_p2 = scmp.ne.s32.totalorder %s8175_s15, 0  ;;  %s253_s21 = int_to_ptr.vmem [resolvable:$true] %s252_s21 }
  0x3f   : > { %s7028_s23 = scalar_lea.vmem %s253_s21, 16  ;;  %s7035_s24 = scalar_lea.vmem %s253_s21, 32 }
  0x40   : > { %p7029_p1 = scmp.ne.s32.totalorder %s253_s21, %s7028_s23  ;;  %p8179_p8 = pneg %p8178_p2 }
  0x41   : > { %p7036_p0 = scmp.lt.s32.totalorder %s253_s21, %s253_s21  ;;  %p7037_p3 = scmp.lt.s32.totalorder %s7035_s24, %s7028_s23 }
  0x42   : > { %p7031_p9 = pnand %p7029_p1, %p8179_p8 }
  0x43   : > { %p7038_p6 = por %p7037_p3, %p7036_p0 }
  0x44   : > { %p7032_p11 = pneg %p7031_p9 }
  0x46   : > { %p7039_p7 = pnand %p7038_p6, %p7032_p11 }
  0x48   : > { %7042 = shalt.err (!%p7039_p7)
}
  0x49   : > { %6059 = dma.hbm_to_vmem [thread:$0]  (!%p8178_p2), %s8157_s5, 16, %s253_s21, [#allocation8]  }
  0x4a   : > { %s5945_s13 = sshll.u32 %s7141_s27, 15  ;;  %s267_s30 = scalar_lea.vmem [#allocation2], %s5109_s22 }
  0x4b   : > { %s275_s8 = sshll.u32 %s267_s30, 4  ;;  %s7329_s19 = scalar_lea.hbm %s8153_s1, %s5945_s13  ;;  %s7331_s8 = int_to_ptr.vmem [resolvable:$true] %s275_s8 }
  0x4c   : > { %s264_s15 = scalar_lea.sflag [#allocation3], %s7255_s16  ;;  %s7043_s20 = scalar_lea.hbm %s7329_s19, 32768 }
  0x4d   : > { %p7044_p10 = scmp.ne.s32.totalorder %s7329_s19, %s7043_s20  ;;  %s7048_s24 = scalar_lea.hbm %s8153_s1, 65536 }
  0x4e   : > { %p7049_p1 = scmp.lt.s32.totalorder %s7329_s19, %s8153_s1  ;;  %p7050_p2 = scmp.lt.s32.totalorder %s7048_s24, %s7043_s20 }
  0x4f   : > { %p7046_p4 = pnand %p7044_p10, %p7289_p5 }
  0x50   : > { %p7051_p8 = por %p7050_p2, %p7049_p1 }
  0x51   : > { %p7047_p12 = pneg %p7046_p4 }
  0x53   : > { %p7052_p9 = pnand %p7051_p8, %p7047_p12 }
  0x55   : > { %7055 = shalt.err (!%p7052_p9)
}
  0x56   : > { %s7056_s30 = scalar_lea.vmem %s7331_s8, 32768  ;;  %s7150_s10 = smov [#allocation2]  }
  0x57   : > { %p7057_p11 = scmp.ne.s32.totalorder %s7331_s8, %s7056_s30  ;;  %s7061_s29 = sshll.u32 %s7150_s10, 4  ;;  %s7062_s29 = int_to_ptr.vmem [resolvable:$false] %s7061_s29 }
  0x58   : > { %s7063_s21 = scalar_lea.vmem %s7062_s29, 65536  ;;  %p7064_p6 = scmp.lt.s32.totalorder %s7331_s8, %s7062_s29 }
  0x59   : > { %p7059_p0 = pnand %p7057_p11, %p7289_p5  ;;  %p7065_p7 = scmp.lt.s32.totalorder %s7063_s21, %s7056_s30 }
  0x5b   : > { %p7060_p3 = pneg %p7059_p0  ;;  %p7066_p10 = por %p7065_p7, %p7064_p6 }
  0x5d   : > { %p7067_p4 = pnand %p7066_p10, %p7060_p3 }
  0x5f   : > { %7070 = shalt.err (!%p7067_p4)
}
  0x60   : > { %s7151_s20 = smov 256   ;;  %s7152_s23 = smov 16  }
  0x61   : > { %6063 = dma.hbm_to_vmem [thread:$0]  (!%p7260_p13), %s7329_s19, 32768, %s7331_s8, %s264_s15, %s7151_s20, %s7151_s20, %s7152_s23  }
  0x62   : > { %s7364_s9 = scalar_lea.hbm %s8155_s3, %s5945_s13  ;;  %s311_s30 = scalar_lea.vmem [#allocation6], %s5109_s22 }
  0x63   : > { %s319_s10 = sshll.u32 %s311_s30, 4  ;;  %s7071_s29 = scalar_lea.hbm %s7364_s9, 32768  ;;  %s320_s10 = int_to_ptr.vmem [resolvable:$true] %s319_s10 }
  0x64   : > { %p7072_p12 = scmp.ne.s32.totalorder %s7364_s9, %s7071_s29  ;;  %s7076_s27 = scalar_lea.hbm %s8155_s3, 65536 }
  0x65   : > { %p7077_p8 = scmp.lt.s32.totalorder %s7364_s9, %s8155_s3  ;;  %p7078_p9 = scmp.lt.s32.totalorder %s7076_s27, %s7071_s29 }
  0x66   : > { %p7074_p1 = pnand %p7072_p12, %p7289_p5 }
  0x67   : > { %p7079_p11 = por %p7078_p9, %p7077_p8 }
  0x68   : > { %p7075_p2 = pneg %p7074_p1 }
  0x6a   : > { %p7080_p0 = pnand %p7079_p11, %p7075_p2 }
  0x6c   : > { %7083 = shalt.err (!%p7080_p0)
}
  0x6d   : > { %s7084_s16 = scalar_lea.vmem %s320_s10, 32768  ;;  %s7153_s22 = smov [#allocation6]  }
  0x6e   : > { %p7085_p3 = scmp.ne.s32.totalorder %s320_s10, %s7084_s16  ;;  %s7089_s13 = sshll.u32 %s7153_s22, 4  ;;  %s7090_s13 = int_to_ptr.vmem [resolvable:$false] %s7089_s13 }
  0x6f   : > { %s7091_s24 = scalar_lea.vmem %s7090_s13, 65536  ;;  %p7092_p10 = scmp.lt.s32.totalorder %s320_s10, %s7090_s13 }
  0x70   : > { %p7087_p6 = pnand %p7085_p3, %p7289_p5  ;;  %p7093_p4 = scmp.lt.s32.totalorder %s7091_s24, %s7084_s16 }
  0x72   : > { %p7088_p7 = pneg %p7087_p6  ;;  %p7094_p12 = por %p7093_p4, %p7092_p10 }
  0x74   : > { %p7095_p1 = pnand %p7094_p12, %p7088_p7 }
  0x76   : > { %7098 = shalt.err (!%p7095_p1)
}
  0x77   : > { %6069 = dma.hbm_to_vmem [thread:$0]  (!%p7260_p13), %s7364_s9, 32768, %s320_s10, %s7283_s26, %s7151_s20, %s7151_s20, %s7152_s23  }
  0x78   : > { %p8180_p5 = scmp.ne.s32.totalorder %s8174_s12, 0 }
  0x79   : > { %s333_s14 = sand.u32 (!%p8180_p5), 1, %s7133_s25   ;;  %p8181_p2 = scmp.ne.s32.totalorder (!%p8180_p5), %s8173_s11, 0 }
  0x7a   : > { %331 = sbr.rel (%p8180_p5) target bundleno = 1637 (0x665), region = 44  ;;  %s5122_s17 = sshll.u32 (!%p8180_p5), %s333_s14, 11 }
  0x7b   : > { %s334_s30 = scalar_lea.sflag (!%p8180_p5), [#allocation3], %s333_s14  ;;  %s7391_s29 = scalar_lea.vmem (!%p8180_p5), [#allocation2], %s5122_s17 }
  0x7f   : > { %7116 = dma.done.wait (%p8181_p2), %s334_s30, 32768  }
  0x80   : > { %7118 = vsyncadd (%p8181_p2), %s334_s30, 4294934528  ;;  %s342_s18 = sand.u32 1, %s7213_s28   ;;  %s5123_s21 = sshll.u32 %s333_s14, 6 }
  0x81   : > { %s343_s26 = scalar_lea.sflag [#allocation5], %s342_s18  ;;  %s7398_s20 = scalar_lea.vmem [#allocation4], %s5123_s21 }
  0x82   : > { %7120 = dma.done.wait (%p8181_p2), %s343_s26, 33792  }
  0x83   : > { %7122 = vsyncadd (%p8181_p2), %s343_s26, 4294933504  ;;  %s7404_s12 = scalar_lea.vmem [#allocation6], %s5122_s17  ;;  %p8182_p13 = scmp.eq.s32.totalorder %s7213_s28, 0 }
  0x85   : > { %7124 = dma.done.wait (%p8182_p13), [#allocation8], 4112   ;;  %p8183_p8 = pmov %p8182_p13 }
  0x86   : > { %v6115_v0 = vld [vmem:[%s7391_s29 + $0xe4] ss:$16 sps:$4 sm:$0xff]   ;;  %v6119_v2 = vld [vmem:[%s7391_s29 + $0xe0] ss:$16 sps:$4 sm:$0xff]   ;;  %v428_v46 = vld [vmem:[%s8152_s0 + $0x8] sm:$0xff]  ;;  %s5127_s16 = sshll.u32 %s7213_s28, 1 }
  0x87   : > { %7126 = vsyncadd (%p8183_p8), [#allocation8], 4294963184  ;;  %v6117_v1 = vld [vmem:[%s7391_s29 + $0x2e4] ss:$16 sps:$4 sm:$0xff]   ;;  %1288 = vmatprep.subr.bf16.mxu0 %v6115_v0  ;;  %v6120_v3 = vld [vmem:[%s7391_s29 + $0x2e0] ss:$16 sps:$4 sm:$0xff]   ;;  %v7461_v49 = vpack.c.bf16 %v428_v46, %v428_v46 }
  0x88   : > { %1329 = vmatprep.subr.bf16.mxu1 %v6117_v1  ;;  %v6121_v4 = vld [vmem:[%s7391_s29 + $0xc4] ss:$16 sps:$4 sm:$0xff]   ;;  %1289 = vmatpush1.bf16.msra.mxu0 %v6119_v2  ;;  %v6125_v6 = vld [vmem:[%s7391_s29 + $0xc0] ss:$16 sps:$4 sm:$0xff]   ;;  %v430_v50 = vld [vmem:[%s8152_s0 + $0x18] sm:$0xff]  ;;  %p414_p9 = scmp.lt.s32.totalorder %s5127_s16, 3 }
  0x89   : > { %1330 = vmatpush1.bf16.msra.mxu1 %v6120_v3  ;;  %v6123_v5 = vld [vmem:[%s7391_s29 + $0x2c4] ss:$16 sps:$4 sm:$0xff]   ;;  %1290 = vmatprep.subr.bf16.mxu0 %v6121_v4  ;;  %v6126_v7 = vld [vmem:[%s7391_s29 + $0x2c0] ss:$16 sps:$4 sm:$0xff]   ;;  %v7467_v52 = vpack.c.bf16 %v430_v50, %v430_v50  ;;  %v6265_v46 = vld [vmem:[%s7391_s29 + $0x1c8] ss:$16 sps:$4 sm:$0xff]  }
  0x8a   : > { %1331 = vmatprep.subr.bf16.mxu1 %v6123_v5  ;;  %v6127_v8 = vld [vmem:[%s7391_s29 + $0xa4] ss:$16 sps:$4 sm:$0xff]   ;;  %v6131_v10 = vld [vmem:[%s7391_s29 + $0xa0] ss:$16 sps:$4 sm:$0xff]   ;;  %1320 = vmatprep.mubr.bf16.mxu0 %v7461_v49  ;;  %v6276_v50 = vld [vmem:[%s7391_s29 + $0x3ac] ss:$16 sps:$4 sm:$0xff]  }
  0x8b   : > { %v6129_v9 = vld [vmem:[%s7391_s29 + $0x2a4] ss:$16 sps:$4 sm:$0xff]   ;;  %v6132_v11 = vld [vmem:[%s7391_s29 + $0x2a0] ss:$16 sps:$4 sm:$0xff]   ;;  %1361 = vmatprep.mubr.bf16.mxu1 %v7467_v52  ;;  %s8190_s16 = smov (!%p414_p9, %s5127_s16), 3 }
  0x8c   : > { %1291 = vmatpush1.bf16.msra.mxu0 %v6125_v6  ;;  %v6133_v12 = vld [vmem:[%s7391_s29 + $0x84] ss:$16 sps:$4 sm:$0xff]   ;;  %v6137_v14 = vld [vmem:[%s7391_s29 + $0x80] ss:$16 sps:$4 sm:$0xff]   ;;  %v6213_v6 = vld [vmem:[%s7391_s29 + $0xec] ss:$16 sps:$4 sm:$0xff]  }
  0x8d   : > { %1332 = vmatpush1.bf16.msra.mxu1 %v6126_v7  ;;  %1292 = vmatprep.subr.bf16.mxu0 %v6127_v8  ;;  %v6135_v13 = vld [vmem:[%s7391_s29 + $0x284] ss:$16 sps:$4 sm:$0xff]   ;;  %v6138_v15 = vld [vmem:[%s7391_s29 + $0x280] ss:$16 sps:$4 sm:$0xff]   ;;  %v6216_v7 = vld [vmem:[%s7391_s29 + $0x2ec] ss:$16 sps:$4 sm:$0xff]  }
  0x8e   : > { %1333 = vmatprep.subr.bf16.mxu1 %v6129_v9  ;;  %v6139_v16 = vld [vmem:[%s7391_s29 + $0x64] ss:$16 sps:$4 sm:$0xff]   ;;  %v6143_v18 = vld [vmem:[%s7391_s29 + $0x60] ss:$16 sps:$4 sm:$0xff]   ;;  %s5950_s22 = sshll.u32 %s8190_s16, 5  ;;  %s5131_s14 = sshll.u32 %s8190_s16, 3 }
  0x8f   : > { %v6141_v17 = vld [vmem:[%s7391_s29 + $0x264] ss:$16 sps:$4 sm:$0xff]   ;;  %v6144_v19 = vld [vmem:[%s7391_s29 + $0x260] ss:$16 sps:$4 sm:$0xff]   ;;  %s7772_s28 = scalar_lea.vmem %s8158_s6, %s5950_s22 }
  0x90   : > { %1293 = vmatpush1.bf16.msra.mxu0 %v6131_v10  ;;  %v6145_v20 = vld [vmem:[%s7391_s29 + $0x44] ss:$16 sps:$4 sm:$0xff]   ;;  %v6149_v22 = vld [vmem:[%s7391_s29 + $0x40] ss:$16 sps:$4 sm:$0xff]   ;;  %v6211_v10 = vld [vmem:[%s7391_s29 + $0xe8] ss:$16 sps:$4 sm:$0xff]  }
  0x91   : > { %1334 = vmatpush1.bf16.msra.mxu1 %v6132_v11  ;;  %1294 = vmatprep.subr.bf16.mxu0 %v6133_v12  ;;  %v6147_v21 = vld [vmem:[%s7391_s29 + $0x244] ss:$16 sps:$4 sm:$0xff]   ;;  %v6150_v23 = vld [vmem:[%s7391_s29 + $0x240] ss:$16 sps:$4 sm:$0xff]   ;;  %v6214_v11 = vld [vmem:[%s7391_s29 + $0x2e8] ss:$16 sps:$4 sm:$0xff]  }
  0x92   : > { %1335 = vmatprep.subr.bf16.mxu1 %v6135_v13  ;;  %v6151_v24 = vld [vmem:[%s7391_s29 + $0x24] ss:$16 sps:$4 sm:$0xff]   ;;  %v6155_v26 = vld [vmem:[%s7391_s29 + $0x20] ss:$16 sps:$4 sm:$0xff]   ;;  %v6219_v12 = vld [vmem:[%s7391_s29 + $0xcc] ss:$16 sps:$4 sm:$0xff]  }
  0x93   : > { %v6153_v25 = vld [vmem:[%s7391_s29 + $0x224] ss:$16 sps:$4 sm:$0xff]   ;;  %v6156_v27 = vld [vmem:[%s7391_s29 + $0x220] ss:$16 sps:$4 sm:$0xff]   ;;  %v6222_v13 = vld [vmem:[%s7391_s29 + $0x2cc] ss:$16 sps:$4 sm:$0xff]  }
  0x94   : > { %1295 = vmatpush1.bf16.msra.mxu0 %v6137_v14  ;;  %v6157_v28 = vld [vmem:[%s7391_s29 + $0x4] ss:$16 sps:$4 sm:$0xff]   ;;  %v6161_v30 = vld [vmem:[%s7391_s29] ss:$16 sps:$4 sm:$0xff]   ;;  %v6217_v14 = vld [vmem:[%s7391_s29 + $0xc8] ss:$16 sps:$4 sm:$0xff]  }
  0x95   : > { %1336 = vmatpush1.bf16.msra.mxu1 %v6138_v15  ;;  %1296 = vmatprep.subr.bf16.mxu0 %v6139_v16  ;;  %v6159_v29 = vld [vmem:[%s7391_s29 + $0x204] ss:$16 sps:$4 sm:$0xff]   ;;  %v6162_v31 = vld [vmem:[%s7391_s29 + $0x200] ss:$16 sps:$4 sm:$0xff]   ;;  %v6220_v15 = vld [vmem:[%s7391_s29 + $0x2c8] ss:$16 sps:$4 sm:$0xff]  }
  0x96   : > { %1337 = vmatprep.subr.bf16.mxu1 %v6141_v17  ;;  %v6163_v32 = vld [vmem:[%s7391_s29 + $0x1e4] ss:$16 sps:$4 sm:$0xff]   ;;  %v6167_v34 = vld [vmem:[%s7391_s29 + $0x1e0] ss:$16 sps:$4 sm:$0xff]   ;;  %v6225_v16 = vld [vmem:[%s7391_s29 + $0xac] ss:$16 sps:$4 sm:$0xff]  }
  0x97   : > { %v6165_v33 = vld [vmem:[%s7391_s29 + $0x3e4] ss:$16 sps:$4 sm:$0xff]   ;;  %v6168_v35 = vld [vmem:[%s7391_s29 + $0x3e0] ss:$16 sps:$4 sm:$0xff]   ;;  %v6228_v17 = vld [vmem:[%s7391_s29 + $0x2ac] ss:$16 sps:$4 sm:$0xff]  }
  0x98   : > { %1297 = vmatpush1.bf16.msra.mxu0 %v6143_v18  ;;  %v6169_v36 = vld [vmem:[%s7391_s29 + $0x1c4] ss:$16 sps:$4 sm:$0xff]   ;;  %v6173_v38 = vld [vmem:[%s7391_s29 + $0x1c0] ss:$16 sps:$4 sm:$0xff]   ;;  %v6223_v18 = vld [vmem:[%s7391_s29 + $0xa8] ss:$16 sps:$4 sm:$0xff]  }
  0x99   : > { %1338 = vmatpush1.bf16.msra.mxu1 %v6144_v19  ;;  %1298 = vmatprep.subr.bf16.mxu0 %v6145_v20  ;;  %v6171_v37 = vld [vmem:[%s7391_s29 + $0x3c4] ss:$16 sps:$4 sm:$0xff]   ;;  %v6174_v39 = vld [vmem:[%s7391_s29 + $0x3c0] ss:$16 sps:$4 sm:$0xff]   ;;  %v6226_v19 = vld [vmem:[%s7391_s29 + $0x2a8] ss:$16 sps:$4 sm:$0xff]  }
  0x9a   : > { %1339 = vmatprep.subr.bf16.mxu1 %v6147_v21  ;;  %v6175_v40 = vld [vmem:[%s7391_s29 + $0x1a4] ss:$16 sps:$4 sm:$0xff]   ;;  %v6179_v42 = vld [vmem:[%s7391_s29 + $0x1a0] ss:$16 sps:$4 sm:$0xff]   ;;  %v6231_v20 = vld [vmem:[%s7391_s29 + $0x8c] ss:$16 sps:$4 sm:$0xff]  }
  0x9b   : > { %v6177_v41 = vld [vmem:[%s7391_s29 + $0x3a4] ss:$16 sps:$4 sm:$0xff]   ;;  %v6180_v43 = vld [vmem:[%s7391_s29 + $0x3a0] ss:$16 sps:$4 sm:$0xff]   ;;  %v6234_v21 = vld [vmem:[%s7391_s29 + $0x28c] ss:$16 sps:$4 sm:$0xff]  }
  0x9c   : > { %1299 = vmatpush1.bf16.msra.mxu0 %v6149_v22  ;;  %v6181_v44 = vld [vmem:[%s7391_s29 + $0x184] ss:$16 sps:$4 sm:$0xff]   ;;  %v6185_v47 = vld [vmem:[%s7391_s29 + $0x180] ss:$16 sps:$4 sm:$0xff]   ;;  %v6229_v22 = vld [vmem:[%s7391_s29 + $0x88] ss:$16 sps:$4 sm:$0xff]  }
  0x9d   : > { %1340 = vmatpush1.bf16.msra.mxu1 %v6150_v23  ;;  %1300 = vmatprep.subr.bf16.mxu0 %v6151_v24  ;;  %v6183_v45 = vld [vmem:[%s7391_s29 + $0x384] ss:$16 sps:$4 sm:$0xff]   ;;  %v6186_v48 = vld [vmem:[%s7391_s29 + $0x380] ss:$16 sps:$4 sm:$0xff]   ;;  %v6232_v23 = vld [vmem:[%s7391_s29 + $0x288] ss:$16 sps:$4 sm:$0xff]  }
  0x9e   : > { %1341 = vmatprep.subr.bf16.mxu1 %v6153_v25  ;;  %v6187_v51 = vld [vmem:[%s7391_s29 + $0x164] ss:$16 sps:$4 sm:$0xff]   ;;  %v6191_v54 = vld [vmem:[%s7391_s29 + $0x160] ss:$16 sps:$4 sm:$0xff]   ;;  %v6237_v24 = vld [vmem:[%s7391_s29 + $0x6c] ss:$16 sps:$4 sm:$0xff]  }
  0x9f   : > { %v6189_v53 = vld [vmem:[%s7391_s29 + $0x364] ss:$16 sps:$4 sm:$0xff]   ;;  %v6192_v55 = vld [vmem:[%s7391_s29 + $0x360] ss:$16 sps:$4 sm:$0xff]   ;;  %v6240_v25 = vld [vmem:[%s7391_s29 + $0x26c] ss:$16 sps:$4 sm:$0xff]  }
  0xa0   : > { %1301 = vmatpush1.bf16.msra.mxu0 %v6155_v26  ;;  %v6193_v56 = vld [vmem:[%s7391_s29 + $0x144] ss:$16 sps:$4 sm:$0xff]   ;;  %v6197_v58 = vld [vmem:[%s7391_s29 + $0x140] ss:$16 sps:$4 sm:$0xff]   ;;  %v6235_v26 = vld [vmem:[%s7391_s29 + $0x68] ss:$16 sps:$4 sm:$0xff]  }
  0xa1   : > { %1342 = vmatpush1.bf16.msra.mxu1 %v6156_v27  ;;  %1302 = vmatprep.subr.bf16.mxu0 %v6157_v28  ;;  %v6195_v57 = vld [vmem:[%s7391_s29 + $0x344] ss:$16 sps:$4 sm:$0xff]   ;;  %v6198_v59 = vld [vmem:[%s7391_s29 + $0x340] ss:$16 sps:$4 sm:$0xff]   ;;  %v6238_v27 = vld [vmem:[%s7391_s29 + $0x268] ss:$16 sps:$4 sm:$0xff]  }
  0xa2   : > { %1343 = vmatprep.subr.bf16.mxu1 %v6159_v29  ;;  %v6199_v60 = vld [vmem:[%s7391_s29 + $0x124] ss:$16 sps:$4 sm:$0xff]   ;;  %v6203_v62 = vld [vmem:[%s7391_s29 + $0x120] ss:$16 sps:$4 sm:$0xff]   ;;  %v6243_v28 = vld [vmem:[%s7391_s29 + $0x4c] ss:$16 sps:$4 sm:$0xff]  }
  0xa3   : > { %v6201_v61 = vld [vmem:[%s7391_s29 + $0x324] ss:$16 sps:$4 sm:$0xff]   ;;  %v6204_v63 = vld [vmem:[%s7391_s29 + $0x320] ss:$16 sps:$4 sm:$0xff]   ;;  %v6246_v29 = vld [vmem:[%s7391_s29 + $0x24c] ss:$16 sps:$4 sm:$0xff]  }
  0xa4   : > { %1303 = vmatpush1.bf16.msra.mxu0 %v6161_v30  ;;  %v6205_v0 = vld [vmem:[%s7391_s29 + $0x104] ss:$16 sps:$4 sm:$0xff]   ;;  %v6209_v2 = vld [vmem:[%s7391_s29 + $0x100] ss:$16 sps:$4 sm:$0xff]   ;;  %v6241_v30 = vld [vmem:[%s7391_s29 + $0x48] ss:$16 sps:$4 sm:$0xff]  }
  0xa5   : > { %1344 = vmatpush1.bf16.msra.mxu1 %v6162_v31  ;;  %1304 = vmatprep.subr.bf16.mxu0 %v6163_v32  ;;  %v6207_v1 = vld [vmem:[%s7391_s29 + $0x304] ss:$16 sps:$4 sm:$0xff]   ;;  %v6210_v3 = vld [vmem:[%s7391_s29 + $0x300] ss:$16 sps:$4 sm:$0xff]   ;;  %v6244_v31 = vld [vmem:[%s7391_s29 + $0x248] ss:$16 sps:$4 sm:$0xff]  }
  0xa6   : > { %1345 = vmatprep.subr.bf16.mxu1 %v6165_v33  ;;  %v427_v4 = vld [vmem:[%s8152_s0] sm:$0xff]  ;;  %v429_v5 = vld [vmem:[%s8152_s0 + $0x10] sm:$0xff]  ;;  %v6249_v32 = vld [vmem:[%s7391_s29 + $0x2c] ss:$16 sps:$4 sm:$0xff]  }
  0xa7   : > { %v7494_v8 = vpack.c.bf16 %v427_v4, %v427_v4  ;;  %v7496_v9 = vpack.c.bf16 %v429_v5, %v429_v5  ;;  %v6252_v33 = vld [vmem:[%s7391_s29 + $0x22c] ss:$16 sps:$4 sm:$0xff]   ;;  %v6295_v4 = vld [vmem:[%s7391_s29 + $0x128] ss:$16 sps:$4 sm:$0xff]  }
  0xa8   : > { %1305 = vmatpush2.bf16.msra.mxu0 %v6167_v34  ;;  %v6247_v34 = vld [vmem:[%s7391_s29 + $0x28] ss:$16 sps:$4 sm:$0xff]  }
  0xa9   : > { %1346 = vmatpush2.bf16.msra.mxu1 %v6168_v35  ;;  %1306 = vmatprep.subr.bf16.mxu0 %v6169_v36  ;;  %v6250_v35 = vld [vmem:[%s7391_s29 + $0x228] ss:$16 sps:$4 sm:$0xff]   ;;  %v6255_v36 = vld [vmem:[%s7391_s29 + $0xc] ss:$16 sps:$4 sm:$0xff]  }
  0xaa   : > { %1347 = vmatprep.subr.bf16.mxu1 %v6171_v37  ;;  %v6258_v37 = vld [vmem:[%s7391_s29 + $0x20c] ss:$16 sps:$4 sm:$0xff]   ;;  %v6298_v5 = vld [vmem:[%s7391_s29 + $0x328] ss:$16 sps:$4 sm:$0xff]  }
  0xac   : > { %1307 = vmatpush2.bf16.msra.mxu0 %v6173_v38  ;;  %v6253_v38 = vld [vmem:[%s7391_s29 + $0x8] ss:$16 sps:$4 sm:$0xff]  }
  0xad   : > { %1348 = vmatpush2.bf16.msra.mxu1 %v6174_v39  ;;  %1308 = vmatprep.subr.bf16.mxu0 %v6175_v40  ;;  %v6256_v39 = vld [vmem:[%s7391_s29 + $0x208] ss:$16 sps:$4 sm:$0xff]   ;;  %v6261_v40 = vld [vmem:[%s7391_s29 + $0x1ec] ss:$16 sps:$4 sm:$0xff]  }
  0xae   : > { %1349 = vmatprep.subr.bf16.mxu1 %v6177_v41  ;;  %v6264_v41 = vld [vmem:[%s7391_s29 + $0x3ec] ss:$16 sps:$4 sm:$0xff]  }
  0xb0   : > { %1309 = vmatpush2.bf16.msra.mxu0 %v6179_v42  ;;  %v6259_v42 = vld [vmem:[%s7391_s29 + $0x1e8] ss:$16 sps:$4 sm:$0xff]  }
  0xb1   : > { %1350 = vmatpush2.bf16.msra.mxu1 %v6180_v43  ;;  %1310 = vmatprep.subr.bf16.mxu0 %v6181_v44  ;;  %v6262_v43 = vld [vmem:[%s7391_s29 + $0x3e8] ss:$16 sps:$4 sm:$0xff]   ;;  %v6267_v44 = vld [vmem:[%s7391_s29 + $0x1cc] ss:$16 sps:$4 sm:$0xff]  }
  0xb2   : > { %1351 = vmatprep.subr.bf16.mxu1 %v6183_v45  ;;  %v6270_v45 = vld [vmem:[%s7391_s29 + $0x3cc] ss:$16 sps:$4 sm:$0xff]  }
  0xb4   : > { %1311 = vmatpush2.bf16.msra.mxu0 %v6185_v47  ;;  %v6268_v47 = vld [vmem:[%s7391_s29 + $0x3c8] ss:$16 sps:$4 sm:$0xff]  }
  0xb5   : > { %1352 = vmatpush2.bf16.msra.mxu1 %v6186_v48  ;;  %1312 = vmatprep.subr.bf16.mxu0 %v6187_v51  ;;  %v6273_v48 = vld [vmem:[%s7391_s29 + $0x1ac] ss:$16 sps:$4 sm:$0xff]   ;;  %v6271_v51 = vld [vmem:[%s7391_s29 + $0x1a8] ss:$16 sps:$4 sm:$0xff]  }
  0xb6   : > { %1353 = vmatprep.subr.bf16.mxu1 %v6189_v53  ;;  %v6274_v53 = vld [vmem:[%s7391_s29 + $0x3a8] ss:$16 sps:$4 sm:$0xff]  }
  0xb8   : > { %1313 = vmatpush2.bf16.msra.mxu0 %v6191_v54  ;;  %v6279_v54 = vld [vmem:[%s7391_s29 + $0x18c] ss:$16 sps:$4 sm:$0xff]  }
  0xb9   : > { %1354 = vmatpush2.bf16.msra.mxu1 %v6192_v55  ;;  %1314 = vmatprep.subr.bf16.mxu0 %v6193_v56  ;;  %v6282_v55 = vld [vmem:[%s7391_s29 + $0x38c] ss:$16 sps:$4 sm:$0xff]   ;;  %v6277_v56 = vld [vmem:[%s7391_s29 + $0x188] ss:$16 sps:$4 sm:$0xff]  }
  0xba   : > { %1355 = vmatprep.subr.bf16.mxu1 %v6195_v57  ;;  %v6280_v57 = vld [vmem:[%s7391_s29 + $0x388] ss:$16 sps:$4 sm:$0xff]  }
  0xbc   : > { %1315 = vmatpush2.bf16.msra.mxu0 %v6197_v58  ;;  %v6285_v58 = vld [vmem:[%s7391_s29 + $0x16c] ss:$16 sps:$4 sm:$0xff]  }
  0xbd   : > { %1356 = vmatpush2.bf16.msra.mxu1 %v6198_v59  ;;  %1316 = vmatprep.subr.bf16.mxu0 %v6199_v60  ;;  %v6288_v59 = vld [vmem:[%s7391_s29 + $0x36c] ss:$16 sps:$4 sm:$0xff]   ;;  %v6283_v60 = vld [vmem:[%s7391_s29 + $0x168] ss:$16 sps:$4 sm:$0xff]  }
  0xbe   : > { %1357 = vmatprep.subr.bf16.mxu1 %v6201_v61  ;;  %v6286_v61 = vld [vmem:[%s7391_s29 + $0x368] ss:$16 sps:$4 sm:$0xff]  }
  0xc0   : > { %1317 = vmatpush2.bf16.msra.mxu0 %v6203_v62  ;;  %v6291_v62 = vld [vmem:[%s7391_s29 + $0x14c] ss:$16 sps:$4 sm:$0xff]  }
  0xc1   : > { %1358 = vmatpush2.bf16.msra.mxu1 %v6204_v63  ;;  %1318 = vmatprep.subr.bf16.mxu0 %v6205_v0  ;;  %v6294_v63 = vld [vmem:[%s7391_s29 + $0x34c] ss:$16 sps:$4 sm:$0xff]   ;;  %v6289_v0 = vld [vmem:[%s7391_s29 + $0x148] ss:$16 sps:$4 sm:$0xff]  }
  0xc2   : > { %1359 = vmatprep.subr.bf16.mxu1 %v6207_v1  ;;  %v6292_v1 = vld [vmem:[%s7391_s29 + $0x348] ss:$16 sps:$4 sm:$0xff]  }
  0xc4   : > { %1319 = vmatpush2.bf16.msra.mxu0 %v6209_v2  ;;  %v6297_v2 = vld [vmem:[%s7391_s29 + $0x12c] ss:$16 sps:$4 sm:$0xff]  }
  0xc5   : > { %1360 = vmatpush2.bf16.msra.mxu1 %v6210_v3  ;;  %1370 = vmatprep.subr.bf16.mxu0 %v6213_v6  ;;  %v6300_v3 = vld [vmem:[%s7391_s29 + $0x32c] ss:$16 sps:$4 sm:$0xff]  }
  0xc6   : > { %1411 = vmatprep.subr.bf16.mxu1 %v6216_v7  ;;  %v6303_v6 = vld [vmem:[%s7391_s29 + $0x10c] ss:$16 sps:$4 sm:$0xff]  }
  0xc7   : > { %1321 = vmatmul.mubr.bf16.vlgmr.msra.gmra.mxu0 %v7494_v8  ;;  %v6306_v7 = vld [vmem:[%s7391_s29 + $0x30c] ss:$16 sps:$4 sm:$0xff]  }
  0xc8   : > { %1362 = vmatmul.mubr.bf16.vlgmr.msra.gmra.mxu1 %v7496_v9  ;;  %1371 = vmatpush1.bf16.msra.mxu0 %v6211_v10  ;;  %v6301_v10 = vld [vmem:[%s7391_s29 + $0x108] ss:$16 sps:$4 sm:$0xff]  }
  0xc9   : > { %1412 = vmatpush1.bf16.msra.mxu1 %v6214_v11  ;;  %1372 = vmatprep.subr.bf16.mxu0 %v6219_v12  ;;  %v6304_v11 = vld [vmem:[%s7391_s29 + $0x308] ss:$16 sps:$4 sm:$0xff]   ;;  %v6309_v12 = vld [vmem:[%s7404_s12 + $0xe4] ss:$16 sps:$4 sm:$0xff]  }
  0xca   : > { %1413 = vmatprep.subr.bf16.mxu1 %v6222_v13  ;;  %1402 = vmatprep.mubr.bf16.mxu0 %v7461_v49  ;;  %v6307_v13 = vld [vmem:[%s7404_s12 + $0xe0] ss:$16 sps:$4 sm:$0xff]  }
  0xcb   : > { %1443 = vmatprep.mubr.bf16.mxu1 %v7467_v52 }
  0xcc   : > { %1373 = vmatpush1.bf16.msra.mxu0 %v6217_v14  ;;  %v6312_v14 = vld [vmem:[%s7404_s12 + $0xc4] ss:$16 sps:$4 sm:$0xff]  }
  0xcd   : > { %1414 = vmatpush1.bf16.msra.mxu1 %v6220_v15  ;;  %1374 = vmatprep.subr.bf16.mxu0 %v6225_v16  ;;  %v6310_v15 = vld [vmem:[%s7404_s12 + $0xc0] ss:$16 sps:$4 sm:$0xff]   ;;  %v6315_v16 = vld [vmem:[%s7404_s12 + $0xa4] ss:$16 sps:$4 sm:$0xff]  }
  0xce   : > { %1415 = vmatprep.subr.bf16.mxu1 %v6228_v17  ;;  %v6313_v17 = vld [vmem:[%s7404_s12 + $0xa0] ss:$16 sps:$4 sm:$0xff]  }
  0xd0   : > { %1375 = vmatpush1.bf16.msra.mxu0 %v6223_v18  ;;  %v6318_v18 = vld [vmem:[%s7404_s12 + $0x84] ss:$16 sps:$4 sm:$0xff]  }
  0xd1   : > { %1416 = vmatpush1.bf16.msra.mxu1 %v6226_v19  ;;  %1376 = vmatprep.subr.bf16.mxu0 %v6231_v20  ;;  %v6316_v19 = vld [vmem:[%s7404_s12 + $0x80] ss:$16 sps:$4 sm:$0xff]   ;;  %v6321_v20 = vld [vmem:[%s7404_s12 + $0x64] ss:$16 sps:$4 sm:$0xff]  }
  0xd2   : > { %1417 = vmatprep.subr.bf16.mxu1 %v6234_v21  ;;  %v6319_v21 = vld [vmem:[%s7404_s12 + $0x60] ss:$16 sps:$4 sm:$0xff]  }
  0xd4   : > { %1377 = vmatpush1.bf16.msra.mxu0 %v6229_v22  ;;  %v6324_v22 = vld [vmem:[%s7404_s12 + $0x44] ss:$16 sps:$4 sm:$0xff]  }
  0xd5   : > { %1418 = vmatpush1.bf16.msra.mxu1 %v6232_v23  ;;  %1378 = vmatprep.subr.bf16.mxu0 %v6237_v24  ;;  %v6322_v23 = vld [vmem:[%s7404_s12 + $0x40] ss:$16 sps:$4 sm:$0xff]   ;;  %v6327_v24 = vld [vmem:[%s7404_s12 + $0x24] ss:$16 sps:$4 sm:$0xff]  }
  0xd6   : > { %1419 = vmatprep.subr.bf16.mxu1 %v6240_v25  ;;  %v6325_v25 = vld [vmem:[%s7404_s12 + $0x20] ss:$16 sps:$4 sm:$0xff]  }
  0xd8   : > { %1379 = vmatpush1.bf16.msra.mxu0 %v6235_v26  ;;  %v6330_v26 = vld [vmem:[%s7404_s12 + $0x4] ss:$16 sps:$4 sm:$0xff]  }
  0xd9   : > { %1420 = vmatpush1.bf16.msra.mxu1 %v6238_v27  ;;  %1380 = vmatprep.subr.bf16.mxu0 %v6243_v28  ;;  %v6328_v27 = vld [vmem:[%s7404_s12] ss:$16 sps:$4 sm:$0xff]   ;;  %v6333_v28 = vld [vmem:[%s7404_s12 + $0x1e4] ss:$16 sps:$4 sm:$0xff]  }
  0xda   : > { %1421 = vmatprep.subr.bf16.mxu1 %v6246_v29  ;;  %v6331_v29 = vld [vmem:[%s7404_s12 + $0x1e0] ss:$16 sps:$4 sm:$0xff]  }
  0xdc   : > { %1381 = vmatpush1.bf16.msra.mxu0 %v6241_v30  ;;  %v6336_v30 = vld [vmem:[%s7404_s12 + $0x1c4] ss:$16 sps:$4 sm:$0xff]  }
  0xdd   : > { %1422 = vmatpush1.bf16.msra.mxu1 %v6244_v31  ;;  %1382 = vmatprep.subr.bf16.mxu0 %v6249_v32  ;;  %v6334_v31 = vld [vmem:[%s7404_s12 + $0x1c0] ss:$16 sps:$4 sm:$0xff]   ;;  %v6339_v32 = vld [vmem:[%s7404_s12 + $0x1a4] ss:$16 sps:$4 sm:$0xff]  }
  0xde   : > { %1423 = vmatprep.subr.bf16.mxu1 %v6252_v33  ;;  %v6337_v33 = vld [vmem:[%s7404_s12 + $0x1a0] ss:$16 sps:$4 sm:$0xff]  }
  0xe0   : > { %1383 = vmatpush1.bf16.msra.mxu0 %v6247_v34  ;;  %v6342_v34 = vld [vmem:[%s7404_s12 + $0x184] ss:$16 sps:$4 sm:$0xff]  }
  0xe1   : > { %1424 = vmatpush1.bf16.msra.mxu1 %v6250_v35  ;;  %1384 = vmatprep.subr.bf16.mxu0 %v6255_v36  ;;  %v6340_v35 = vld [vmem:[%s7404_s12 + $0x180] ss:$16 sps:$4 sm:$0xff]   ;;  %v6345_v36 = vld [vmem:[%s7404_s12 + $0x164] ss:$16 sps:$4 sm:$0xff]  }
  0xe2   : > { %1425 = vmatprep.subr.bf16.mxu1 %v6258_v37  ;;  %v6343_v37 = vld [vmem:[%s7404_s12 + $0x160] ss:$16 sps:$4 sm:$0xff]  }
  0xe4   : > { %1385 = vmatpush1.bf16.msra.mxu0 %v6253_v38  ;;  %v6348_v38 = vld [vmem:[%s7404_s12 + $0x144] ss:$16 sps:$4 sm:$0xff]  }
  0xe5   : > { %1426 = vmatpush1.bf16.msra.mxu1 %v6256_v39  ;;  %1386 = vmatprep.subr.bf16.mxu0 %v6261_v40  ;;  %v6346_v39 = vld [vmem:[%s7404_s12 + $0x140] ss:$16 sps:$4 sm:$0xff]   ;;  %v6351_v40 = vld [vmem:[%s7404_s12 + $0x124] ss:$16 sps:$4 sm:$0xff]  }
  0xe6   : > { %1427 = vmatprep.subr.bf16.mxu1 %v6264_v41  ;;  %v6349_v41 = vld [vmem:[%s7404_s12 + $0x120] ss:$16 sps:$4 sm:$0xff]  }
  0xe8   : > { %1387 = vmatpush2.bf16.msra.mxu0 %v6259_v42  ;;  %v6352_v42 = vld [vmem:[%s7404_s12 + $0x100] ss:$16 sps:$4 sm:$0xff]  }
  0xe9   : > { %1428 = vmatpush2.bf16.msra.mxu1 %v6262_v43  ;;  %1388 = vmatprep.subr.bf16.mxu0 %v6267_v44  ;;  %v6354_v43 = vld [vmem:[%s7404_s12 + $0x104] ss:$16 sps:$4 sm:$0xff]  }
  0xea   : > { %1429 = vmatprep.subr.bf16.mxu1 %v6270_v45  ;;  %v6357_v44 = vld [vmem:[%s7404_s12 + $0x2e4] ss:$16 sps:$4 sm:$0xff]   ;;  %v6360_v45 = vld [vmem:[%s7404_s12 + $0xec] ss:$16 sps:$4 sm:$0xff]  }
  0xec   : > { %1389 = vmatpush2.bf16.msra.mxu0 %v6265_v46  ;;  %v6355_v46 = vld [vmem:[%s7404_s12 + $0x2e0] ss:$16 sps:$4 sm:$0xff]  }
  0xed   : > { %1430 = vmatpush2.bf16.msra.mxu1 %v6268_v47  ;;  %1390 = vmatprep.subr.bf16.mxu0 %v6273_v48  ;;  %v6363_v47 = vld [vmem:[%s7404_s12 + $0x2c4] ss:$16 sps:$4 sm:$0xff]   ;;  %v6361_v48 = vld [vmem:[%s7404_s12 + $0x2c0] ss:$16 sps:$4 sm:$0xff]  }
  0xee   : > { %1431 = vmatprep.subr.bf16.mxu1 %v6276_v50  ;;  %v6369_v50 = vld [vmem:[%s7404_s12 + $0x2a4] ss:$16 sps:$4 sm:$0xff]  }
  0xf0   : > { %1391 = vmatpush2.bf16.msra.mxu0 %v6271_v51  ;;  %v6367_v51 = vld [vmem:[%s7404_s12 + $0x2a0] ss:$16 sps:$4 sm:$0xff]  }
  0xf1   : > { %1432 = vmatpush2.bf16.msra.mxu1 %v6274_v53  ;;  %1392 = vmatprep.subr.bf16.mxu0 %v6279_v54  ;;  %v6375_v53 = vld [vmem:[%s7404_s12 + $0x284] ss:$16 sps:$4 sm:$0xff]   ;;  %v6373_v54 = vld [vmem:[%s7404_s12 + $0x280] ss:$16 sps:$4 sm:$0xff]  }
  0xf2   : > { %1433 = vmatprep.subr.bf16.mxu1 %v6282_v55  ;;  %v6381_v55 = vld [vmem:[%s7404_s12 + $0x264] ss:$16 sps:$4 sm:$0xff]  }
  0xf4   : > { %1393 = vmatpush2.bf16.msra.mxu0 %v6277_v56  ;;  %v6379_v56 = vld [vmem:[%s7404_s12 + $0x260] ss:$16 sps:$4 sm:$0xff]  }
  0xf5   : > { %1434 = vmatpush2.bf16.msra.mxu1 %v6280_v57  ;;  %1394 = vmatprep.subr.bf16.mxu0 %v6285_v58  ;;  %v6387_v57 = vld [vmem:[%s7404_s12 + $0x244] ss:$16 sps:$4 sm:$0xff]   ;;  %v6385_v58 = vld [vmem:[%s7404_s12 + $0x240] ss:$16 sps:$4 sm:$0xff]  }
  0xf6   : > { %1435 = vmatprep.subr.bf16.mxu1 %v6288_v59  ;;  %v6393_v59 = vld [vmem:[%s7404_s12 + $0x224] ss:$16 sps:$4 sm:$0xff]  }
  0xf8   : > { %1395 = vmatpush2.bf16.msra.mxu0 %v6283_v60  ;;  %v6391_v60 = vld [vmem:[%s7404_s12 + $0x220] ss:$16 sps:$4 sm:$0xff]  }
  0xf9   : > { %1436 = vmatpush2.bf16.msra.mxu1 %v6286_v61  ;;  %1396 = vmatprep.subr.bf16.mxu0 %v6291_v62  ;;  %v6399_v61 = vld [vmem:[%s7404_s12 + $0x204] ss:$16 sps:$4 sm:$0xff]   ;;  %v6397_v62 = vld [vmem:[%s7404_s12 + $0x200] ss:$16 sps:$4 sm:$0xff]  }
  0xfa   : > { %1437 = vmatprep.subr.bf16.mxu1 %v6294_v63  ;;  %v6405_v63 = vld [vmem:[%s7404_s12 + $0x3e4] ss:$16 sps:$4 sm:$0xff]  }
  0xfc   : > { %1397 = vmatpush2.bf16.msra.mxu0 %v6289_v0  ;;  %v6403_v0 = vld [vmem:[%s7404_s12 + $0x3e0] ss:$16 sps:$4 sm:$0xff]  }
  0xfd   : > { %1438 = vmatpush2.bf16.msra.mxu1 %v6292_v1  ;;  %1398 = vmatprep.subr.bf16.mxu0 %v6297_v2  ;;  %v6411_v1 = vld [vmem:[%s7404_s12 + $0x3c4] ss:$16 sps:$4 sm:$0xff]   ;;  %v6409_v2 = vld [vmem:[%s7404_s12 + $0x3c0] ss:$16 sps:$4 sm:$0xff]  }
  0xfe   : > { %1439 = vmatprep.subr.bf16.mxu1 %v6300_v3  ;;  %v6417_v3 = vld [vmem:[%s7404_s12 + $0x3a4] ss:$16 sps:$4 sm:$0xff]  }
 0x100   : > { %1399 = vmatpush2.bf16.msra.mxu0 %v6295_v4  ;;  %v6415_v4 = vld [vmem:[%s7404_s12 + $0x3a0] ss:$16 sps:$4 sm:$0xff]  }
 0x101   : > { %1440 = vmatpush2.bf16.msra.mxu1 %v6298_v5  ;;  %1400 = vmatprep.subr.bf16.mxu0 %v6303_v6  ;;  %v6423_v5 = vld [vmem:[%s7404_s12 + $0x384] ss:$16 sps:$4 sm:$0xff]   ;;  %v6421_v6 = vld [vmem:[%s7404_s12 + $0x380] ss:$16 sps:$4 sm:$0xff]  }
 0x102   : > { %1441 = vmatprep.subr.bf16.mxu1 %v6306_v7  ;;  %v6429_v7 = vld [vmem:[%s7404_s12 + $0x364] ss:$16 sps:$4 sm:$0xff]  }
 0x104   : > { %1401 = vmatpush2.bf16.msra.mxu0 %v6301_v10  ;;  %v632_v10 = vlaneseq }
 0x105   : > { %1442 = vmatpush2.bf16.msra.mxu1 %v6304_v11  ;;  %2361 = vmatprep.subr.bf16.mxu0 %v6309_v12  ;;  %v6427_v11 = vld [vmem:[%s7404_s12 + $0x360] ss:$16 sps:$4 sm:$0xff]   ;;  %v6435_v12 = vld [vmem:[%s7404_s12 + $0x344] ss:$16 sps:$4 sm:$0xff]  }
 0x106   : > { %2402 = vmatprep.subr.bf16.mxu1 %v6357_v44 }
 0x107   : > { %1403 = vmatmul.mubr.bf16.vlgmr.msra.gmra.mxu0 %v7494_v8 }
 0x108   : > { %1444 = vmatmul.mubr.bf16.vlgmr.msra.gmra.mxu1 %v7496_v9  ;;  %2362 = vmatpush1.bf16.msra.mxu0 %v6307_v13  ;;  %v7626_v13 = vshrl.u32 %v632_v10, 7 }
 0x109   : > { %2363 = vmatprep.subr.bf16.mxu0 %v6312_v14  ;;  %2403 = vmatpush1.bf16.msra.mxu1 %v6355_v46  ;;  %v6433_v14 = vld [vmem:[%s7404_s12 + $0x340] ss:$16 sps:$4 sm:$0xff]  }
 0x10a   : > { %2404 = vmatprep.subr.bf16.mxu1 %v6363_v47 }
 0x10c   : > { %2364 = vmatpush1.bf16.msra.mxu0 %v6310_v15  ;;  %v6441_v15 = vld [vmem:[%s7404_s12 + $0x324] ss:$16 sps:$4 sm:$0xff]  }
 0x10d   : > { %2365 = vmatprep.subr.bf16.mxu0 %v6315_v16  ;;  %2405 = vmatpush1.bf16.msra.mxu1 %v6361_v48  ;;  %v7631_v16 = vld [vmem:[%s7398_s20] sm:$0xff] }
 0x10e   : > { %2406 = vmatprep.subr.bf16.mxu1 %v6369_v50 }
 0x110   : > { %2366 = vmatpush1.bf16.msra.mxu0 %v6313_v17  ;;  %v7634_v17 = vsub.s32 0, %v7626_v13 }
 0x111   : > { %2367 = vmatprep.subr.bf16.mxu0 %v6318_v18  ;;  %2407 = vmatpush1.bf16.msra.mxu1 %v6367_v51  ;;  %v6439_v18 = vld [vmem:[%s7404_s12 + $0x320] ss:$16 sps:$4 sm:$0xff]  }
 0x112   : > { %2408 = vmatprep.subr.bf16.mxu1 %v6375_v53 }
 0x114   : > { %2368 = vmatpush1.bf16.msra.mxu0 %v6316_v19  ;;  %v6445_v19 = vld [vmem:[%s7404_s12 + $0x300] ss:$16 sps:$4 sm:$0xff]  }
 0x115   : > { %2369 = vmatprep.subr.bf16.mxu0 %v6321_v20  ;;  %2409 = vmatpush1.bf16.msra.mxu1 %v6373_v54  ;;  %v6447_v20 = vld [vmem:[%s7404_s12 + $0x304] ss:$16 sps:$4 sm:$0xff]  }
 0x116   : > { %2410 = vmatprep.subr.bf16.mxu1 %v6381_v55 }
 0x118   : > { %2370 = vmatpush1.bf16.msra.mxu0 %v6319_v21  ;;  %v7640_v21 = vld [vmem:[%s7398_s20 + $0x8] sm:$0xff] }
 0x119   : > { %2371 = vmatprep.subr.bf16.mxu0 %v6324_v22  ;;  %2411 = vmatpush1.bf16.msra.mxu1 %v6379_v56  ;;  %v635_v22 = vrot.slane %v7631_v16, %v7634_v17 }
 0x11a   : > { %2412 = vmatprep.subr.bf16.mxu1 %v6387_v57 }
 0x11c   : > { %2372 = vmatpush1.bf16.msra.mxu0 %v6322_v23  ;;  %v639_v23 = vrot.slane %v7640_v21, %v7634_v17 }
 0x11d   : > { %2373 = vmatprep.subr.bf16.mxu0 %v6327_v24  ;;  %2413 = vmatpush1.bf16.msra.mxu1 %v6385_v58 }
 0x11e   : > { %2414 = vmatprep.subr.bf16.mxu1 %v6393_v59 }
 0x120   : > { %2374 = vmatpush1.bf16.msra.mxu0 %v6325_v25 }
 0x121   : > { %2375 = vmatprep.subr.bf16.mxu0 %v6330_v26  ;;  %2415 = vmatpush1.bf16.msra.mxu1 %v6391_v60  ;;  %v6453_v26 = vld [vmem:[%s7404_s12 + $0x2ec] ss:$16 sps:$4 sm:$0xff]  }
 0x122   : > { %2416 = vmatprep.subr.bf16.mxu1 %v6399_v61 }
 0x124   : > { %2376 = vmatpush1.bf16.msra.mxu0 %v6328_v27 }
 0x125   : > { %2377 = vmatprep.subr.bf16.mxu0 %v6333_v28  ;;  %2417 = vmatpush1.bf16.msra.mxu1 %v6397_v62 }
 0x126   : > { %2418 = vmatprep.subr.bf16.mxu1 %v6405_v63 }
 0x128   : > { %2378 = vmatpush2.bf16.msra.mxu0 %v6331_v29 }
 0x129   : > { %2379 = vmatprep.subr.bf16.mxu0 %v6336_v30  ;;  %2419 = vmatpush2.bf16.msra.mxu1 %v6403_v0 }
 0x12a   : > { %2420 = vmatprep.subr.bf16.mxu1 %v6411_v1 }
 0x12c   : > { %2380 = vmatpush2.bf16.msra.mxu0 %v6334_v31 }
 0x12d   : > { %2381 = vmatprep.subr.bf16.mxu0 %v6339_v32  ;;  %2421 = vmatpush2.bf16.msra.mxu1 %v6409_v2 }
 0x12e   : > { %2422 = vmatprep.subr.bf16.mxu1 %v6417_v3 }
 0x130   : > { %2382 = vmatpush2.bf16.msra.mxu0 %v6337_v33 }
 0x131   : > { %2383 = vmatprep.subr.bf16.mxu0 %v6342_v34  ;;  %2423 = vmatpush2.bf16.msra.mxu1 %v6415_v4 }
 0x132   : > { %2424 = vmatprep.subr.bf16.mxu1 %v6423_v5 }
 0x134   : > { %2384 = vmatpush2.bf16.msra.mxu0 %v6340_v35 }
 0x135   : > { %2385 = vmatprep.subr.bf16.mxu0 %v6345_v36  ;;  %2425 = vmatpush2.bf16.msra.mxu1 %v6421_v6 }
 0x136   : > { %2426 = vmatprep.subr.bf16.mxu1 %v6429_v7 }
 0x138   : > { %2386 = vmatpush2.bf16.msra.mxu0 %v6343_v37 }
 0x139   : > { %2387 = vmatprep.subr.bf16.mxu0 %v6348_v38  ;;  %2427 = vmatpush2.bf16.msra.mxu1 %v6427_v11 }
 0x13a   : > { %2428 = vmatprep.subr.bf16.mxu1 %v6435_v12 }
 0x13c   : > { %2388 = vmatpush2.bf16.msra.mxu0 %v6346_v39 }
 0x13d   : > { %2389 = vmatprep.subr.bf16.mxu0 %v6351_v40  ;;  %2429 = vmatpush2.bf16.msra.mxu1 %v6433_v14  ;;  %v7648_v14 = vsub.s32 1, %v7626_v13 }
 0x13e   : > { %2430 = vmatprep.subr.bf16.mxu1 %v6441_v15  ;;  %v7651_v15 = vsub.s32 2, %v7626_v13 }
 0x140   : > { %2390 = vmatpush2.bf16.msra.mxu0 %v6349_v41 }
 0x141   : > { %2391 = vmatprep.subr.bf16.mxu0 %v6354_v43  ;;  %2431 = vmatpush2.bf16.msra.mxu1 %v6439_v18  ;;  %v1536_v18 = vrot.slane %v7631_v16, %v7648_v14 }
 0x142   : > { %2432 = vmatprep.subr.bf16.mxu1 %v6447_v20 }
 0x144   : > { %2392 = vmatpush2.bf16.msra.mxu0 %v6352_v42 }
 0x145   : > { %2443 = vmatprep.subr.bf16.mxu0 %v6360_v45  ;;  %2433 = vmatpush2.bf16.msra.mxu1 %v6445_v19 }
 0x146   : > { %2484 = vmatprep.subr.bf16.mxu1 %v6453_v26 }
 0x187   : > { %v1322_v24 = vpop.f32.mrf.mxu0 }
 0x188   : > { %v1363_v25 = vpop.f32.mrf.mxu1  ;;  %v1323_v27 = vadd.f32 %v1322_v24, %v635_v22  ;;  %v1540_v22 = vrot.slane %v7640_v21, %v7648_v14  ;;  %v1556_v24 = vrot.slane %v7631_v16, %v7651_v15 }
 0x189   : > { %v1324_v28 = vpop.f32.mrf.mxu0 }
 0x18a   : > { %v1365_v29 = vpop.f32.mrf.mxu1  ;;  %v1364_v30 = vadd.f32 %v1363_v25, %v1323_v27  ;;  %v1325_v31 = vadd.f32 %v1324_v28, %v639_v23  ;;  %v1560_v27 = vrot.slane %v7640_v21, %v7651_v15  ;;  %v7662_v28 = vld [vmem:[%s7398_s20 + $0x10] sm:$0xff] }
 0x18b   : > { %v1326_v32 = vpop.f32.mrf.mxu0 }
 0x18c   : > { %v1367_v33 = vpop.f32.mrf.mxu1  ;;  %v1452_v34 = vmax.f32 %v1364_v30, 0.0  ;;  %v1366_v35 = vadd.f32 %v1365_v29, %v1325_v31  ;;  %v7665_v30 = vld [vmem:[%s7398_s20 + $0x18] sm:$0xff]  ;;  %v643_v32 = vrot.slane %v7662_v28, %v7634_v17 }
 0x18d   : > { %v1327_v36 = vpop.f32.mrf.mxu0 }
 0x18e   : > { %v1368_v37 = vpop.f32.mrf.mxu1  ;;  %v1456_v38 = vrot.slane %v1452_v34, 4  ;;  %v1453_v39 = vmax.f32 %v1366_v35, 0.0  ;;  %v6358_v35 = vld [vmem:[%s7404_s12 + $0xe8] ss:$16 sps:$4 sm:$0xff]   ;;  %v647_v36 = vrot.slane %v7665_v30, %v7634_v17 }
 0x190   : > { %v1457_v40 = vadd.f32 %v1456_v38, %v1452_v34  ;;  %v1462_v41 = vrot.slane %v1453_v39, 4 }
 0x192   : > { %v1458_v42 = vrot.slane %v1457_v40, 2  ;;  %v1463_v43 = vadd.f32 %v1462_v41, %v1453_v39 }
 0x194   : > { %v1459_v44 = vadd.f32 %v1458_v42, %v1457_v40  ;;  %v1464_v45 = vrot.slane %v1463_v43, 2  ;;  %v6366_v40 = vld [vmem:[%s7404_s12 + $0xcc] ss:$16 sps:$4 sm:$0xff]  }
 0x196   : > { %v1460_v46 = vrot.slane %v1459_v44, 1  ;;  %v1465_v47 = vadd.f32 %v1464_v45, %v1463_v43 }
 0x198   : > { %v1461_v48 = vadd.f32 %v1460_v46, %v1459_v44  ;;  %v1466_v50 = vrot.slane %v1465_v47, 1  ;;  %v6364_v46 = vld [vmem:[%s7404_s12 + $0xc8] ss:$16 sps:$4 sm:$0xff]  }
 0x19a   : > { %v1481_v51 = vmul.f32 0.125, %v1461_v48  ;;  %v1467_v53 = vadd.f32 %v1466_v50, %v1465_v47  ;;  %v6372_v50 = vld [vmem:[%s7404_s12 + $0xac] ss:$16 sps:$4 sm:$0xff]  }
 0x19c   : > { %v1485_v54 = vsub.f32 %v1452_v34, %v1481_v51  ;;  %v1482_v55 = vmul.f32 0.125, %v1467_v53 }
 0x19e   : > { %v1489_v56 = vmul.f32 %v1485_v54, %v1485_v54  ;;  %v1486_v57 = vsub.f32 %v1453_v39, %v1482_v55 }
 0x1a0   : > { %v1493_v58 = vrot.slane %v1489_v56, 4  ;;  %v1490_v59 = vmul.f32 %v1486_v57, %v1486_v57 }
 0x1a2   : > { %v1494_v60 = vadd.f32 %v1493_v58, %v1489_v56  ;;  %v1499_v61 = vrot.slane %v1490_v59, 4  ;;  %v6370_v58 = vld [vmem:[%s7404_s12 + $0xa8] ss:$16 sps:$4 sm:$0xff]  }
 0x1a4   : > { %v1495_v62 = vrot.slane %v1494_v60, 2  ;;  %v1500_v63 = vadd.f32 %v1499_v61, %v1490_v59  ;;  %v6378_v59 = vld [vmem:[%s7404_s12 + $0x8c] ss:$16 sps:$4 sm:$0xff]  }
 0x1a6   : > { %v1496_v0 = vadd.f32 %v1495_v62, %v1494_v60  ;;  %v1501_v1 = vrot.slane %v1500_v63, 2 }
 0x1a8   : > { %v1497_v2 = vrot.slane %v1496_v0, 1  ;;  %v1502_v3 = vadd.f32 %v1501_v1, %v1500_v63  ;;  %v6384_v1 = vld [vmem:[%s7404_s12 + $0x6c] ss:$16 sps:$4 sm:$0xff]  }
 0x1aa   : > { %v1498_v4 = vadd.f32 %v1497_v2, %v1496_v0  ;;  %v1503_v5 = vrot.slane %v1502_v3, 1  ;;  %v6376_v0 = vld [vmem:[%s7404_s12 + $0x88] ss:$16 sps:$4 sm:$0xff]  }
 0x1ac   : > { %v1517_v6 = vmul.f32 0.125, %v1498_v4  ;;  %v1504_v7 = vadd.f32 %v1503_v5, %v1502_v3 }
 0x1ae   : > { %v1521_v10 = vadd.f32 1e-05, %v1517_v6  ;;  %v1518_v11 = vmul.f32 0.125, %v1504_v7  ;;  %v6382_v6 = vld [vmem:[%s7404_s12 + $0x68] ss:$16 sps:$4 sm:$0xff]  }
 0x1af   : > { %v6390_v7 = vld [vmem:[%s7404_s12 + $0x4c] ss:$16 sps:$4 sm:$0xff]  }
 0x1b0   : > { %6915 = vrsqrt.f32 %v1521_v10  ;;  %v1522_v12 = vadd.f32 1e-05, %v1518_v11 }
 0x1b2   : > { %6917 = vrsqrt.f32 %v1522_v12 }
 0x1bd   : > { %v6916_v19 = vpop.eup %6915 }
 0x1be   : > { %v1529_v20 = vmul.f32 %v6916_v19, %v1485_v54  ;;  %v6388_v19 = vld [vmem:[%s7404_s12 + $0x48] ss:$16 sps:$4 sm:$0xff]  }
 0x1bf   : > { %v6918_v23 = vpop.eup %6917 }
 0x1c0   : > { %v1549_v25 = vmul.f32 %v1536_v18, %v1529_v20  ;;  %v1530_v26 = vmul.f32 %v6918_v23, %v1486_v57  ;;  %v6396_v20 = vld [vmem:[%s7404_s12 + $0x2c] ss:$16 sps:$4 sm:$0xff]  }
 0x1c2   : > { %v1550_v29 = vmul.f32 %v1540_v22, %v1530_v26  ;;  %v1569_v31 = vadd.f32 %v1556_v24, %v1549_v25  ;;  %v6394_v26 = vld [vmem:[%s7404_s12 + $0x28] ss:$16 sps:$4 sm:$0xff]  }
 0x1c4   : > { %v1570_v33 = vadd.f32 %v1560_v27, %v1550_v29  ;;  %v7672_v39 = vpack.c.bf16 %v1569_v31, %v1569_v31  ;;  %v6402_v27 = vld [vmem:[%s7404_s12 + $0xc] ss:$16 sps:$4 sm:$0xff]  }
 0x1c6   : > { %v1574_v34 = vpack.c.bf16 %v1570_v33, %v1570_v33 }
 0x1c7   : > { %v1404_v37 = vpop.f32.mrf.mxu0 }
 0x1c8   : > { %v1445_v38 = vpop.f32.mrf.mxu1  ;;  %v1405_v41 = vadd.f32 %v1404_v37, %v643_v32  ;;  %2393 = vmatprep.mubr.bf16.mxu0 %v1574_v34 }
 0x1c9   : > { %v1406_v42 = vpop.f32.mrf.mxu0  ;;  %2394 = vmatmul.mubr.bf16.vlgmr.msra.gmra.mxu0 %v7672_v39 }
 0x1ca   : > { %v1447_v43 = vpop.f32.mrf.mxu1  ;;  %v1446_v44 = vadd.f32 %v1445_v38, %v1405_v41  ;;  %v1407_v45 = vadd.f32 %v1406_v42, %v647_v36  ;;  %2444 = vmatpush1.bf16.msra.mxu0 %v6358_v35  ;;  %2475 = vmatprep.mubr.bf16.mxu0 %v1574_v34  ;;  %v6400_v34 = vld [vmem:[%s7404_s12 + $0x8] ss:$16 sps:$4 sm:$0xff]   ;;  %v6408_v35 = vld [vmem:[%s7404_s12 + $0x1ec] ss:$16 sps:$4 sm:$0xff]  }
 0x1cb   : > { %v1408_v47 = vpop.f32.mrf.mxu0  ;;  %2445 = vmatprep.subr.bf16.mxu0 %v6366_v40  ;;  %v6406_v41 = vld [vmem:[%s7404_s12 + $0x1e8] ss:$16 sps:$4 sm:$0xff]   ;;  %v6414_v42 = vld [vmem:[%s7404_s12 + $0x1cc] ss:$16 sps:$4 sm:$0xff]  }
 0x1cc   : > { %v1449_v48 = vpop.f32.mrf.mxu1  ;;  %v1454_v51 = vmax.f32 %v1446_v44, 0.0  ;;  %v1448_v53 = vadd.f32 %v1447_v43, %v1407_v45  ;;  %v6412_v47 = vld [vmem:[%s7404_s12 + $0x1c8] ss:$16 sps:$4 sm:$0xff]  }
 0x1cd   : > { %v1409_v54 = vpop.f32.mrf.mxu0  ;;  %v6420_v48 = vld [vmem:[%s7404_s12 + $0x1ac] ss:$16 sps:$4 sm:$0xff]  }
 0x1ce   : > { %v1450_v55 = vpop.f32.mrf.mxu1  ;;  %v1468_v56 = vrot.slane %v1454_v51, 4  ;;  %v1455_v57 = vmax.f32 %v1448_v53, 0.0  ;;  %2446 = vmatpush1.bf16.msra.mxu0 %v6364_v46 }
 0x1cf   : > { %2447 = vmatprep.subr.bf16.mxu0 %v6372_v50  ;;  %v6418_v55 = vld [vmem:[%s7404_s12 + $0x1a8] ss:$16 sps:$4 sm:$0xff]  }
 0x1d0   : > { %v1469_v60 = vadd.f32 %v1468_v56, %v1454_v51  ;;  %v1474_v61 = vrot.slane %v1455_v57, 4  ;;  %v6426_v56 = vld [vmem:[%s7404_s12 + $0x18c] ss:$16 sps:$4 sm:$0xff]  }
 0x1d2   : > { %v1470_v62 = vrot.slane %v1469_v60, 2  ;;  %v1475_v63 = vadd.f32 %v1474_v61, %v1455_v57  ;;  %2448 = vmatpush1.bf16.msra.mxu0 %v6370_v58  ;;  %v6424_v58 = vld [vmem:[%s7404_s12 + $0x188] ss:$16 sps:$4 sm:$0xff]   ;;  %v6438_v61 = vld [vmem:[%s7404_s12 + $0x14c] ss:$16 sps:$4 sm:$0xff]  }
 0x1d3   : > { %2449 = vmatprep.subr.bf16.mxu0 %v6378_v59  ;;  %v6432_v59 = vld [vmem:[%s7404_s12 + $0x16c] ss:$16 sps:$4 sm:$0xff]  }
 0x1d4   : > { %v1471_v2 = vadd.f32 %v1470_v62, %v1469_v60  ;;  %v1476_v3 = vrot.slane %v1475_v63, 2  ;;  %v6430_v60 = vld [vmem:[%s7404_s12 + $0x168] ss:$16 sps:$4 sm:$0xff]  }
 0x1d5   : > { %v6436_v62 = vld [vmem:[%s7404_s12 + $0x148] ss:$16 sps:$4 sm:$0xff]  }
 0x1d6   : > { %v1472_v4 = vrot.slane %v1471_v2, 1  ;;  %v1477_v5 = vadd.f32 %v1476_v3, %v1475_v63  ;;  %2450 = vmatpush1.bf16.msra.mxu0 %v6376_v0  ;;  %v6444_v63 = vld [vmem:[%s7404_s12 + $0x12c] ss:$16 sps:$4 sm:$0xff]   ;;  %v1544_v0 = vrot.slane %v7662_v28, %v7648_v14  ;;  %v6442_v3 = vld [vmem:[%s7404_s12 + $0x128] ss:$16 sps:$4 sm:$0xff]  }
 0x1d7   : > { %2451 = vmatprep.subr.bf16.mxu0 %v6384_v1 }
 0x1d8   : > { %v1473_v10 = vadd.f32 %v1472_v4, %v1471_v2  ;;  %v1478_v11 = vrot.slane %v1477_v5, 1  ;;  %v1548_v4 = vrot.slane %v7665_v30, %v7648_v14 }
 0x1da   : > { %v1483_v12 = vmul.f32 0.125, %v1473_v10  ;;  %v1479_v18 = vadd.f32 %v1478_v11, %v1477_v5  ;;  %2452 = vmatpush1.bf16.msra.mxu0 %v6382_v6  ;;  %v6450_v6 = vld [vmem:[%s7404_s12 + $0x10c] ss:$16 sps:$4 sm:$0xff]  }
 0x1db   : > { %2453 = vmatprep.subr.bf16.mxu0 %v6390_v7  ;;  %v1564_v7 = vrot.slane %v7662_v28, %v7651_v15 }
 0x1dc   : > { %v1487_v22 = vsub.f32 %v1454_v51, %v1483_v12  ;;  %v1484_v23 = vmul.f32 0.125, %v1479_v18  ;;  %v1568_v12 = vrot.slane %v7665_v30, %v7651_v15  ;;  %v6448_v18 = vld [vmem:[%s7404_s12 + $0x108] ss:$16 sps:$4 sm:$0xff]  }
 0x1de   : > { %v1491_v24 = vmul.f32 %v1487_v22, %v1487_v22  ;;  %v7686_v25 = vsub.f32 %v1455_v57, %v1484_v23  ;;  %2454 = vmatpush1.bf16.msra.mxu0 %v6388_v19 }
 0x1df   : > { %2455 = vmatprep.subr.bf16.mxu0 %v6396_v20 }
 0x1e0   : > { %v1505_v29 = vrot.slane %v1491_v24, 4  ;;  %v1492_v31 = vmul.f32 %v7686_v25, %v7686_v25 }
 0x1e2   : > { %v1506_v32 = vadd.f32 %v1505_v29, %v1491_v24  ;;  %v1511_v33 = vrot.slane %v1492_v31, 4  ;;  %2456 = vmatpush1.bf16.msra.mxu0 %v6394_v26  ;;  %v6451_v24 = vld [vmem:[%s7404_s12 + $0x2e8] ss:$16 sps:$4 sm:$0xff]   ;;  %v6459_v29 = vld [vmem:[%s7404_s12 + $0x2ac] ss:$16 sps:$4 sm:$0xff]  }
 0x1e3   : > { %2457 = vmatprep.subr.bf16.mxu0 %v6402_v27  ;;  %v6456_v27 = vld [vmem:[%s7404_s12 + $0x2cc] ss:$16 sps:$4 sm:$0xff]  }
 0x1e4   : > { %v1507_v36 = vrot.slane %v1506_v32, 2  ;;  %v1512_v37 = vadd.f32 %v1511_v33, %v1492_v31  ;;  %v6457_v31 = vld [vmem:[%s7404_s12 + $0x2a8] ss:$16 sps:$4 sm:$0xff]  }
 0x1e5   : > { %v6499_v33 = vld [vmem:[#allocation7 + $0x78] sm:$0xff]  }
 0x1e6   : > { %v1508_v38 = vadd.f32 %v1507_v36, %v1506_v32  ;;  %v1513_v40 = vrot.slane %v1512_v37, 2  ;;  %2458 = vmatpush1.bf16.msra.mxu0 %v6400_v34  ;;  %v6462_v32 = vld [vmem:[%s7404_s12 + $0x28c] ss:$16 sps:$4 sm:$0xff]   ;;  %v6502_v36 = vld [vmem:[#allocation7 + $0x30] sm:$0xff]  }
 0x1e7   : > { %2459 = vmatprep.subr.bf16.mxu0 %v6408_v35  ;;  %v6500_v34 = vld [vmem:[#allocation7 + $0x38] sm:$0xff]   ;;  %v6501_v35 = vld [vmem:[#allocation7 + $0x70] sm:$0xff]  }
 0x1e8   : > { %v1509_v43 = vrot.slane %v1508_v38, 1  ;;  %v1514_v44 = vadd.f32 %v1513_v40, %v1512_v37  ;;  %v6465_v37 = vld [vmem:[%s7404_s12 + $0x26c] ss:$16 sps:$4 sm:$0xff]   ;;  %v6463_v40 = vld [vmem:[%s7404_s12 + $0x268] ss:$16 sps:$4 sm:$0xff]  }
 0x1ea   : > { %v1510_v45 = vadd.f32 %v1509_v43, %v1508_v38  ;;  %v1515_v46 = vrot.slane %v1514_v44, 1  ;;  %2460 = vmatpush2.bf16.msra.mxu0 %v6406_v41  ;;  %v6503_v38 = vld [vmem:[#allocation7 + $0x68] sm:$0xff]   ;;  %v6505_v43 = vld [vmem:[#allocation7 + $0x60] sm:$0xff]  }
 0x1eb   : > { %2461 = vmatprep.subr.bf16.mxu0 %v6414_v42  ;;  %v6504_v41 = vld [vmem:[#allocation7 + $0x28] sm:$0xff]  }
 0x1ec   : > { %v1519_v50 = vmul.f32 0.125, %v1510_v45  ;;  %v1516_v51 = vadd.f32 %v1515_v46, %v1514_v44  ;;  %v6468_v42 = vld [vmem:[%s7404_s12 + $0x24c] ss:$16 sps:$4 sm:$0xff]   ;;  %v6466_v44 = vld [vmem:[%s7404_s12 + $0x248] ss:$16 sps:$4 sm:$0xff]   ;;  %v6506_v45 = vld [vmem:[#allocation7 + $0x20] sm:$0xff]  }
 0x1ed   : > { %v6471_v46 = vld [vmem:[%s7404_s12 + $0x22c] ss:$16 sps:$4 sm:$0xff]  }
 0x1ee   : > { %v1523_v53 = vadd.f32 1e-05, %v1519_v50  ;;  %v1520_v54 = vmul.f32 0.125, %v1516_v51  ;;  %2462 = vmatpush2.bf16.msra.mxu0 %v6412_v47  ;;  %v6507_v47 = vld [vmem:[#allocation7 + $0x58] sm:$0xff]  }
 0x1ef   : > { %2463 = vmatprep.subr.bf16.mxu0 %v6420_v48  ;;  %v6469_v48 = vld [vmem:[%s7404_s12 + $0x228] ss:$16 sps:$4 sm:$0xff]   ;;  %v6474_v51 = vld [vmem:[%s7404_s12 + $0x20c] ss:$16 sps:$4 sm:$0xff]  }
 0x1f0   : > { %6919 = vrsqrt.f32 %v1523_v53  ;;  %v1524_v57 = vadd.f32 1e-05, %v1520_v54  ;;  %v6508_v50 = vld [vmem:[#allocation7 + $0x18] sm:$0xff]   ;;  %v6509_v53 = vld [vmem:[#allocation7 + $0x50] sm:$0xff]  }
 0x1f1   : > { %v6472_v54 = vld [vmem:[%s7404_s12 + $0x208] ss:$16 sps:$4 sm:$0xff]  }
 0x1f2   : > { %6921 = vrsqrt.f32 %v1524_v57  ;;  %2464 = vmatpush2.bf16.msra.mxu0 %v6418_v55  ;;  %v6477_v55 = vld [vmem:[%s7404_s12 + $0x3ec] ss:$16 sps:$4 sm:$0xff]  }
 0x1f3   : > { %2465 = vmatprep.subr.bf16.mxu0 %v6426_v56  ;;  %v6475_v56 = vld [vmem:[%s7404_s12 + $0x3e8] ss:$16 sps:$4 sm:$0xff]   ;;  %v6480_v57 = vld [vmem:[%s7404_s12 + $0x3cc] ss:$16 sps:$4 sm:$0xff]  }
 0x1f6   : > { %2466 = vmatpush2.bf16.msra.mxu0 %v6424_v58  ;;  %v6478_v58 = vld [vmem:[%s7404_s12 + $0x3c8] ss:$16 sps:$4 sm:$0xff]  }
 0x1f7   : > { %2467 = vmatprep.subr.bf16.mxu0 %v6432_v59  ;;  %v6483_v59 = vld [vmem:[%s7404_s12 + $0x3ac] ss:$16 sps:$4 sm:$0xff]  }
 0x1fa   : > { %2468 = vmatpush2.bf16.msra.mxu0 %v6430_v60  ;;  %v6481_v60 = vld [vmem:[%s7404_s12 + $0x3a8] ss:$16 sps:$4 sm:$0xff]  }
 0x1fb   : > { %2469 = vmatprep.subr.bf16.mxu0 %v6438_v61  ;;  %v6486_v61 = vld [vmem:[%s7404_s12 + $0x38c] ss:$16 sps:$4 sm:$0xff]  }
 0x1fd   : > { %v6920_v1 = vpop.eup %6919 }
 0x1fe   : > { %v1531_v2 = vmul.f32 %v6920_v1, %v1487_v22  ;;  %2470 = vmatpush2.bf16.msra.mxu0 %v6436_v62  ;;  %v6484_v62 = vld [vmem:[%s7404_s12 + $0x388] ss:$16 sps:$4 sm:$0xff]   ;;  %v6492_v1 = vld [vmem:[%s7404_s12 + $0x34c] ss:$16 sps:$4 sm:$0xff]  }
 0x1ff   : > { %v6922_v5 = vpop.eup %6921  ;;  %2471 = vmatprep.subr.bf16.mxu0 %v6444_v63  ;;  %v6489_v63 = vld [vmem:[%s7404_s12 + $0x36c] ss:$16 sps:$4 sm:$0xff]  }
 0x200   : > { %v1551_v10 = vmul.f32 %v1544_v0, %v1531_v2  ;;  %v1532_v11 = vmul.f32 %v6922_v5, %v7686_v25  ;;  %v6454_v25 = vld [vmem:[%s7404_s12 + $0x2c8] ss:$16 sps:$4 sm:$0xff]   ;;  %v6498_v5 = vld [vmem:[%s7404_s12 + $0x30c] ss:$16 sps:$4 sm:$0xff]  }
 0x201   : > { %v6487_v0 = vld [vmem:[%s7404_s12 + $0x368] ss:$16 sps:$4 sm:$0xff]  }
 0x202   : > { %2472 = vmatpush2.bf16.msra.mxu0 %v6442_v3  ;;  %v1552_v19 = vmul.f32 %v1548_v4, %v1532_v11  ;;  %v1571_v20 = vadd.f32 %v1564_v7, %v1551_v10  ;;  %v6490_v2 = vld [vmem:[%s7404_s12 + $0x348] ss:$16 sps:$4 sm:$0xff]   ;;  %v6495_v3 = vld [vmem:[%s7404_s12 + $0x32c] ss:$16 sps:$4 sm:$0xff]   ;;  %v6510_v7 = vld [vmem:[#allocation7 + $0x10] sm:$0xff]  }
 0x203   : > { %2473 = vmatprep.subr.bf16.mxu0 %v6450_v6  ;;  %v6493_v4 = vld [vmem:[%s7404_s12 + $0x328] ss:$16 sps:$4 sm:$0xff]  }
 0x204   : > { %v1572_v22 = vadd.f32 %v1568_v12, %v1552_v19  ;;  %v7719_v26 = vpack.c.bf16 %v1571_v20, %v1571_v20  ;;  %v6496_v6 = vld [vmem:[%s7404_s12 + $0x308] ss:$16 sps:$4 sm:$0xff]   ;;  %v6513_v12 = vld [vmem:[#allocation7 + $0x40] sm:$0xff]  }
 0x205   : > { %v6511_v10 = vld [vmem:[#allocation7 + $0x48] sm:$0xff]   ;;  %v6515_v19 = vld [vmem:[#allocation7 + $0xf8] sm:$0xff]  }
 0x206   : > { %2474 = vmatpush2.bf16.msra.mxu0 %v6448_v18  ;;  %v1576_v23 = vpack.c.bf16 %v1572_v22, %v1572_v22  ;;  %v6512_v11 = vld [vmem:[#allocation7 + $0x8] sm:$0xff]   ;;  %v6514_v18 = vld [vmem:[#allocation7] sm:$0xff]   ;;  %v6516_v20 = vld [vmem:[#allocation7 + $0xb8] sm:$0xff]  }
 0x207   : > { %5951 = vmatprep.subr.bf16.mxu0 %v6499_v33  ;;  %v6517_v22 = vld [vmem:[#allocation7 + $0xf0] sm:$0xff]  }
 0x208   : > { %2434 = vmatprep.mubr.bf16.mxu1 %v1576_v23  ;;  %v6526_v33 = vld [vmem:[#allocation7 + $0x90] sm:$0xff]  }
 0x209   : > { %2476 = vmatmul.mubr.bf16.vlgmr.msra.gmra.mxu0 %v7672_v39  ;;  %2435 = vmatmul.mubr.bf16.vlgmr.msra.gmra.mxu1 %v7719_v26  ;;  %v6460_v39 = vld [vmem:[%s7404_s12 + $0x288] ss:$16 sps:$4 sm:$0xff]  }
 0x20a   : > { %2485 = vmatpush1.bf16.msra.mxu1 %v6451_v24  ;;  %2516 = vmatprep.mubr.bf16.mxu1 %v1576_v23  ;;  %v6518_v23 = vld [vmem:[#allocation7 + $0xb0] sm:$0xff]   ;;  %v6519_v24 = vld [vmem:[#allocation7 + $0xe8] sm:$0xff]  }
 0x20b   : > { %2486 = vmatprep.subr.bf16.mxu1 %v6456_v27  ;;  %5952 = vmatpush3.bf16.msra.mxu0 %v6500_v34  ;;  %v6520_v27 = vld [vmem:[#allocation7 + $0xa8] sm:$0xff]  }
 0x20c   : > { %5953 = vmatprep.subr.bf16.mxu0 %v6501_v35  ;;  %v6527_v34 = vld [vmem:[#allocation7 + $0xc8] sm:$0xff]   ;;  %v6530_v35 = vld [vmem:[%s7391_s29 + $0x4e4] ss:$16 sps:$4 sm:$0xff]  }
 0x20e   : > { %2487 = vmatpush1.bf16.msra.mxu1 %v6454_v25  ;;  %v6522_v25 = vld [vmem:[#allocation7 + $0xa0] sm:$0xff]  }
 0x20f   : > { %2488 = vmatprep.subr.bf16.mxu1 %v6459_v29  ;;  %5954 = vmatpush3.bf16.msra.mxu0 %v6502_v36  ;;  %v6523_v29 = vld [vmem:[#allocation7 + $0xd8] sm:$0xff]   ;;  %v6531_v36 = vld [vmem:[#allocation7 + $0x88] sm:$0xff]  }
 0x210   : > { %5955 = vmatprep.subr.bf16.mxu0 %v6503_v38  ;;  %v6532_v38 = vld [vmem:[#allocation7 + $0xc0] sm:$0xff]  }
 0x212   : > { %2489 = vmatpush1.bf16.msra.mxu1 %v6457_v31  ;;  %v6524_v31 = vld [vmem:[#allocation7 + $0x98] sm:$0xff]  }
 0x213   : > { %2490 = vmatprep.subr.bf16.mxu1 %v6462_v32  ;;  %5956 = vmatpush3.bf16.msra.mxu0 %v6504_v41  ;;  %v6525_v32 = vld [vmem:[#allocation7 + $0xd0] sm:$0xff]   ;;  %v6536_v41 = vld [vmem:[#allocation7 + $0x80] sm:$0xff]  }
 0x214   : > { %5957 = vmatprep.subr.bf16.mxu0 %v6505_v43  ;;  %v6542_v43 = vld [vmem:[%s7391_s29 + $0x6e4] ss:$16 sps:$4 sm:$0xff]  }
 0x216   : > { %2491 = vmatpush1.bf16.msra.mxu1 %v6460_v39 }
 0x217   : > { %2492 = vmatprep.subr.bf16.mxu1 %v6465_v37  ;;  %5958 = vmatpush3.bf16.msra.mxu0 %v6506_v45 }
 0x218   : > { %5959 = vmatprep.subr.bf16.mxu0 %v6507_v47 }
 0x21a   : > { %2493 = vmatpush1.bf16.msra.mxu1 %v6463_v40 }
 0x21b   : > { %2494 = vmatprep.subr.bf16.mxu1 %v6468_v42  ;;  %5960 = vmatpush3.bf16.msra.mxu0 %v6508_v50 }
 0x21c   : > { %5961 = vmatprep.subr.bf16.mxu0 %v6509_v53 }
 0x21e   : > { %2495 = vmatpush1.bf16.msra.mxu1 %v6466_v44  ;;  %v7758_v44 = vsub.s32 3, %v7626_v13 }
 0x21f   : > { %2496 = vmatprep.subr.bf16.mxu1 %v6471_v46  ;;  %5962 = vmatpush3.bf16.msra.mxu0 %v6510_v7  ;;  %v6557_v7 = vld [vmem:[%s7391_s29 + $0x444] ss:$16 sps:$4 sm:$0xff]  }
 0x220   : > { %5963 = vmatprep.subr.bf16.mxu0 %v6511_v10  ;;  %v1708_v45 = vrot.slane %v7631_v16, %v7758_v44  ;;  %v1712_v46 = vrot.slane %v7640_v21, %v7758_v44  ;;  %v6555_v10 = vld [vmem:[%s7391_s29 + $0x440] ss:$16 sps:$4 sm:$0xff]  }
 0x222   : > { %2497 = vmatpush1.bf16.msra.mxu1 %v6469_v48 }
 0x223   : > { %2498 = vmatprep.subr.bf16.mxu1 %v6474_v51  ;;  %5964 = vmatpush3.bf16.msra.mxu0 %v6512_v11  ;;  %v6563_v11 = vld [vmem:[%s7391_s29 + $0x424] ss:$16 sps:$4 sm:$0xff]  }
 0x224   : > { %5965 = vmatprep.subr.bf16.mxu0 %v6513_v12  ;;  %v6561_v12 = vld [vmem:[%s7391_s29 + $0x420] ss:$16 sps:$4 sm:$0xff]  }
 0x226   : > { %2499 = vmatpush1.bf16.msra.mxu1 %v6472_v54 }
 0x227   : > { %2500 = vmatprep.subr.bf16.mxu1 %v6477_v55  ;;  %5966 = vmatpush3.bf16.msra.mxu0 %v6514_v18  ;;  %v6569_v18 = vld [vmem:[%s7391_s29 + $0x404] ss:$16 sps:$4 sm:$0xff]  }
 0x228   : > { %3606 = vmatprep.subr.bf16.mxu0 %v6530_v35  ;;  %v6603_v35 = vld [vmem:[%s7391_s29 + $0x540] ss:$16 sps:$4 sm:$0xff]  }
 0x22a   : > { %2501 = vmatpush2.bf16.msra.mxu1 %v6475_v56 }
 0x22b   : > { %2502 = vmatprep.subr.bf16.mxu1 %v6480_v57 }
 0x22e   : > { %2503 = vmatpush2.bf16.msra.mxu1 %v6478_v58 }
 0x22f   : > { %2504 = vmatprep.subr.bf16.mxu1 %v6483_v59 }
 0x232   : > { %2505 = vmatpush2.bf16.msra.mxu1 %v6481_v60 }
 0x233   : > { %2506 = vmatprep.subr.bf16.mxu1 %v6486_v61  ;;  %v6528_v61 = vld [vmem:[%s7391_s29 + $0x4e0] ss:$16 sps:$4 sm:$0xff]  }
 0x236   : > { %2507 = vmatpush2.bf16.msra.mxu1 %v6484_v62 }
 0x237   : > { %2508 = vmatprep.subr.bf16.mxu1 %v6489_v63  ;;  %v6535_v63 = vld [vmem:[%s7391_s29 + $0x4c4] ss:$16 sps:$4 sm:$0xff]  }
 0x23a   : > { %2509 = vmatpush2.bf16.msra.mxu1 %v6487_v0  ;;  %v6533_v0 = vld [vmem:[%s7391_s29 + $0x4c0] ss:$16 sps:$4 sm:$0xff]  }
 0x23b   : > { %2510 = vmatprep.subr.bf16.mxu1 %v6492_v1  ;;  %v6539_v1 = vld [vmem:[%s7391_s29 + $0x4a4] ss:$16 sps:$4 sm:$0xff]  }
 0x23e   : > { %2511 = vmatpush2.bf16.msra.mxu1 %v6490_v2  ;;  %v6537_v2 = vld [vmem:[%s7391_s29 + $0x4a0] ss:$16 sps:$4 sm:$0xff]  }
 0x23f   : > { %2512 = vmatprep.subr.bf16.mxu1 %v6495_v3  ;;  %v6545_v3 = vld [vmem:[%s7391_s29 + $0x484] ss:$16 sps:$4 sm:$0xff]  }
 0x242   : > { %2513 = vmatpush2.bf16.msra.mxu1 %v6493_v4  ;;  %v6543_v4 = vld [vmem:[%s7391_s29 + $0x480] ss:$16 sps:$4 sm:$0xff]  }
 0x243   : > { %2514 = vmatprep.subr.bf16.mxu1 %v6498_v5  ;;  %v6551_v5 = vld [vmem:[%s7391_s29 + $0x464] ss:$16 sps:$4 sm:$0xff]  }
 0x246   : > { %2515 = vmatpush2.bf16.msra.mxu1 %v6496_v6  ;;  %v6549_v6 = vld [vmem:[%s7391_s29 + $0x460] ss:$16 sps:$4 sm:$0xff]  }
 0x247   : > { %5973 = vmatprep.subr.bf16.mxu1 %v6515_v19  ;;  %v6567_v19 = vld [vmem:[%s7391_s29 + $0x400] ss:$16 sps:$4 sm:$0xff]  }
 0x249   : > { %2517 = vmatmul.mubr.bf16.vlgmr.msra.gmra.mxu1 %v7719_v26  ;;  %v6521_v26 = vld [vmem:[#allocation7 + $0xe0] sm:$0xff]  }
 0x24a   : > { %5974 = vmatpush3.bf16.msra.mxu1 %v6516_v20  ;;  %v6575_v20 = vld [vmem:[%s7391_s29 + $0x5e4] ss:$16 sps:$4 sm:$0xff]  }
 0x24b   : > { %5975 = vmatprep.subr.bf16.mxu1 %v6517_v22  ;;  %v6573_v22 = vld [vmem:[%s7391_s29 + $0x5e0] ss:$16 sps:$4 sm:$0xff]  }
 0x24e   : > { %5976 = vmatpush3.bf16.msra.mxu1 %v6518_v23  ;;  %v6581_v23 = vld [vmem:[%s7391_s29 + $0x5c4] ss:$16 sps:$4 sm:$0xff]  }
 0x24f   : > { %5977 = vmatprep.subr.bf16.mxu1 %v6519_v24  ;;  %v6579_v24 = vld [vmem:[%s7391_s29 + $0x5c0] ss:$16 sps:$4 sm:$0xff]  }
 0x252   : > { %5978 = vmatpush3.bf16.msra.mxu1 %v6520_v27  ;;  %v6587_v27 = vld [vmem:[%s7391_s29 + $0x5a4] ss:$16 sps:$4 sm:$0xff]  }
 0x253   : > { %5979 = vmatprep.subr.bf16.mxu1 %v6521_v26  ;;  %v6585_v26 = vld [vmem:[%s7391_s29 + $0x5a0] ss:$16 sps:$4 sm:$0xff]  }
 0x256   : > { %5980 = vmatpush3.bf16.msra.mxu1 %v6522_v25  ;;  %v6593_v25 = vld [vmem:[%s7391_s29 + $0x584] ss:$16 sps:$4 sm:$0xff]  }
 0x257   : > { %5981 = vmatprep.subr.bf16.mxu1 %v6523_v29  ;;  %v6591_v29 = vld [vmem:[%s7391_s29 + $0x580] ss:$16 sps:$4 sm:$0xff]  }
 0x25a   : > { %5982 = vmatpush3.bf16.msra.mxu1 %v6524_v31  ;;  %v6599_v31 = vld [vmem:[%s7391_s29 + $0x564] ss:$16 sps:$4 sm:$0xff]  }
 0x25b   : > { %5983 = vmatprep.subr.bf16.mxu1 %v6525_v32  ;;  %v6597_v32 = vld [vmem:[%s7391_s29 + $0x560] ss:$16 sps:$4 sm:$0xff]  }
 0x25e   : > { %5984 = vmatpush3.bf16.msra.mxu1 %v6526_v33  ;;  %v6605_v33 = vld [vmem:[%s7391_s29 + $0x544] ss:$16 sps:$4 sm:$0xff]  }
 0x25f   : > { %5985 = vmatprep.subr.bf16.mxu1 %v6527_v34  ;;  %v1716_v34 = vrot.slane %v7662_v28, %v7758_v44 }
 0x262   : > { %5986 = vmatpush3.bf16.msra.mxu1 %v6531_v36  ;;  %v1720_v36 = vrot.slane %v7665_v30, %v7758_v44  ;;  %v6615_v30 = vld [vmem:[%s7391_s29 + $0x500] ss:$16 sps:$4 sm:$0xff]  }
 0x263   : > { %5987 = vmatprep.subr.bf16.mxu1 %v6532_v38  ;;  %v6609_v38 = vld [vmem:[%s7391_s29 + $0x520] ss:$16 sps:$4 sm:$0xff]  }
 0x266   : > { %5988 = vmatpush3.bf16.msra.mxu1 %v6536_v41  ;;  %v6617_v41 = vld [vmem:[%s7391_s29 + $0x504] ss:$16 sps:$4 sm:$0xff]  }
 0x267   : > { %3647 = vmatprep.subr.bf16.mxu1 %v6542_v43 }
 0x289   : > { %v2395_v39 = vpop.f32.mrf.mxu0 }
 0x28a   : > { %v2396_v47 = vadd.f32 %v2395_v39, %v1708_v45  ;;  %v6611_v39 = vld [vmem:[%s7391_s29 + $0x524] ss:$16 sps:$4 sm:$0xff]  }
 0x28b   : > { %v2397_v37 = vpop.f32.mrf.mxu0 }
 0x28c   : > { %v2398_v50 = vadd.f32 %v2397_v37, %v1712_v46 }
 0x28d   : > { %v2399_v40 = vpop.f32.mrf.mxu0 }
 0x28f   : > { %v2400_v42 = vpop.f32.mrf.mxu0 }
 0x2c9   : > { %v7767_v48 = vpop.f32.mrf.mxu0  ;;  %v2436_v13 = vpop.f32.mrf.mxu1 }
 0x2ca   : > { %v2437_v51 = vadd.f32 %v2436_v13, %v2396_v47  ;;  %v2478_v37 = vadd.f32 %v7767_v48, %v1716_v34  ;;  %v6626_v48 = vld [vmem:[%s7391_s29 + $0x4ec] ss:$16 sps:$4 sm:$0xff]   ;;  %v6675_v34 = vld [vmem:[%s7391_s29 + $0x5c8] ss:$16 sps:$4 sm:$0xff]  }
 0x2cb   : > { %v7774_v16 = vpop.f32.mrf.mxu0  ;;  %v2438_v53 = vpop.f32.mrf.mxu1 }
 0x2cc   : > { %2525 = vst [vmem:[%s7772_s28] sm:$0xff] %v2437_v51  ;;  %v2439_v21 = vadd.f32 %v2438_v53, %v2398_v50  ;;  %v2529_v54 = vmax.f32 %v2437_v51, 0.0  ;;  %v2480_v28 = vadd.f32 %v7774_v16, %v1720_v36  ;;  %v6540_v16 = vld [vmem:[%s7391_s29 + $0x6e0] ss:$16 sps:$4 sm:$0xff]   ;;  %v6624_v53 = vld [vmem:[%s7391_s29 + $0x4e8] ss:$16 sps:$4 sm:$0xff]  }
 0x2cd   : > { %v2481_v55 = vpop.f32.mrf.mxu0  ;;  %v2440_v56 = vpop.f32.mrf.mxu1  ;;  %v6600_v36 = vld [vmem:[%s7391_s29 + $0x7a0] ss:$16 sps:$4 sm:$0xff]  }
 0x2ce   : > { %2526 = vst [vmem:[%s7772_s28 + $0x8] sm:$0xff] %v2439_v21  ;;  %v2530_v57 = vmax.f32 %v2439_v21, 0.0  ;;  %v2533_v62 = vpack.c.bf16 %v2529_v54, %v2529_v54  ;;  %v6548_v54 = vld [vmem:[%s7391_s29 + $0x6c4] ss:$16 sps:$4 sm:$0xff]   ;;  %v6632_v55 = vld [vmem:[%s7391_s29 + $0x4cc] ss:$16 sps:$4 sm:$0xff]  }
 0x2cf   : > { %v2482_v58 = vpop.f32.mrf.mxu0  ;;  %v2441_v59 = vpop.f32.mrf.mxu1  ;;  %v6546_v56 = vld [vmem:[%s7391_s29 + $0x6c0] ss:$16 sps:$4 sm:$0xff]  }
 0x2d0   : > { %v2534_v60 = vpack.c.bf16 %v2530_v57, %v2530_v57  ;;  %v6630_v57 = vld [vmem:[%s7391_s29 + $0x4c8] ss:$16 sps:$4 sm:$0xff]   ;;  %v6554_v58 = vld [vmem:[%s7391_s29 + $0x6a4] ss:$16 sps:$4 sm:$0xff]   ;;  %v6635_v59 = vld [vmem:[%s7391_s29 + $0x4ac] ss:$16 sps:$4 sm:$0xff]  }
 0x2d2   : > { %2767 = vmatprep.mubr.bf16.mxu0 %v2534_v60  ;;  %v6552_v60 = vld [vmem:[%s7391_s29 + $0x6a0] ss:$16 sps:$4 sm:$0xff]  }
 0x2d3   : > { %2768 = vmatmul.mubr.bf16.vlgmr.msra.gmra.mxu0 %v2533_v62  ;;  %v6560_v62 = vld [vmem:[%s7391_s29 + $0x684] ss:$16 sps:$4 sm:$0xff]  }
 0x2d4   : > { %3607 = vmatpush1.bf16.msra.mxu0 %v6528_v61  ;;  %3638 = vmatprep.mubr.bf16.mxu0 %v7461_v49  ;;  %v6633_v61 = vld [vmem:[%s7391_s29 + $0x4a8] ss:$16 sps:$4 sm:$0xff]  }
 0x2d5   : > { %3608 = vmatprep.subr.bf16.mxu0 %v6535_v63  ;;  %v6641_v63 = vld [vmem:[%s7391_s29 + $0x48c] ss:$16 sps:$4 sm:$0xff]  }
 0x2d8   : > { %3609 = vmatpush1.bf16.msra.mxu0 %v6533_v0  ;;  %v6558_v0 = vld [vmem:[%s7391_s29 + $0x680] ss:$16 sps:$4 sm:$0xff]  }
 0x2d9   : > { %3610 = vmatprep.subr.bf16.mxu0 %v6539_v1  ;;  %v6639_v1 = vld [vmem:[%s7391_s29 + $0x488] ss:$16 sps:$4 sm:$0xff]  }
 0x2dc   : > { %3611 = vmatpush1.bf16.msra.mxu0 %v6537_v2  ;;  %v6647_v2 = vld [vmem:[%s7391_s29 + $0x46c] ss:$16 sps:$4 sm:$0xff]  }
 0x2dd   : > { %3612 = vmatprep.subr.bf16.mxu0 %v6545_v3  ;;  %v6564_v3 = vld [vmem:[%s7391_s29 + $0x660] ss:$16 sps:$4 sm:$0xff]  }
 0x2e0   : > { %3613 = vmatpush1.bf16.msra.mxu0 %v6543_v4  ;;  %v6645_v4 = vld [vmem:[%s7391_s29 + $0x468] ss:$16 sps:$4 sm:$0xff]  }
 0x2e1   : > { %3614 = vmatprep.subr.bf16.mxu0 %v6551_v5  ;;  %v6572_v5 = vld [vmem:[%s7391_s29 + $0x644] ss:$16 sps:$4 sm:$0xff]  }
 0x2e4   : > { %3615 = vmatpush1.bf16.msra.mxu0 %v6549_v6  ;;  %v6653_v6 = vld [vmem:[%s7391_s29 + $0x44c] ss:$16 sps:$4 sm:$0xff]  }
 0x2e5   : > { %3616 = vmatprep.subr.bf16.mxu0 %v6557_v7  ;;  %v6570_v7 = vld [vmem:[%s7391_s29 + $0x640] ss:$16 sps:$4 sm:$0xff]  }
 0x2e8   : > { %3617 = vmatpush1.bf16.msra.mxu0 %v6555_v10  ;;  %v6651_v10 = vld [vmem:[%s7391_s29 + $0x448] ss:$16 sps:$4 sm:$0xff]  }
 0x2e9   : > { %3618 = vmatprep.subr.bf16.mxu0 %v6563_v11  ;;  %v6578_v11 = vld [vmem:[%s7391_s29 + $0x624] ss:$16 sps:$4 sm:$0xff]  }
 0x2ec   : > { %3619 = vmatpush1.bf16.msra.mxu0 %v6561_v12  ;;  %v6659_v12 = vld [vmem:[%s7391_s29 + $0x42c] ss:$16 sps:$4 sm:$0xff]  }
 0x2ed   : > { %3620 = vmatprep.subr.bf16.mxu0 %v6569_v18  ;;  %v6576_v18 = vld [vmem:[%s7391_s29 + $0x620] ss:$16 sps:$4 sm:$0xff]  }
 0x2f0   : > { %3621 = vmatpush1.bf16.msra.mxu0 %v6567_v19  ;;  %v6657_v19 = vld [vmem:[%s7391_s29 + $0x428] ss:$16 sps:$4 sm:$0xff]  }
 0x2f1   : > { %3622 = vmatprep.subr.bf16.mxu0 %v6575_v20  ;;  %v6584_v20 = vld [vmem:[%s7391_s29 + $0x604] ss:$16 sps:$4 sm:$0xff]  }
 0x2f4   : > { %3623 = vmatpush2.bf16.msra.mxu0 %v6573_v22  ;;  %v6665_v22 = vld [vmem:[%s7391_s29 + $0x40c] ss:$16 sps:$4 sm:$0xff]  }
 0x2f5   : > { %3624 = vmatprep.subr.bf16.mxu0 %v6581_v23  ;;  %v6582_v23 = vld [vmem:[%s7391_s29 + $0x600] ss:$16 sps:$4 sm:$0xff]  }
 0x2f8   : > { %3625 = vmatpush2.bf16.msra.mxu0 %v6579_v24  ;;  %v6663_v24 = vld [vmem:[%s7391_s29 + $0x408] ss:$16 sps:$4 sm:$0xff]  }
 0x2f9   : > { %3626 = vmatprep.subr.bf16.mxu0 %v6587_v27  ;;  %v6590_v27 = vld [vmem:[%s7391_s29 + $0x7e4] ss:$16 sps:$4 sm:$0xff]  }
 0x2fc   : > { %3627 = vmatpush2.bf16.msra.mxu0 %v6585_v26  ;;  %v6671_v26 = vld [vmem:[%s7391_s29 + $0x5ec] ss:$16 sps:$4 sm:$0xff]  }
 0x2fd   : > { %3628 = vmatprep.subr.bf16.mxu0 %v6593_v25  ;;  %v6588_v25 = vld [vmem:[%s7391_s29 + $0x7e0] ss:$16 sps:$4 sm:$0xff]  }
 0x300   : > { %3629 = vmatpush2.bf16.msra.mxu0 %v6591_v29  ;;  %v6669_v29 = vld [vmem:[%s7391_s29 + $0x5e8] ss:$16 sps:$4 sm:$0xff]  }
 0x301   : > { %3630 = vmatprep.subr.bf16.mxu0 %v6599_v31  ;;  %v6596_v31 = vld [vmem:[%s7391_s29 + $0x7c4] ss:$16 sps:$4 sm:$0xff]  }
 0x304   : > { %3631 = vmatpush2.bf16.msra.mxu0 %v6597_v32  ;;  %v6677_v32 = vld [vmem:[%s7391_s29 + $0x5cc] ss:$16 sps:$4 sm:$0xff]  }
 0x305   : > { %3632 = vmatprep.subr.bf16.mxu0 %v6605_v33  ;;  %v6594_v33 = vld [vmem:[%s7391_s29 + $0x7c0] ss:$16 sps:$4 sm:$0xff]  }
 0x308   : > { %3633 = vmatpush2.bf16.msra.mxu0 %v6603_v35  ;;  %v6602_v35 = vld [vmem:[%s7391_s29 + $0x7a4] ss:$16 sps:$4 sm:$0xff]  }
 0x309   : > { %v2518_v40 = vpop.f32.mrf.mxu1  ;;  %3634 = vmatprep.subr.bf16.mxu0 %v6611_v39  ;;  %v6683_v39 = vld [vmem:[%s7391_s29 + $0x5ac] ss:$16 sps:$4 sm:$0xff]  }
 0x30a   : > { %v2519_v42 = vadd.f32 %v2518_v40, %v2478_v37  ;;  %v6681_v37 = vld [vmem:[%s7391_s29 + $0x5a8] ss:$16 sps:$4 sm:$0xff]   ;;  %v6689_v40 = vld [vmem:[%s7391_s29 + $0x58c] ss:$16 sps:$4 sm:$0xff]  }
 0x30b   : > { %v2520_v43 = vpop.f32.mrf.mxu1 }
 0x30c   : > { %2527 = vst [vmem:[%s7772_s28 + $0x10] sm:$0xff] %v2519_v42  ;;  %v2521_v45 = vadd.f32 %v2520_v43, %v2480_v28  ;;  %3635 = vmatpush2.bf16.msra.mxu0 %v6609_v38  ;;  %v2531_v46 = vmax.f32 %v2519_v42, 0.0  ;;  %v6608_v38 = vld [vmem:[%s7391_s29 + $0x784] ss:$16 sps:$4 sm:$0xff]   ;;  %v6687_v28 = vld [vmem:[%s7391_s29 + $0x588] ss:$16 sps:$4 sm:$0xff]  }
 0x30d   : > { %v2522_v47 = vpop.f32.mrf.mxu1  ;;  %3636 = vmatprep.subr.bf16.mxu0 %v6617_v41  ;;  %v6606_v41 = vld [vmem:[%s7391_s29 + $0x780] ss:$16 sps:$4 sm:$0xff]   ;;  %v6614_v42 = vld [vmem:[%s7391_s29 + $0x764] ss:$16 sps:$4 sm:$0xff]   ;;  %v6695_v43 = vld [vmem:[%s7391_s29 + $0x56c] ss:$16 sps:$4 sm:$0xff]  }
 0x30e   : > { %2528 = vst [vmem:[%s7772_s28 + $0x18] sm:$0xff] %v2521_v45  ;;  %v2532_v13 = vmax.f32 %v2521_v45, 0.0  ;;  %v2535_v21 = vpack.c.bf16 %v2531_v46, %v2531_v46  ;;  %v6612_v45 = vld [vmem:[%s7391_s29 + $0x760] ss:$16 sps:$4 sm:$0xff]   ;;  %v6620_v46 = vld [vmem:[%s7391_s29 + $0x744] ss:$16 sps:$4 sm:$0xff]  }
 0x30f   : > { %v2523_v50 = vpop.f32.mrf.mxu1  ;;  %v6701_v47 = vld [vmem:[%s7391_s29 + $0x54c] ss:$16 sps:$4 sm:$0xff]  }
 0x310   : > { %v2536_v51 = vpack.c.bf16 %v2532_v13, %v2532_v13  ;;  %3637 = vmatpush2.bf16.msra.mxu0 %v6615_v30  ;;  %v6693_v30 = vld [vmem:[%s7391_s29 + $0x568] ss:$16 sps:$4 sm:$0xff]   ;;  %v6623_v50 = vld [vmem:[%s7391_s29 + $0x724] ss:$16 sps:$4 sm:$0xff]  }
 0x311   : > { %3688 = vmatprep.subr.bf16.mxu0 %v6626_v48  ;;  %v6618_v48 = vld [vmem:[%s7391_s29 + $0x740] ss:$16 sps:$4 sm:$0xff]   ;;  %v6699_v13 = vld [vmem:[%s7391_s29 + $0x548] ss:$16 sps:$4 sm:$0xff]  }
 0x312   : > { %2807 = vmatprep.mubr.bf16.mxu1 %v2536_v51  ;;  %v6707_v51 = vld [vmem:[%s7391_s29 + $0x52c] ss:$16 sps:$4 sm:$0xff]  }
 0x313   : > { %2808 = vmatmul.mubr.bf16.vlgmr.msra.gmra.mxu1 %v2535_v21  ;;  %3639 = vmatmul.mubr.bf16.vlgmr.msra.gmra.mxu0 %v7494_v8  ;;  %v6629_v21 = vld [vmem:[%s7391_s29 + $0x704] ss:$16 sps:$4 sm:$0xff]  }
 0x314   : > { %3648 = vmatpush1.bf16.msra.mxu1 %v6540_v16  ;;  %3689 = vmatpush1.bf16.msra.mxu0 %v6624_v53  ;;  %v6621_v16 = vld [vmem:[%s7391_s29 + $0x720] ss:$16 sps:$4 sm:$0xff]   ;;  %v6705_v53 = vld [vmem:[%s7391_s29 + $0x528] ss:$16 sps:$4 sm:$0xff]  }
 0x315   : > { %3649 = vmatprep.subr.bf16.mxu1 %v6548_v54  ;;  %3690 = vmatprep.subr.bf16.mxu0 %v6632_v55  ;;  %v6713_v54 = vld [vmem:[%s7391_s29 + $0x50c] ss:$16 sps:$4 sm:$0xff]   ;;  %v6627_v55 = vld [vmem:[%s7391_s29 + $0x700] ss:$16 sps:$4 sm:$0xff]  }
 0x316   : > { %3679 = vmatprep.mubr.bf16.mxu1 %v7467_v52  ;;  %3720 = vmatprep.mubr.bf16.mxu0 %v7461_v49  ;;  %v6566_v49 = vld [vmem:[%s7391_s29 + $0x664] ss:$16 sps:$4 sm:$0xff]  }
 0x318   : > { %3650 = vmatpush1.bf16.msra.mxu1 %v6546_v56  ;;  %3691 = vmatpush1.bf16.msra.mxu0 %v6630_v57  ;;  %v6711_v56 = vld [vmem:[%s7391_s29 + $0x508] ss:$16 sps:$4 sm:$0xff]   ;;  %v6638_v57 = vld [vmem:[%s7391_s29 + $0x6ec] ss:$16 sps:$4 sm:$0xff]  }
 0x319   : > { %3651 = vmatprep.subr.bf16.mxu1 %v6554_v58  ;;  %3692 = vmatprep.subr.bf16.mxu0 %v6635_v59  ;;  %v6636_v58 = vld [vmem:[%s7391_s29 + $0x6e8] ss:$16 sps:$4 sm:$0xff]   ;;  %v6644_v59 = vld [vmem:[%s7391_s29 + $0x6cc] ss:$16 sps:$4 sm:$0xff]  }
 0x31c   : > { %3652 = vmatpush1.bf16.msra.mxu1 %v6552_v60  ;;  %3693 = vmatpush1.bf16.msra.mxu0 %v6633_v61  ;;  %v6642_v60 = vld [vmem:[%s7391_s29 + $0x6c8] ss:$16 sps:$4 sm:$0xff]   ;;  %v6650_v61 = vld [vmem:[%s7391_s29 + $0x6ac] ss:$16 sps:$4 sm:$0xff]  }
 0x31d   : > { %3653 = vmatprep.subr.bf16.mxu1 %v6560_v62  ;;  %3694 = vmatprep.subr.bf16.mxu0 %v6641_v63  ;;  %v6648_v62 = vld [vmem:[%s7391_s29 + $0x6a8] ss:$16 sps:$4 sm:$0xff]   ;;  %v6656_v63 = vld [vmem:[%s7391_s29 + $0x68c] ss:$16 sps:$4 sm:$0xff]  }
 0x320   : > { %3654 = vmatpush1.bf16.msra.mxu1 %v6558_v0  ;;  %3695 = vmatpush1.bf16.msra.mxu0 %v6639_v1  ;;  %v6723_v0 = vld [vmem:[%s7404_s12 + $0x4e0] ss:$16 sps:$4 sm:$0xff]   ;;  %v6725_v1 = vld [vmem:[%s7404_s12 + $0x4e4] ss:$16 sps:$4 sm:$0xff]  }
 0x321   : > { %3655 = vmatprep.subr.bf16.mxu1 %v6566_v49  ;;  %3696 = vmatprep.subr.bf16.mxu0 %v6647_v2  ;;  %v6654_v49 = vld [vmem:[%s7391_s29 + $0x688] ss:$16 sps:$4 sm:$0xff]   ;;  %v6668_v2 = vld [vmem:[%s7391_s29 + $0x64c] ss:$16 sps:$4 sm:$0xff]  }
 0x324   : > { %3656 = vmatpush1.bf16.msra.mxu1 %v6564_v3  ;;  %3697 = vmatpush1.bf16.msra.mxu0 %v6645_v4  ;;  %v6666_v3 = vld [vmem:[%s7391_s29 + $0x648] ss:$16 sps:$4 sm:$0xff]   ;;  %v6674_v4 = vld [vmem:[%s7391_s29 + $0x62c] ss:$16 sps:$4 sm:$0xff]  }
 0x325   : > { %3657 = vmatprep.subr.bf16.mxu1 %v6572_v5  ;;  %3698 = vmatprep.subr.bf16.mxu0 %v6653_v6  ;;  %v6672_v5 = vld [vmem:[%s7391_s29 + $0x628] ss:$16 sps:$4 sm:$0xff]   ;;  %v6680_v6 = vld [vmem:[%s7391_s29 + $0x60c] ss:$16 sps:$4 sm:$0xff]  }
 0x328   : > { %3658 = vmatpush1.bf16.msra.mxu1 %v6570_v7  ;;  %3699 = vmatpush1.bf16.msra.mxu0 %v6651_v10  ;;  %v6678_v7 = vld [vmem:[%s7391_s29 + $0x608] ss:$16 sps:$4 sm:$0xff]   ;;  %v6686_v10 = vld [vmem:[%s7391_s29 + $0x7ec] ss:$16 sps:$4 sm:$0xff]  }
 0x329   : > { %3659 = vmatprep.subr.bf16.mxu1 %v6578_v11  ;;  %3700 = vmatprep.subr.bf16.mxu0 %v6659_v12  ;;  %v6684_v11 = vld [vmem:[%s7391_s29 + $0x7e8] ss:$16 sps:$4 sm:$0xff]   ;;  %v6692_v12 = vld [vmem:[%s7391_s29 + $0x7cc] ss:$16 sps:$4 sm:$0xff]  }
 0x32c   : > { %3660 = vmatpush1.bf16.msra.mxu1 %v6576_v18  ;;  %3701 = vmatpush1.bf16.msra.mxu0 %v6657_v19  ;;  %v6690_v18 = vld [vmem:[%s7391_s29 + $0x7c8] ss:$16 sps:$4 sm:$0xff]   ;;  %v6698_v19 = vld [vmem:[%s7391_s29 + $0x7ac] ss:$16 sps:$4 sm:$0xff]  }
 0x32d   : > { %3661 = vmatprep.subr.bf16.mxu1 %v6584_v20  ;;  %3702 = vmatprep.subr.bf16.mxu0 %v6665_v22  ;;  %v6696_v20 = vld [vmem:[%s7391_s29 + $0x7a8] ss:$16 sps:$4 sm:$0xff]   ;;  %v6704_v22 = vld [vmem:[%s7391_s29 + $0x78c] ss:$16 sps:$4 sm:$0xff]  }
 0x330   : > { %3662 = vmatpush1.bf16.msra.mxu1 %v6582_v23  ;;  %3703 = vmatpush1.bf16.msra.mxu0 %v6663_v24  ;;  %v6702_v23 = vld [vmem:[%s7391_s29 + $0x788] ss:$16 sps:$4 sm:$0xff]   ;;  %v6710_v24 = vld [vmem:[%s7391_s29 + $0x76c] ss:$16 sps:$4 sm:$0xff]  }
 0x331   : > { %3663 = vmatprep.subr.bf16.mxu1 %v6590_v27  ;;  %3704 = vmatprep.subr.bf16.mxu0 %v6671_v26  ;;  %v6708_v27 = vld [vmem:[%s7391_s29 + $0x768] ss:$16 sps:$4 sm:$0xff]   ;;  %v6716_v26 = vld [vmem:[%s7391_s29 + $0x74c] ss:$16 sps:$4 sm:$0xff]  }
 0x334   : > { %3664 = vmatpush2.bf16.msra.mxu1 %v6588_v25  ;;  %3705 = vmatpush2.bf16.msra.mxu0 %v6669_v29  ;;  %v6714_v25 = vld [vmem:[%s7391_s29 + $0x748] ss:$16 sps:$4 sm:$0xff]   ;;  %v6719_v29 = vld [vmem:[%s7391_s29 + $0x72c] ss:$16 sps:$4 sm:$0xff]  }
 0x335   : > { %3665 = vmatprep.subr.bf16.mxu1 %v6596_v31  ;;  %3706 = vmatprep.subr.bf16.mxu0 %v6677_v32  ;;  %v6717_v31 = vld [vmem:[%s7391_s29 + $0x728] ss:$16 sps:$4 sm:$0xff]   ;;  %v6722_v32 = vld [vmem:[%s7391_s29 + $0x70c] ss:$16 sps:$4 sm:$0xff]  }
 0x338   : > { %3666 = vmatpush2.bf16.msra.mxu1 %v6594_v33  ;;  %3707 = vmatpush2.bf16.msra.mxu0 %v6675_v34  ;;  %v6720_v33 = vld [vmem:[%s7391_s29 + $0x708] ss:$16 sps:$4 sm:$0xff]  }
 0x339   : > { %3667 = vmatprep.subr.bf16.mxu1 %v6602_v35  ;;  %3708 = vmatprep.subr.bf16.mxu0 %v6683_v39  ;;  %v6728_v35 = vld [vmem:[%s7404_s12 + $0x4c4] ss:$16 sps:$4 sm:$0xff]  }
 0x33c   : > { %3668 = vmatpush2.bf16.msra.mxu1 %v6600_v36  ;;  %3709 = vmatpush2.bf16.msra.mxu0 %v6681_v37  ;;  %v6726_v36 = vld [vmem:[%s7404_s12 + $0x4c0] ss:$16 sps:$4 sm:$0xff]  }
 0x33d   : > { %3669 = vmatprep.subr.bf16.mxu1 %v6608_v38  ;;  %3710 = vmatprep.subr.bf16.mxu0 %v6689_v40  ;;  %v6731_v38 = vld [vmem:[%s7404_s12 + $0x4a4] ss:$16 sps:$4 sm:$0xff]  }
 0x340   : > { %3670 = vmatpush2.bf16.msra.mxu1 %v6606_v41  ;;  %3711 = vmatpush2.bf16.msra.mxu0 %v6687_v28  ;;  %v6729_v41 = vld [vmem:[%s7404_s12 + $0x4a0] ss:$16 sps:$4 sm:$0xff]  }
 0x341   : > { %3671 = vmatprep.subr.bf16.mxu1 %v6614_v42  ;;  %3712 = vmatprep.subr.bf16.mxu0 %v6695_v43  ;;  %v6732_v28 = vld [vmem:[%s7404_s12 + $0x480] ss:$16 sps:$4 sm:$0xff]   ;;  %v6737_v42 = vld [vmem:[%s7404_s12 + $0x464] ss:$16 sps:$4 sm:$0xff]  }
 0x342   : > { %v6735_v43 = vld [vmem:[%s7404_s12 + $0x460] ss:$16 sps:$4 sm:$0xff]  }
 0x344   : > { %3672 = vmatpush2.bf16.msra.mxu1 %v6612_v45  ;;  %3713 = vmatpush2.bf16.msra.mxu0 %v6693_v30  ;;  %v6740_v45 = vld [vmem:[%s7404_s12 + $0x444] ss:$16 sps:$4 sm:$0xff]   ;;  %v6738_v30 = vld [vmem:[%s7404_s12 + $0x440] ss:$16 sps:$4 sm:$0xff]  }
 0x345   : > { %3673 = vmatprep.subr.bf16.mxu1 %v6620_v46  ;;  %3714 = vmatprep.subr.bf16.mxu0 %v6701_v47  ;;  %v6743_v46 = vld [vmem:[%s7404_s12 + $0x424] ss:$16 sps:$4 sm:$0xff]   ;;  %v6741_v47 = vld [vmem:[%s7404_s12 + $0x420] ss:$16 sps:$4 sm:$0xff]  }
 0x348   : > { %3674 = vmatpush2.bf16.msra.mxu1 %v6618_v48  ;;  %3715 = vmatpush2.bf16.msra.mxu0 %v6699_v13  ;;  %v6746_v48 = vld [vmem:[%s7404_s12 + $0x404] ss:$16 sps:$4 sm:$0xff]   ;;  %v6744_v13 = vld [vmem:[%s7404_s12 + $0x400] ss:$16 sps:$4 sm:$0xff]  }
 0x349   : > { %3675 = vmatprep.subr.bf16.mxu1 %v6623_v50  ;;  %3716 = vmatprep.subr.bf16.mxu0 %v6707_v51  ;;  %v6749_v50 = vld [vmem:[%s7404_s12 + $0x5e4] ss:$16 sps:$4 sm:$0xff]   ;;  %v6747_v51 = vld [vmem:[%s7404_s12 + $0x5e0] ss:$16 sps:$4 sm:$0xff]  }
 0x34c   : > { %3676 = vmatpush2.bf16.msra.mxu1 %v6621_v16  ;;  %3717 = vmatpush2.bf16.msra.mxu0 %v6705_v53  ;;  %v6752_v16 = vld [vmem:[%s7404_s12 + $0x5c4] ss:$16 sps:$4 sm:$0xff]   ;;  %v6750_v53 = vld [vmem:[%s7404_s12 + $0x5c0] ss:$16 sps:$4 sm:$0xff]  }
 0x34d   : > { %3677 = vmatprep.subr.bf16.mxu1 %v6629_v21  ;;  %3718 = vmatprep.subr.bf16.mxu0 %v6713_v54  ;;  %v6755_v21 = vld [vmem:[%s7404_s12 + $0x5a4] ss:$16 sps:$4 sm:$0xff]   ;;  %v6753_v54 = vld [vmem:[%s7404_s12 + $0x5a0] ss:$16 sps:$4 sm:$0xff]  }
 0x350   : > { %3678 = vmatpush2.bf16.msra.mxu1 %v6627_v55  ;;  %3719 = vmatpush2.bf16.msra.mxu0 %v6711_v56  ;;  %v6758_v55 = vld [vmem:[%s7404_s12 + $0x584] ss:$16 sps:$4 sm:$0xff]   ;;  %v6756_v56 = vld [vmem:[%s7404_s12 + $0x580] ss:$16 sps:$4 sm:$0xff]  }
 0x351   : > { %3729 = vmatprep.subr.bf16.mxu1 %v6638_v57  ;;  %4679 = vmatprep.subr.bf16.mxu0 %v6725_v1  ;;  %v6761_v57 = vld [vmem:[%s7404_s12 + $0x564] ss:$16 sps:$4 sm:$0xff]  }
 0x352   : > { %v6773_v1 = vld [vmem:[%s7404_s12 + $0x6e4] ss:$16 sps:$4 sm:$0xff]  }
 0x353   : > { %3680 = vmatmul.mubr.bf16.vlgmr.msra.gmra.mxu1 %v7496_v9  ;;  %3721 = vmatmul.mubr.bf16.vlgmr.msra.gmra.mxu0 %v7494_v8  ;;  %v6662_v8 = vld [vmem:[%s7391_s29 + $0x66c] ss:$16 sps:$4 sm:$0xff]  }
 0x354   : > { %3730 = vmatpush1.bf16.msra.mxu1 %v6636_v58  ;;  %3761 = vmatprep.mubr.bf16.mxu1 %v7467_v52  ;;  %v6660_v52 = vld [vmem:[%s7391_s29 + $0x668] ss:$16 sps:$4 sm:$0xff]   ;;  %v6759_v58 = vld [vmem:[%s7404_s12 + $0x560] ss:$16 sps:$4 sm:$0xff]   ;;  %s7974_s29 = scalar_lea.vmem %s8159_s7, %s5131_s14 }
 0x355   : > { %3731 = vmatprep.subr.bf16.mxu1 %v6644_v59  ;;  %4680 = vmatpush1.bf16.msra.mxu0 %v6723_v0  ;;  %v6764_v59 = vld [vmem:[%s7404_s12 + $0x544] ss:$16 sps:$4 sm:$0xff]  }
 0x356   : > { %4681 = vmatprep.subr.bf16.mxu0 %v6728_v35  ;;  %v6770_v0 = vld [vmem:[%s7404_s12 + $0x504] ss:$16 sps:$4 sm:$0xff]   ;;  %v6807_v35 = vld [vmem:[%s7404_s12 + $0x620] ss:$16 sps:$4 sm:$0xff]  }
 0x358   : > { %3732 = vmatpush1.bf16.msra.mxu1 %v6642_v60  ;;  %v6762_v60 = vld [vmem:[%s7404_s12 + $0x540] ss:$16 sps:$4 sm:$0xff]  }
 0x359   : > { %3733 = vmatprep.subr.bf16.mxu1 %v6650_v61  ;;  %4682 = vmatpush1.bf16.msra.mxu0 %v6726_v36  ;;  %v6767_v61 = vld [vmem:[%s7404_s12 + $0x524] ss:$16 sps:$4 sm:$0xff]   ;;  %v6813_v36 = vld [vmem:[%s7404_s12 + $0x600] ss:$16 sps:$4 sm:$0xff]  }
 0x35a   : > { %4683 = vmatprep.subr.bf16.mxu0 %v6731_v38  ;;  %v6819_v38 = vld [vmem:[%s7404_s12 + $0x7e0] ss:$16 sps:$4 sm:$0xff]  }
 0x35c   : > { %3734 = vmatpush1.bf16.msra.mxu1 %v6648_v62  ;;  %v6765_v62 = vld [vmem:[%s7404_s12 + $0x520] ss:$16 sps:$4 sm:$0xff]  }
 0x35d   : > { %3735 = vmatprep.subr.bf16.mxu1 %v6656_v63  ;;  %4684 = vmatpush1.bf16.msra.mxu0 %v6729_v41  ;;  %v6768_v63 = vld [vmem:[%s7404_s12 + $0x500] ss:$16 sps:$4 sm:$0xff]  }
 0x35e   : > { %v6825_v41 = vld [vmem:[%s7404_s12 + $0x7c0] ss:$16 sps:$4 sm:$0xff]  }
 0x360   : > { %3736 = vmatpush1.bf16.msra.mxu1 %v6654_v49  ;;  %v6776_v49 = vld [vmem:[%s7404_s12 + $0x4ec] ss:$16 sps:$4 sm:$0xff]  }
 0x361   : > { %3737 = vmatprep.subr.bf16.mxu1 %v6662_v8  ;;  %v6771_v8 = vld [vmem:[%s7404_s12 + $0x6e0] ss:$16 sps:$4 sm:$0xff]  }
 0x364   : > { %3738 = vmatpush1.bf16.msra.mxu1 %v6660_v52 }
 0x365   : > { %3739 = vmatprep.subr.bf16.mxu1 %v6668_v2  ;;  %v7961_v2 = vld [vmem:[#allocation9] ss:$0 sm:$0xff] }
 0x368   : > { %3740 = vmatpush1.bf16.msra.mxu1 %v6666_v3 }
 0x369   : > { %3741 = vmatprep.subr.bf16.mxu1 %v6674_v4 }
 0x36c   : > { %3742 = vmatpush1.bf16.msra.mxu1 %v6672_v5 }
 0x36d   : > { %3743 = vmatprep.subr.bf16.mxu1 %v6680_v6 }
 0x370   : > { %3744 = vmatpush1.bf16.msra.mxu1 %v6678_v7  ;;  %v6779_v7 = vld [vmem:[%s7404_s12 + $0x6c4] ss:$16 sps:$4 sm:$0xff]  }
 0x371   : > { %3745 = vmatprep.subr.bf16.mxu1 %v6686_v10 }
 0x374   : > { %3746 = vmatpush2.bf16.msra.mxu1 %v6684_v11 }
 0x375   : > { %3747 = vmatprep.subr.bf16.mxu1 %v6692_v12  ;;  %v6777_v12 = vld [vmem:[%s7404_s12 + $0x6c0] ss:$16 sps:$4 sm:$0xff]  }
 0x378   : > { %3748 = vmatpush2.bf16.msra.mxu1 %v6690_v18 }
 0x379   : > { %3749 = vmatprep.subr.bf16.mxu1 %v6698_v19 }
 0x37c   : > { %3750 = vmatpush2.bf16.msra.mxu1 %v6696_v20 }
 0x37d   : > { %3751 = vmatprep.subr.bf16.mxu1 %v6704_v22 }
 0x380   : > { %3752 = vmatpush2.bf16.msra.mxu1 %v6702_v23 }
 0x381   : > { %3753 = vmatprep.subr.bf16.mxu1 %v6710_v24  ;;  %v6785_v24 = vld [vmem:[%s7404_s12 + $0x6a4] ss:$16 sps:$4 sm:$0xff]  }
 0x384   : > { %3754 = vmatpush2.bf16.msra.mxu1 %v6708_v27  ;;  %v6783_v27 = vld [vmem:[%s7404_s12 + $0x6a0] ss:$16 sps:$4 sm:$0xff]  }
 0x385   : > { %3755 = vmatprep.subr.bf16.mxu1 %v6716_v26  ;;  %v6791_v26 = vld [vmem:[%s7404_s12 + $0x684] ss:$16 sps:$4 sm:$0xff]  }
 0x388   : > { %3756 = vmatpush2.bf16.msra.mxu1 %v6714_v25  ;;  %v6789_v25 = vld [vmem:[%s7404_s12 + $0x680] ss:$16 sps:$4 sm:$0xff]  }
 0x389   : > { %3757 = vmatprep.subr.bf16.mxu1 %v6719_v29  ;;  %v6797_v29 = vld [vmem:[%s7404_s12 + $0x664] ss:$16 sps:$4 sm:$0xff]  }
 0x38c   : > { %3758 = vmatpush2.bf16.msra.mxu1 %v6717_v31  ;;  %v6795_v31 = vld [vmem:[%s7404_s12 + $0x660] ss:$16 sps:$4 sm:$0xff]  }
 0x38d   : > { %3759 = vmatprep.subr.bf16.mxu1 %v6722_v32  ;;  %v6803_v32 = vld [vmem:[%s7404_s12 + $0x644] ss:$16 sps:$4 sm:$0xff]  }
 0x390   : > { %3760 = vmatpush2.bf16.msra.mxu1 %v6720_v33  ;;  %v6801_v33 = vld [vmem:[%s7404_s12 + $0x640] ss:$16 sps:$4 sm:$0xff]  }
 0x391   : > { %4720 = vmatprep.subr.bf16.mxu1 %v6773_v1 }
 0x393   : > { %3762 = vmatmul.mubr.bf16.vlgmr.msra.gmra.mxu1 %v7496_v9  ;;  %v7922_v34 = vpop.f32.mrf.mxu0  ;;  %v6734_v9 = vld [vmem:[%s7404_s12 + $0x484] ss:$16 sps:$4 sm:$0xff]  }
 0x394   : > { %4685 = vmatprep.subr.bf16.mxu0 %v6734_v9  ;;  %4721 = vmatpush1.bf16.msra.mxu1 %v6771_v8  ;;  %v6833_v9 = vld [vmem:[%s7404_s12 + $0x7a4] ss:$16 sps:$4 sm:$0xff]  }
 0x395   : > { %v7925_v39 = vpop.f32.mrf.mxu0  ;;  %4686 = vmatpush1.bf16.msra.mxu0 %v6732_v28  ;;  %4722 = vmatprep.subr.bf16.mxu1 %v6779_v7  ;;  %v6831_v28 = vld [vmem:[%s7404_s12 + $0x7a0] ss:$16 sps:$4 sm:$0xff]  }
 0x396   : > { %4687 = vmatprep.subr.bf16.mxu0 %v6737_v42  ;;  %v5969_v52 = vadd.f32 %v7925_v39, %v7922_v34  ;;  %v6809_v34 = vld [vmem:[%s7404_s12 + $0x624] ss:$16 sps:$4 sm:$0xff]  }
 0x397   : > { %v5970_v37 = vpop.f32.mrf.mxu0  ;;  %v6815_v39 = vld [vmem:[%s7404_s12 + $0x604] ss:$16 sps:$4 sm:$0xff]  }
 0x398   : > { %v2770_v10 = vadd.f32 %v5969_v52, %v7961_v2  ;;  %4723 = vmatpush1.bf16.msra.mxu1 %v6777_v12  ;;  %v6821_v37 = vld [vmem:[%s7404_s12 + $0x7e4] ss:$16 sps:$4 sm:$0xff]  }
 0x399   : > { %v5971_v40 = vpop.f32.mrf.mxu0  ;;  %4688 = vmatpush1.bf16.msra.mxu0 %v6735_v43  ;;  %4724 = vmatprep.subr.bf16.mxu1 %v6785_v24  ;;  %v6839_v42 = vld [vmem:[%s7404_s12 + $0x784] ss:$16 sps:$4 sm:$0xff]   ;;  %v6837_v43 = vld [vmem:[%s7404_s12 + $0x780] ss:$16 sps:$4 sm:$0xff]  }
 0x39a   : > { %4689 = vmatprep.subr.bf16.mxu0 %v6740_v45  ;;  %v6827_v40 = vld [vmem:[%s7404_s12 + $0x7c4] ss:$16 sps:$4 sm:$0xff]  }
 0x39b   : > { %v6845_v45 = vld [vmem:[%s7404_s12 + $0x764] ss:$16 sps:$4 sm:$0xff]  }
 0x39c   : > { %4725 = vmatpush1.bf16.msra.mxu1 %v6783_v27 }
 0x39d   : > { %4690 = vmatpush1.bf16.msra.mxu0 %v6738_v30  ;;  %4726 = vmatprep.subr.bf16.mxu1 %v6791_v26  ;;  %v6843_v30 = vld [vmem:[%s7404_s12 + $0x760] ss:$16 sps:$4 sm:$0xff]  }
 0x39e   : > { %4691 = vmatprep.subr.bf16.mxu0 %v6743_v46  ;;  %v6851_v46 = vld [vmem:[%s7404_s12 + $0x744] ss:$16 sps:$4 sm:$0xff]  }
 0x3a0   : > { %4727 = vmatpush1.bf16.msra.mxu1 %v6789_v25 }
 0x3a1   : > { %4692 = vmatpush1.bf16.msra.mxu0 %v6741_v47  ;;  %4728 = vmatprep.subr.bf16.mxu1 %v6797_v29  ;;  %v6849_v47 = vld [vmem:[%s7404_s12 + $0x740] ss:$16 sps:$4 sm:$0xff]  }
 0x3a2   : > { %4693 = vmatprep.subr.bf16.mxu0 %v6746_v48  ;;  %v8002_v48 = vld [vmem:[%s7398_s20 + $0x20] sm:$0xff] }
 0x3a4   : > { %4729 = vmatpush1.bf16.msra.mxu1 %v6795_v31 }
 0x3a5   : > { %4694 = vmatpush1.bf16.msra.mxu0 %v6744_v13  ;;  %4730 = vmatprep.subr.bf16.mxu1 %v6803_v32  ;;  %v6857_v13 = vld [vmem:[%s7404_s12 + $0x724] ss:$16 sps:$4 sm:$0xff]  }
 0x3a6   : > { %4695 = vmatprep.subr.bf16.mxu0 %v6749_v50  ;;  %v6855_v50 = vld [vmem:[%s7404_s12 + $0x720] ss:$16 sps:$4 sm:$0xff]  }
 0x3a8   : > { %4731 = vmatpush1.bf16.msra.mxu1 %v6801_v33 }
 0x3a9   : > { %4696 = vmatpush2.bf16.msra.mxu0 %v6747_v51  ;;  %4732 = vmatprep.subr.bf16.mxu1 %v6809_v34  ;;  %v8007_v51 = vld [vmem:[%s7398_s20 + $0x28] sm:$0xff] }
 0x3aa   : > { %4697 = vmatprep.subr.bf16.mxu0 %v6752_v16  ;;  %v2953_v16 = vrot.slane %v8002_v48, %v7634_v17 }
 0x3ac   : > { %4733 = vmatpush1.bf16.msra.mxu1 %v6807_v35 }
 0x3ad   : > { %4698 = vmatpush2.bf16.msra.mxu0 %v6750_v53  ;;  %4734 = vmatprep.subr.bf16.mxu1 %v6815_v39  ;;  %v6861_v53 = vld [vmem:[%s7404_s12 + $0x700] ss:$16 sps:$4 sm:$0xff]  }
 0x3ae   : > { %4699 = vmatprep.subr.bf16.mxu0 %v6755_v21  ;;  %v6863_v21 = vld [vmem:[%s7404_s12 + $0x704] ss:$16 sps:$4 sm:$0xff]  }
 0x3b0   : > { %4735 = vmatpush1.bf16.msra.mxu1 %v6813_v36 }
 0x3b1   : > { %4700 = vmatpush2.bf16.msra.mxu0 %v6753_v54  ;;  %4736 = vmatprep.subr.bf16.mxu1 %v6821_v37  ;;  %v2957_v54 = vrot.slane %v8007_v51, %v7634_v17 }
 0x3b2   : > { %4701 = vmatprep.subr.bf16.mxu0 %v6758_v55 }
 0x3b4   : > { %4737 = vmatpush2.bf16.msra.mxu1 %v6819_v38 }
 0x3b5   : > { %4702 = vmatpush2.bf16.msra.mxu0 %v6756_v56  ;;  %4738 = vmatprep.subr.bf16.mxu1 %v6827_v40  ;;  %v6869_v56 = vld [vmem:[%s7404_s12 + $0x6ec] ss:$16 sps:$4 sm:$0xff]  }
 0x3b6   : > { %4703 = vmatprep.subr.bf16.mxu0 %v6761_v57 }
 0x3b8   : > { %4739 = vmatpush2.bf16.msra.mxu1 %v6825_v41 }
 0x3b9   : > { %4704 = vmatpush2.bf16.msra.mxu0 %v6759_v58  ;;  %4740 = vmatprep.subr.bf16.mxu1 %v6833_v9 }
 0x3ba   : > { %4705 = vmatprep.subr.bf16.mxu0 %v6764_v59 }
 0x3bc   : > { %4741 = vmatpush2.bf16.msra.mxu1 %v6831_v28 }
 0x3bd   : > { %4706 = vmatpush2.bf16.msra.mxu0 %v6762_v60  ;;  %4742 = vmatprep.subr.bf16.mxu1 %v6839_v42 }
 0x3be   : > { %4707 = vmatprep.subr.bf16.mxu0 %v6767_v61 }
 0x3c0   : > { %4743 = vmatpush2.bf16.msra.mxu1 %v6837_v43 }
 0x3c1   : > { %4708 = vmatpush2.bf16.msra.mxu0 %v6765_v62  ;;  %4744 = vmatprep.subr.bf16.mxu1 %v6845_v45 }
 0x3c2   : > { %4709 = vmatprep.subr.bf16.mxu0 %v6770_v0 }
 0x3c4   : > { %4745 = vmatpush2.bf16.msra.mxu1 %v6843_v30 }
 0x3c5   : > { %4710 = vmatpush2.bf16.msra.mxu0 %v6768_v63  ;;  %4746 = vmatprep.subr.bf16.mxu1 %v6851_v46  ;;  %v3853_v46 = vrot.slane %v8002_v48, %v7648_v14 }
 0x3c6   : > { %4761 = vmatprep.subr.bf16.mxu0 %v6776_v49 }
 0x3c8   : > { %4747 = vmatpush2.bf16.msra.mxu1 %v6849_v47 }
 0x3c9   : > { %4748 = vmatprep.subr.bf16.mxu1 %v6857_v13 }
 0x3cc   : > { %4749 = vmatpush2.bf16.msra.mxu1 %v6855_v50  ;;  %v3857_v50 = vrot.slane %v8007_v51, %v7648_v14 }
 0x3cd   : > { %4750 = vmatprep.subr.bf16.mxu1 %v6863_v21  ;;  %v3873_v21 = vrot.slane %v8002_v48, %v7651_v15 }
 0x3d0   : > { %4751 = vmatpush2.bf16.msra.mxu1 %v6861_v53  ;;  %v8027_v53 = vld [vmem:[%s7398_s20 + $0x30] sm:$0xff] }
 0x3d1   : > { %4802 = vmatprep.subr.bf16.mxu1 %v6869_v56  ;;  %v3877_v56 = vrot.slane %v8007_v51, %v7651_v15 }
 0x3d3   : > { %v5989_v3 = vpop.f32.mrf.mxu1  ;;  %v7963_v4 = vpop.f32.mrf.mxu0 }
 0x3d4   : > { %v3641_v55 = vadd.f32 %v7963_v4, %v2953_v16 }
 0x3d5   : > { %v5990_v5 = vpop.f32.mrf.mxu1  ;;  %v7966_v6 = vpop.f32.mrf.mxu0 }
 0x3d6   : > { %v5991_v11 = vadd.f32 %v5990_v5, %v5989_v3  ;;  %v3643_v57 = vadd.f32 %v7966_v6, %v2957_v54 }
 0x3d7   : > { %v5992_v18 = vpop.f32.mrf.mxu1  ;;  %v3644_v19 = vpop.f32.mrf.mxu0 }
 0x3d8   : > { %v2810_v20 = vadd.f32 %v5991_v11, %v2770_v10 }
 0x3d9   : > { %v5993_v22 = vpop.f32.mrf.mxu1  ;;  %v3645_v23 = vpop.f32.mrf.mxu0 }
 0x3da   : > { %2815 = vst [vmem:[%s7974_s29] sm:$0xff] %v2810_v20 }
 0x413   : > { %v3681_v58 = vpop.f32.mrf.mxu1  ;;  %v8018_v59 = vpop.f32.mrf.mxu0 }
 0x414   : > { %v3682_v60 = vadd.f32 %v3681_v58, %v3641_v55 }
 0x415   : > { %v3683_v61 = vpop.f32.mrf.mxu1  ;;  %v8020_v62 = vpop.f32.mrf.mxu0 }
 0x416   : > { %v3770_v63 = vmax.f32 %v3682_v60, 0.0  ;;  %v3684_v0 = vadd.f32 %v3683_v61, %v3643_v57  ;;  %v2961_v57 = vrot.slane %v8027_v53, %v7634_v17  ;;  %v8036_v60 = vld [vmem:[%s7398_s20 + $0x38] sm:$0xff] }
 0x417   : > { %v3685_v1 = vpop.f32.mrf.mxu1  ;;  %v3726_v49 = vpop.f32.mrf.mxu0 }
 0x418   : > { %v3774_v8 = vrot.slane %v3770_v63, 4  ;;  %v3771_v52 = vmax.f32 %v3684_v0, 0.0  ;;  %v3723_v0 = vadd.f32 %v8018_v59, %v2961_v57  ;;  %v2965_v1 = vrot.slane %v8036_v60, %v7634_v17  ;;  %v6780_v59 = vld [vmem:[%s7404_s12 + $0x4c8] ss:$16 sps:$4 sm:$0xff]   ;;  %v6788_v17 = vld [vmem:[%s7404_s12 + $0x4ac] ss:$16 sps:$4 sm:$0xff]  }
 0x419   : > { %v3686_v3 = vpop.f32.mrf.mxu1  ;;  %v3727_v4 = vpop.f32.mrf.mxu0 }
 0x41a   : > { %v3775_v5 = vadd.f32 %v3774_v8, %v3770_v63  ;;  %v3780_v7 = vrot.slane %v3771_v52, 4  ;;  %v6774_v8 = vld [vmem:[%s7404_s12 + $0x4e8] ss:$16 sps:$4 sm:$0xff]   ;;  %v6782_v3 = vld [vmem:[%s7404_s12 + $0x4cc] ss:$16 sps:$4 sm:$0xff]  }
 0x41c   : > { %v3776_v10 = vrot.slane %v3775_v5, 2  ;;  %v3781_v6 = vadd.f32 %v3780_v7, %v3771_v52 }
 0x41e   : > { %v3777_v11 = vadd.f32 %v3776_v10, %v3775_v5  ;;  %v3782_v12 = vrot.slane %v3781_v6, 2  ;;  %v3725_v5 = vadd.f32 %v8020_v62, %v2965_v1  ;;  %v6794_v62 = vld [vmem:[%s7404_s12 + $0x48c] ss:$16 sps:$4 sm:$0xff]  }
 0x420   : > { %v3778_v18 = vrot.slane %v3777_v11, 1  ;;  %v3783_v19 = vadd.f32 %v3782_v12, %v3781_v6 }
 0x422   : > { %v3779_v20 = vadd.f32 %v3778_v18, %v3777_v11  ;;  %v3784_v22 = vrot.slane %v3783_v19, 1 }
 0x424   : > { %v3798_v23 = vmul.f32 0.125, %v3779_v20  ;;  %v3785_v24 = vadd.f32 %v3784_v22, %v3783_v19  ;;  %v6786_v20 = vld [vmem:[%s7404_s12 + $0x4a8] ss:$16 sps:$4 sm:$0xff]  }
 0x426   : > { %v3802_v27 = vsub.f32 %v3770_v63, %v3798_v23  ;;  %v3799_v26 = vmul.f32 0.125, %v3785_v24 }
 0x428   : > { %v3806_v25 = vmul.f32 %v3802_v27, %v3802_v27  ;;  %v3803_v29 = vsub.f32 %v3771_v52, %v3799_v26 }
 0x42a   : > { %v3810_v31 = vrot.slane %v3806_v25, 4  ;;  %v3807_v32 = vmul.f32 %v3803_v29, %v3803_v29 }
 0x42c   : > { %v3811_v33 = vadd.f32 %v3810_v31, %v3806_v25  ;;  %v3816_v34 = vrot.slane %v3807_v32, 4  ;;  %v6792_v25 = vld [vmem:[%s7404_s12 + $0x488] ss:$16 sps:$4 sm:$0xff]  }
 0x42e   : > { %v3812_v35 = vrot.slane %v3811_v33, 2  ;;  %v3817_v39 = vadd.f32 %v3816_v34, %v3807_v32 }
 0x430   : > { %v3813_v36 = vadd.f32 %v3812_v35, %v3811_v33  ;;  %v3818_v37 = vrot.slane %v3817_v39, 2  ;;  %v6798_v35 = vld [vmem:[%s7404_s12 + $0x468] ss:$16 sps:$4 sm:$0xff]  }
 0x432   : > { %v3814_v38 = vrot.slane %v3813_v36, 1  ;;  %v3819_v40 = vadd.f32 %v3818_v37, %v3817_v39  ;;  %v6806_v39 = vld [vmem:[%s7404_s12 + $0x44c] ss:$16 sps:$4 sm:$0xff]  }
 0x434   : > { %v3815_v41 = vadd.f32 %v3814_v38, %v3813_v36  ;;  %v3820_v9 = vrot.slane %v3819_v40, 1 }
 0x436   : > { %v3834_v28 = vmul.f32 0.125, %v3815_v41  ;;  %v3821_v42 = vadd.f32 %v3820_v9, %v3819_v40  ;;  %v6804_v41 = vld [vmem:[%s7404_s12 + $0x448] ss:$16 sps:$4 sm:$0xff]   ;;  %v6812_v9 = vld [vmem:[%s7404_s12 + $0x42c] ss:$16 sps:$4 sm:$0xff]  }
 0x438   : > { %v3838_v43 = vadd.f32 1e-05, %v3834_v28  ;;  %v3835_v45 = vmul.f32 0.125, %v3821_v42 }
 0x43a   : > { %6923 = vrsqrt.f32 %v3838_v43  ;;  %v3839_v30 = vadd.f32 1e-05, %v3835_v45 }
 0x43c   : > { %6925 = vrsqrt.f32 %v3839_v30  ;;  %v6810_v30 = vld [vmem:[%s7404_s12 + $0x428] ss:$16 sps:$4 sm:$0xff]  }
 0x447   : > { %v6924_v47 = vpop.eup %6923 }
 0x448   : > { %v3846_v13 = vmul.f32 %v6924_v47, %v3802_v27 }
 0x449   : > { %v6926_v16 = vpop.eup %6925 }
 0x44a   : > { %v3866_v54 = vmul.f32 %v3853_v46, %v3846_v13  ;;  %v3847_v55 = vmul.f32 %v6926_v16, %v3803_v29  ;;  %v6800_v29 = vld [vmem:[%s7404_s12 + $0x46c] ss:$16 sps:$4 sm:$0xff]  }
 0x44b   : > { %v6818_v46 = vld [vmem:[%s7404_s12 + $0x40c] ss:$16 sps:$4 sm:$0xff]  }
 0x44c   : > { %v3867_v58 = vmul.f32 %v3857_v50, %v3847_v55  ;;  %v3886_v61 = vadd.f32 %v3873_v21, %v3866_v54  ;;  %v6816_v21 = vld [vmem:[%s7404_s12 + $0x408] ss:$16 sps:$4 sm:$0xff]   ;;  %v6824_v54 = vld [vmem:[%s7404_s12 + $0x5ec] ss:$16 sps:$4 sm:$0xff]  }
 0x44e   : > { %v3887_v63 = vadd.f32 %v3877_v56, %v3867_v58  ;;  %v8042_v52 = vpack.c.bf16 %v3886_v61, %v3886_v61  ;;  %v6822_v61 = vld [vmem:[%s7404_s12 + $0x5e8] ss:$16 sps:$4 sm:$0xff]  }
 0x450   : > { %v3891_v49 = vpack.c.bf16 %v3887_v63, %v3887_v63  ;;  %v6830_v63 = vld [vmem:[%s7404_s12 + $0x5cc] ss:$16 sps:$4 sm:$0xff]  }
 0x452   : > { %4711 = vmatprep.mubr.bf16.mxu0 %v3891_v49 }
 0x453   : > { %v3763_v4 = vpop.f32.mrf.mxu1  ;;  %4712 = vmatmul.mubr.bf16.vlgmr.msra.gmra.mxu0 %v8042_v52 }
 0x454   : > { %v3764_v7 = vadd.f32 %v3763_v4, %v3723_v0  ;;  %4762 = vmatpush1.bf16.msra.mxu0 %v6774_v8  ;;  %4793 = vmatprep.mubr.bf16.mxu0 %v3891_v49  ;;  %v6836_v4 = vld [vmem:[%s7404_s12 + $0x5ac] ss:$16 sps:$4 sm:$0xff]  }
 0x455   : > { %v3765_v10 = vpop.f32.mrf.mxu1  ;;  %4763 = vmatprep.subr.bf16.mxu0 %v6782_v3  ;;  %v6828_v3 = vld [vmem:[%s7404_s12 + $0x5c8] ss:$16 sps:$4 sm:$0xff]  }
 0x456   : > { %v3772_v6 = vmax.f32 %v3764_v7, 0.0  ;;  %v3766_v11 = vadd.f32 %v3765_v10, %v3725_v5 }
 0x457   : > { %v3767_v12 = vpop.f32.mrf.mxu1 }
 0x458   : > { %v3786_v18 = vrot.slane %v3772_v6, 4  ;;  %v3773_v19 = vmax.f32 %v3766_v11, 0.0  ;;  %4764 = vmatpush1.bf16.msra.mxu0 %v6780_v59  ;;  %v6840_v12 = vld [vmem:[%s7404_s12 + $0x588] ss:$16 sps:$4 sm:$0xff]  }
 0x459   : > { %v3768_v22 = vpop.f32.mrf.mxu1  ;;  %4765 = vmatprep.subr.bf16.mxu0 %v6788_v17  ;;  %v6834_v17 = vld [vmem:[%s7404_s12 + $0x5a8] ss:$16 sps:$4 sm:$0xff]  }
 0x45a   : > { %v3787_v23 = vadd.f32 %v3786_v18, %v3772_v6  ;;  %v3792_v24 = vrot.slane %v3773_v19, 4  ;;  %v6848_v18 = vld [vmem:[%s7404_s12 + $0x56c] ss:$16 sps:$4 sm:$0xff]   ;;  %v6852_v22 = vld [vmem:[%s7404_s12 + $0x548] ss:$16 sps:$4 sm:$0xff]  }
 0x45c   : > { %v3788_v27 = vrot.slane %v3787_v23, 2  ;;  %v3793_v26 = vadd.f32 %v3792_v24, %v3773_v19  ;;  %4766 = vmatpush1.bf16.msra.mxu0 %v6786_v20  ;;  %v6854_v20 = vld [vmem:[%s7404_s12 + $0x54c] ss:$16 sps:$4 sm:$0xff]  }
 0x45d   : > { %4767 = vmatprep.subr.bf16.mxu0 %v6794_v62  ;;  %v6860_v62 = vld [vmem:[%s7404_s12 + $0x52c] ss:$16 sps:$4 sm:$0xff]  }
 0x45e   : > { %v3789_v31 = vadd.f32 %v3788_v27, %v3787_v23  ;;  %v3794_v32 = vrot.slane %v3793_v26, 2  ;;  %v3861_v23 = vrot.slane %v8027_v53, %v7648_v14 }
 0x460   : > { %v3790_v33 = vrot.slane %v3789_v31, 1  ;;  %v3795_v34 = vadd.f32 %v3794_v32, %v3793_v26  ;;  %4768 = vmatpush1.bf16.msra.mxu0 %v6792_v25  ;;  %v6858_v26 = vld [vmem:[%s7404_s12 + $0x528] ss:$16 sps:$4 sm:$0xff]   ;;  %v3865_v25 = vrot.slane %v8036_v60, %v7648_v14  ;;  %v3881_v32 = vrot.slane %v8027_v53, %v7651_v15 }
 0x461   : > { %4769 = vmatprep.subr.bf16.mxu0 %v6800_v29 }
 0x462   : > { %v3791_v36 = vadd.f32 %v3790_v33, %v3789_v31  ;;  %v3796_v37 = vrot.slane %v3795_v34, 1  ;;  %v6866_v31 = vld [vmem:[%s7404_s12 + $0x50c] ss:$16 sps:$4 sm:$0xff]  }
 0x464   : > { %v3800_v38 = vmul.f32 0.125, %v3791_v36  ;;  %v3797_v40 = vadd.f32 %v3796_v37, %v3795_v34  ;;  %4770 = vmatpush1.bf16.msra.mxu0 %v6798_v35  ;;  %v3885_v35 = vrot.slane %v8036_v60, %v7651_v15  ;;  %v6870_v15 = vld [vmem:[%s7404_s12 + $0x6c8] ss:$16 sps:$4 sm:$0xff]  }
 0x465   : > { %4771 = vmatprep.subr.bf16.mxu0 %v6806_v39  ;;  %v6864_v39 = vld [vmem:[%s7404_s12 + $0x508] ss:$16 sps:$4 sm:$0xff]  }
 0x466   : > { %v3804_v28 = vsub.f32 %v3772_v6, %v3800_v38  ;;  %v3801_v42 = vmul.f32 0.125, %v3797_v40  ;;  %v6842_v6 = vld [vmem:[%s7404_s12 + $0x58c] ss:$16 sps:$4 sm:$0xff]   ;;  %v6867_v40 = vld [vmem:[%s7404_s12 + $0x6e8] ss:$16 sps:$4 sm:$0xff]  }
 0x468   : > { %v3808_v43 = vmul.f32 %v3804_v28, %v3804_v28  ;;  %v8057_v45 = vsub.f32 %v3773_v19, %v3801_v42  ;;  %4772 = vmatpush1.bf16.msra.mxu0 %v6804_v41  ;;  %v6846_v19 = vld [vmem:[%s7404_s12 + $0x568] ss:$16 sps:$4 sm:$0xff]   ;;  %v6875_v42 = vld [vmem:[%s7404_s12 + $0x6ac] ss:$16 sps:$4 sm:$0xff]  }
 0x469   : > { %4773 = vmatprep.subr.bf16.mxu0 %v6812_v9  ;;  %v6872_v9 = vld [vmem:[%s7404_s12 + $0x6cc] ss:$16 sps:$4 sm:$0xff]  }
 0x46a   : > { %v3822_v47 = vrot.slane %v3808_v43, 4  ;;  %v3809_v13 = vmul.f32 %v8057_v45, %v8057_v45 }
 0x46c   : > { %v3823_v50 = vadd.f32 %v3822_v47, %v3808_v43  ;;  %v3828_v16 = vrot.slane %v3809_v13, 4  ;;  %4774 = vmatpush1.bf16.msra.mxu0 %v6810_v30  ;;  %v6932_v43 = vld [vmem:[#allocation7 + $0x38] sm:$0xff]   ;;  %v6935_v47 = vld [vmem:[#allocation7 + $0x68] sm:$0xff]  }
 0x46d   : > { %4775 = vmatprep.subr.bf16.mxu0 %v6818_v46  ;;  %v6873_v30 = vld [vmem:[%s7404_s12 + $0x6a8] ss:$16 sps:$4 sm:$0xff]   ;;  %v6878_v46 = vld [vmem:[%s7404_s12 + $0x68c] ss:$16 sps:$4 sm:$0xff]  }
 0x46e   : > { %v3824_v55 = vrot.slane %v3823_v50, 2  ;;  %v3829_v56 = vadd.f32 %v3828_v16, %v3809_v13  ;;  %v6876_v13 = vld [vmem:[%s7404_s12 + $0x688] ss:$16 sps:$4 sm:$0xff]  }
 0x46f   : > { %v6936_v16 = vld [vmem:[#allocation7 + $0x28] sm:$0xff]  }
 0x470   : > { %v3825_v57 = vadd.f32 %v3824_v55, %v3823_v50  ;;  %v3830_v58 = vrot.slane %v3829_v56, 2  ;;  %4776 = vmatpush1.bf16.msra.mxu0 %v6816_v21  ;;  %v6881_v50 = vld [vmem:[%s7404_s12 + $0x66c] ss:$16 sps:$4 sm:$0xff]   ;;  %v6937_v21 = vld [vmem:[#allocation7 + $0x60] sm:$0xff]  }
 0x471   : > { %4777 = vmatprep.subr.bf16.mxu0 %v6824_v54  ;;  %v6879_v54 = vld [vmem:[%s7404_s12 + $0x668] ss:$16 sps:$4 sm:$0xff]   ;;  %v6884_v55 = vld [vmem:[%s7404_s12 + $0x64c] ss:$16 sps:$4 sm:$0xff]  }
 0x472   : > { %v3826_v0 = vrot.slane %v3825_v57, 1  ;;  %v3831_v1 = vadd.f32 %v3830_v58, %v3829_v56  ;;  %v6938_v56 = vld [vmem:[#allocation7 + $0x20] sm:$0xff]   ;;  %v6882_v58 = vld [vmem:[%s7404_s12 + $0x648] ss:$16 sps:$4 sm:$0xff]  }
 0x474   : > { %v3827_v49 = vadd.f32 %v3826_v0, %v3825_v57  ;;  %v3832_v8 = vrot.slane %v3831_v1, 1  ;;  %4778 = vmatpush2.bf16.msra.mxu0 %v6822_v61  ;;  %v6939_v57 = vld [vmem:[#allocation7 + $0x58] sm:$0xff]   ;;  %v6941_v0 = vld [vmem:[#allocation7 + $0x50] sm:$0xff]  }
 0x475   : > { %4779 = vmatprep.subr.bf16.mxu0 %v6830_v63  ;;  %v6887_v61 = vld [vmem:[%s7404_s12 + $0x62c] ss:$16 sps:$4 sm:$0xff]  }
 0x476   : > { %v3836_v5 = vmul.f32 0.125, %v3827_v49  ;;  %v3833_v7 = vadd.f32 %v3832_v8, %v3831_v1  ;;  %v6940_v63 = vld [vmem:[#allocation7 + $0x18] sm:$0xff]   ;;  %v6942_v8 = vld [vmem:[#allocation7 + $0x10] sm:$0xff]  }
 0x477   : > { %v6885_v1 = vld [vmem:[%s7404_s12 + $0x628] ss:$16 sps:$4 sm:$0xff]   ;;  %v6890_v49 = vld [vmem:[%s7404_s12 + $0x60c] ss:$16 sps:$4 sm:$0xff]  }
 0x478   : > { %v3840_v59 = vadd.f32 1e-05, %v3836_v5  ;;  %v3837_v10 = vmul.f32 0.125, %v3833_v7  ;;  %4780 = vmatpush2.bf16.msra.mxu0 %v6828_v3  ;;  %v6943_v3 = vld [vmem:[#allocation7 + $0x48] sm:$0xff]  }
 0x479   : > { %4781 = vmatprep.subr.bf16.mxu0 %v6836_v4  ;;  %v6888_v4 = vld [vmem:[%s7404_s12 + $0x608] ss:$16 sps:$4 sm:$0xff]   ;;  %v6893_v5 = vld [vmem:[%s7404_s12 + $0x7ec] ss:$16 sps:$4 sm:$0xff]  }
 0x47a   : > { %6927 = vrsqrt.f32 %v3840_v59  ;;  %v3841_v11 = vadd.f32 1e-05, %v3837_v10  ;;  %v6944_v7 = vld [vmem:[#allocation7 + $0x8] sm:$0xff]   ;;  %v6945_v59 = vld [vmem:[#allocation7 + $0x40] sm:$0xff]  }
 0x47b   : > { %v6891_v10 = vld [vmem:[%s7404_s12 + $0x7e8] ss:$16 sps:$4 sm:$0xff]  }
 0x47c   : > { %6929 = vrsqrt.f32 %v3841_v11  ;;  %4782 = vmatpush2.bf16.msra.mxu0 %v6834_v17  ;;  %v6896_v17 = vld [vmem:[%s7404_s12 + $0x7cc] ss:$16 sps:$4 sm:$0xff]   ;;  %v6894_v11 = vld [vmem:[%s7404_s12 + $0x7c8] ss:$16 sps:$4 sm:$0xff]  }
 0x47d   : > { %4783 = vmatprep.subr.bf16.mxu0 %v6842_v6  ;;  %v6946_v6 = vld [vmem:[#allocation7] sm:$0xff]  }
 0x480   : > { %4784 = vmatpush2.bf16.msra.mxu0 %v6840_v12  ;;  %v6899_v12 = vld [vmem:[%s7404_s12 + $0x7ac] ss:$16 sps:$4 sm:$0xff]  }
 0x481   : > { %4785 = vmatprep.subr.bf16.mxu0 %v6848_v18  ;;  %v6897_v18 = vld [vmem:[%s7404_s12 + $0x7a8] ss:$16 sps:$4 sm:$0xff]  }
 0x484   : > { %4786 = vmatpush2.bf16.msra.mxu0 %v6846_v19  ;;  %v6902_v19 = vld [vmem:[%s7404_s12 + $0x78c] ss:$16 sps:$4 sm:$0xff]  }
 0x485   : > { %4787 = vmatprep.subr.bf16.mxu0 %v6854_v20  ;;  %v6900_v20 = vld [vmem:[%s7404_s12 + $0x788] ss:$16 sps:$4 sm:$0xff]  }
 0x487   : > { %v6928_v24 = vpop.eup %6927 }
 0x488   : > { %v3848_v27 = vmul.f32 %v6928_v24, %v3804_v28  ;;  %4788 = vmatpush2.bf16.msra.mxu0 %v6852_v22  ;;  %v6931_v28 = vld [vmem:[#allocation7 + $0x78] sm:$0xff]  }
 0x489   : > { %v6930_v29 = vpop.eup %6929  ;;  %4789 = vmatprep.subr.bf16.mxu0 %v6860_v62  ;;  %v6905_v22 = vld [vmem:[%s7404_s12 + $0x76c] ss:$16 sps:$4 sm:$0xff]   ;;  %v6903_v62 = vld [vmem:[%s7404_s12 + $0x768] ss:$16 sps:$4 sm:$0xff]  }
 0x48a   : > { %v3868_v33 = vmul.f32 %v3861_v23, %v3848_v27  ;;  %v3849_v34 = vmul.f32 %v6930_v29, %v8057_v45  ;;  %v6933_v45 = vld [vmem:[#allocation7 + $0x70] sm:$0xff]   ;;  %v6908_v23 = vld [vmem:[%s7404_s12 + $0x74c] ss:$16 sps:$4 sm:$0xff]   ;;  %v6906_v24 = vld [vmem:[%s7404_s12 + $0x748] ss:$16 sps:$4 sm:$0xff]  }
 0x48b   : > { %v6911_v27 = vld [vmem:[%s7404_s12 + $0x72c] ss:$16 sps:$4 sm:$0xff]   ;;  %v6912_v29 = vld [vmem:[%s7404_s12 + $0x708] ss:$16 sps:$4 sm:$0xff]  }
 0x48c   : > { %4790 = vmatpush2.bf16.msra.mxu0 %v6858_v26  ;;  %v3869_v36 = vmul.f32 %v3865_v25, %v3849_v34  ;;  %v3888_v14 = vadd.f32 %v3881_v32, %v3868_v33  ;;  %v6909_v26 = vld [vmem:[%s7404_s12 + $0x728] ss:$16 sps:$4 sm:$0xff]   ;;  %v6914_v25 = vld [vmem:[%s7404_s12 + $0x70c] ss:$16 sps:$4 sm:$0xff]   ;;  %v6949_v33 = vld [vmem:[#allocation7 + $0xf0] sm:$0xff]  }
 0x48d   : > { %4791 = vmatprep.subr.bf16.mxu0 %v6866_v31  ;;  %v6947_v31 = vld [vmem:[#allocation7 + $0xf8] sm:$0xff]   ;;  %v6950_v34 = vld [vmem:[#allocation7 + $0xb0] sm:$0xff]  }
 0x48e   : > { %v3889_v37 = vadd.f32 %v3885_v35, %v3869_v36  ;;  %v8090_v41 = vpack.c.bf16 %v3888_v14, %v3888_v14  ;;  %v6948_v32 = vld [vmem:[#allocation7 + $0xb8] sm:$0xff]   ;;  %v6951_v35 = vld [vmem:[#allocation7 + $0xe8] sm:$0xff]   ;;  %v6953_v36 = vld [vmem:[#allocation7 + $0xe0] sm:$0xff]  }
 0x48f   : > { %v6954_v14 = vld [vmem:[#allocation7 + $0xa0] sm:$0xff]  }
 0x490   : > { %4792 = vmatpush2.bf16.msra.mxu0 %v6864_v39  ;;  %v3893_v38 = vpack.c.bf16 %v3889_v37, %v3889_v37  ;;  %v6952_v39 = vld [vmem:[#allocation7 + $0xa8] sm:$0xff]   ;;  %v6955_v37 = vld [vmem:[#allocation7 + $0xd8] sm:$0xff]  }
 0x491   : > { %5995 = vmatprep.subr.bf16.mxu0 %v6931_v28  ;;  %v6960_v28 = vld [vmem:[#allocation7 + $0x88] sm:$0xff]  }
 0x492   : > { %4752 = vmatprep.mubr.bf16.mxu1 %v3893_v38 }
 0x493   : > { %4794 = vmatmul.mubr.bf16.vlgmr.msra.gmra.mxu0 %v8042_v52  ;;  %4753 = vmatmul.mubr.bf16.vlgmr.msra.gmra.mxu1 %v8090_v41  ;;  %v6934_v52 = vld [vmem:[#allocation7 + $0x30] sm:$0xff]  }
 0x494   : > { %4803 = vmatpush1.bf16.msra.mxu1 %v6867_v40  ;;  %4834 = vmatprep.mubr.bf16.mxu1 %v3893_v38  ;;  %v6956_v38 = vld [vmem:[#allocation7 + $0x98] sm:$0xff]   ;;  %v6957_v40 = vld [vmem:[#allocation7 + $0xd0] sm:$0xff]  }
 0x495   : > { %4804 = vmatprep.subr.bf16.mxu1 %v6872_v9  ;;  %5996 = vmatpush3.bf16.msra.mxu0 %v6932_v43  ;;  %v6959_v9 = vld [vmem:[#allocation7 + $0xc8] sm:$0xff]  }
 0x496   : > { %5997 = vmatprep.subr.bf16.mxu0 %v6933_v45 }
 0x498   : > { %4805 = vmatpush1.bf16.msra.mxu1 %v6870_v15  ;;  %v6961_v15 = vld [vmem:[#allocation7 + $0xc0] sm:$0xff]  }
 0x499   : > { %4806 = vmatprep.subr.bf16.mxu1 %v6875_v42  ;;  %5998 = vmatpush3.bf16.msra.mxu0 %v6934_v52  ;;  %v6962_v42 = vld [vmem:[#allocation7 + $0x80] sm:$0xff]   ;;  %v4026_v52 = vrot.slane %v8002_v48, %v7758_v44 }
 0x49a   : > { %5999 = vmatprep.subr.bf16.mxu0 %v6935_v47  ;;  %v4030_v47 = vrot.slane %v8007_v51, %v7758_v44 }
 0x49c   : > { %4807 = vmatpush1.bf16.msra.mxu1 %v6873_v30 }
 0x49d   : > { %4808 = vmatprep.subr.bf16.mxu1 %v6878_v46  ;;  %6000 = vmatpush3.bf16.msra.mxu0 %v6936_v16 }
 0x49e   : > { %6001 = vmatprep.subr.bf16.mxu0 %v6937_v21 }
 0x4a0   : > { %4809 = vmatpush1.bf16.msra.mxu1 %v6876_v13 }
 0x4a1   : > { %4810 = vmatprep.subr.bf16.mxu1 %v6881_v50  ;;  %6002 = vmatpush3.bf16.msra.mxu0 %v6938_v56 }
 0x4a2   : > { %6003 = vmatprep.subr.bf16.mxu0 %v6939_v57 }
 0x4a4   : > { %4811 = vmatpush1.bf16.msra.mxu1 %v6879_v54 }
 0x4a5   : > { %4812 = vmatprep.subr.bf16.mxu1 %v6884_v55  ;;  %6004 = vmatpush3.bf16.msra.mxu0 %v6940_v63 }
 0x4a6   : > { %6005 = vmatprep.subr.bf16.mxu0 %v6941_v0 }
 0x4a8   : > { %4813 = vmatpush1.bf16.msra.mxu1 %v6882_v58 }
 0x4a9   : > { %4814 = vmatprep.subr.bf16.mxu1 %v6887_v61  ;;  %6006 = vmatpush3.bf16.msra.mxu0 %v6942_v8  ;;  %v4034_v8 = vrot.slane %v8027_v53, %v7758_v44 }
 0x4aa   : > { %6007 = vmatprep.subr.bf16.mxu0 %v6943_v3  ;;  %v4038_v3 = vrot.slane %v8036_v60, %v7758_v44 }
 0x4ac   : > { %4815 = vmatpush1.bf16.msra.mxu1 %v6885_v1 }
 0x4ad   : > { %4816 = vmatprep.subr.bf16.mxu1 %v6890_v49  ;;  %6008 = vmatpush3.bf16.msra.mxu0 %v6944_v7 }
 0x4ae   : > { %6009 = vmatprep.subr.bf16.mxu0 %v6945_v59 }
 0x4b0   : > { %4817 = vmatpush1.bf16.msra.mxu1 %v6888_v4 }
 0x4b1   : > { %4818 = vmatprep.subr.bf16.mxu1 %v6893_v5  ;;  %6010 = vmatpush3.bf16.msra.mxu0 %v6946_v6 }
 0x4b4   : > { %4819 = vmatpush2.bf16.msra.mxu1 %v6891_v10 }
 0x4b5   : > { %4820 = vmatprep.subr.bf16.mxu1 %v6896_v17 }
 0x4b8   : > { %4821 = vmatpush2.bf16.msra.mxu1 %v6894_v11 }
 0x4b9   : > { %4822 = vmatprep.subr.bf16.mxu1 %v6899_v12 }
 0x4bc   : > { %4823 = vmatpush2.bf16.msra.mxu1 %v6897_v18 }
 0x4bd   : > { %4824 = vmatprep.subr.bf16.mxu1 %v6902_v19 }
 0x4c0   : > { %4825 = vmatpush2.bf16.msra.mxu1 %v6900_v20 }
 0x4c1   : > { %4826 = vmatprep.subr.bf16.mxu1 %v6905_v22 }
 0x4c4   : > { %4827 = vmatpush2.bf16.msra.mxu1 %v6903_v62 }
 0x4c5   : > { %4828 = vmatprep.subr.bf16.mxu1 %v6908_v23 }
 0x4c8   : > { %4829 = vmatpush2.bf16.msra.mxu1 %v6906_v24 }
 0x4c9   : > { %4830 = vmatprep.subr.bf16.mxu1 %v6911_v27 }
 0x4cc   : > { %4831 = vmatpush2.bf16.msra.mxu1 %v6909_v26 }
 0x4cd   : > { %4832 = vmatprep.subr.bf16.mxu1 %v6914_v25 }
 0x4d0   : > { %4833 = vmatpush2.bf16.msra.mxu1 %v6912_v29 }
 0x4d1   : > { %6017 = vmatprep.subr.bf16.mxu1 %v6947_v31 }
 0x4d3   : > { %4835 = vmatmul.mubr.bf16.vlgmr.msra.gmra.mxu1 %v8090_v41  ;;  %v6958_v41 = vld [vmem:[#allocation7 + $0x90] sm:$0xff]  }
 0x4d4   : > { %6018 = vmatpush3.bf16.msra.mxu1 %v6948_v32 }
 0x4d5   : > { %6019 = vmatprep.subr.bf16.mxu1 %v6949_v33 }
 0x4d8   : > { %6020 = vmatpush3.bf16.msra.mxu1 %v6950_v34 }
 0x4d9   : > { %6021 = vmatprep.subr.bf16.mxu1 %v6951_v35 }
 0x4dc   : > { %6022 = vmatpush3.bf16.msra.mxu1 %v6952_v39 }
 0x4dd   : > { %6023 = vmatprep.subr.bf16.mxu1 %v6953_v36 }
 0x4e0   : > { %6024 = vmatpush3.bf16.msra.mxu1 %v6954_v14 }
 0x4e1   : > { %6025 = vmatprep.subr.bf16.mxu1 %v6955_v37 }
 0x4e4   : > { %6026 = vmatpush3.bf16.msra.mxu1 %v6956_v38 }
 0x4e5   : > { %6027 = vmatprep.subr.bf16.mxu1 %v6957_v40 }
 0x4e8   : > { %6028 = vmatpush3.bf16.msra.mxu1 %v6958_v41 }
 0x4e9   : > { %6029 = vmatprep.subr.bf16.mxu1 %v6959_v9 }
 0x4ec   : > { %6030 = vmatpush3.bf16.msra.mxu1 %v6960_v28 }
 0x4ed   : > { %6031 = vmatprep.subr.bf16.mxu1 %v6961_v15 }
 0x4f0   : > { %6032 = vmatpush3.bf16.msra.mxu1 %v6962_v42 }
 0x513   : > { %v4713_v43 = vpop.f32.mrf.mxu0 }
 0x514   : > { %v4714_v13 = vadd.f32 %v4713_v43, %v4026_v52 }
 0x515   : > { %v4715_v45 = vpop.f32.mrf.mxu0 }
 0x516   : > { %v4716_v21 = vadd.f32 %v4715_v45, %v4030_v47 }
 0x517   : > { %v4717_v30 = vpop.f32.mrf.mxu0 }
 0x519   : > { %v4718_v46 = vpop.f32.mrf.mxu0 }
 0x553   : > { %v4795_v50 = vpop.f32.mrf.mxu0  ;;  %v4754_v16 = vpop.f32.mrf.mxu1 }
 0x554   : > { %v4755_v54 = vadd.f32 %v4754_v16, %v4714_v13  ;;  %v4796_v4 = vadd.f32 %v4795_v50, %v4034_v8 }
 0x555   : > { %v4797_v55 = vpop.f32.mrf.mxu0  ;;  %v4756_v56 = vpop.f32.mrf.mxu1 }
 0x556   : > { %5937 = vst [vmem:[%s7772_s28 + $0x20] sm:$0xff] %v4755_v54  ;;  %v4757_v57 = vadd.f32 %v4756_v56, %v4716_v21  ;;  %v4848_v58 = vmax.f32 %v4755_v54, 0.0  ;;  %v4798_v7 = vadd.f32 %v4797_v55, %v4038_v3 }
 0x557   : > { %v4799_v61 = vpop.f32.mrf.mxu0  ;;  %v4758_v63 = vpop.f32.mrf.mxu1 }
 0x558   : > { %5938 = vst [vmem:[%s7772_s28 + $0x28] sm:$0xff] %v4757_v57  ;;  %v4849_v0 = vmax.f32 %v4757_v57, 0.0  ;;  %v4852_v51 = vpack.c.bf16 %v4848_v58, %v4848_v58 }
 0x559   : > { %v4800_v1 = vpop.f32.mrf.mxu0  ;;  %v4759_v48 = vpop.f32.mrf.mxu1 }
 0x55a   : > { %v4853_v49 = vpack.c.bf16 %v4849_v0, %v4849_v0 }
 0x55c   : > { %4888 = vmatprep.mubr.bf16.mxu0 %v4853_v49 }
 0x55d   : > { %4889 = vmatmul.mubr.bf16.vlgmr.msra.gmra.mxu0 %v4852_v51 }
 0x593   : > { %v4836_v5 = vpop.f32.mrf.mxu1 }
 0x594   : > { %v4837_v59 = vadd.f32 %v4836_v5, %v4796_v4 }
 0x595   : > { %v4838_v10 = vpop.f32.mrf.mxu1 }
 0x596   : > { %5939 = vst [vmem:[%s7772_s28 + $0x30] sm:$0xff] %v4837_v59  ;;  %v4839_v17 = vadd.f32 %v4838_v10, %v4798_v7  ;;  %v4850_v6 = vmax.f32 %v4837_v59, 0.0 }
 0x597   : > { %v4840_v11 = vpop.f32.mrf.mxu1 }
 0x598   : > { %5940 = vst [vmem:[%s7772_s28 + $0x38] sm:$0xff] %v4839_v17  ;;  %v4851_v12 = vmax.f32 %v4839_v17, 0.0  ;;  %v4854_v20 = vpack.c.bf16 %v4850_v6, %v4850_v6 }
 0x599   : > { %v4841_v18 = vpop.f32.mrf.mxu1 }
 0x59a   : > { %v4855_v19 = vpack.c.bf16 %v4851_v12, %v4851_v12 }
 0x59c   : > { %4928 = vmatprep.mubr.bf16.mxu1 %v4855_v19 }
 0x59d   : > { %4929 = vmatmul.mubr.bf16.vlgmr.msra.gmra.mxu1 %v4854_v20 }
 0x61d   : > { %v6011_v53 = vpop.f32.mrf.mxu0 }
 0x61f   : > { %v6012_v22 = vpop.f32.mrf.mxu0 }
 0x620   : > { %v6013_v62 = vadd.f32 %v6012_v22, %v6011_v53 }
 0x621   : > { %v6014_v44 = vpop.f32.mrf.mxu0 }
 0x622   : > { %v4891_v27 = vadd.f32 %v6013_v62, %v7961_v2 }
 0x623   : > { %v6015_v60 = vpop.f32.mrf.mxu0 }
 0x65d   : > { %v6033_v23 = vpop.f32.mrf.mxu1 }
 0x65f   : > { %v6034_v24 = vpop.f32.mrf.mxu1 }
 0x660   : > { %v6035_v26 = vadd.f32 %v6034_v24, %v6033_v23 }
 0x661   : > { %v6036_v25 = vpop.f32.mrf.mxu1 }
 0x662   : > { %v4931_v29 = vadd.f32 %v6035_v26, %v4891_v27 }
 0x663   : > { %v6037_v31 = vpop.f32.mrf.mxu1 }
 0x664   : > { %5941 = vst [vmem:[%s7974_s29 + $0x8] sm:$0xff] %v4931_v29 }
 0x665 PF: > { %s8184_s27 = sld [smem:[#allocation14_spill]]  ;;  %s8187_s24 = smov %s7133_s25 }
 0x666   : > { %s8185_s18 = sld [smem:[#allocation13_spill]] }
 0x667   : > { %s8186_s26 = sld [smem:[#allocation15_spill]] }
 0x66b   : > { %p22_p11 = scmp.ge.s32.totalorder %s8184_s27, 4  }
 0x66c   : > { %s8188_s25 = smov %s8185_s18 }
 0x66d   :  { %24 = sbr.rel (!%p22_p11) target bundleno = 6 (0x6), region = 133 }
 0x672   :  { %4979 = vsyncpa [#allocation3], 1 }
 0x673   :  { %4981 = vsyncpa [#allocation3 + $0x1], 1 }
 0x674   :  { %4982 = vsyncpa [#allocation5], 1 }
 0x675   :  { %4984 = vsyncpa [#allocation5 + $0x1], 1 }
 0x676   :  { %4985 = vsyncpa [#allocation8], 1 }

</bundles_post_ra>
